<compile_context>
chip_gen: v6e
topology: v6e:2x2x1
jax: 0.10.0
libtpu: 0.0.40
codegen_flags: <defaults>
</compile_context>

<pallas_src>
import math
import functools

import jax
import jax.numpy as jnp
from jax import lax
from jax.experimental import pallas as pl
from jax.experimental.pallas import tpu as pltpu


_BIG = 1e10          # matches torch masked_fill(-1e10), applied additively
_LN_EPS = 1e-5       # nn.LayerNorm default eps

_LAYER_WEIGHT_KEYS = (
    "wq1", "bq1", "wk1", "bk1", "wv1", "bv1", "wo1", "bo1", "ln1_g", "ln1_b",
    "wq2", "bq2", "wk2", "bk2", "wv2", "bv2", "wo2", "bo2", "ln2_g", "ln2_b",
    "w1", "b1", "w2", "b2", "ln3_g", "ln3_b",
)
# Matmul weight matrices live in HBM as bf16 (MXU-native, half the DMA traffic);
# biases / LayerNorm params stay f32 (elementwise VPU path, esp. on v5e).
_BF16_KEYS = frozenset(
    {"wq1", "wk1", "wv1", "wo1", "wq2", "wk2", "wv2", "wo2", "w1", "w2"})


# ----------------------------------------------------------------------------
# In-kernel helpers (operate on values, not refs).
# ----------------------------------------------------------------------------
def _softmax_lastdim(scores):
    """Exact f32 softmax (rows sum to 1 to fp32 rounding)."""
    m = jnp.max(scores, axis=-1, keepdims=True)
    p = jnp.exp(scores - m)
    return p / jnp.sum(p, axis=-1, keepdims=True)


def _layer_norm(x, gamma, beta, eps):
    mu = jnp.mean(x, axis=-1, keepdims=True)
    var = jnp.mean((x - mu) ** 2, axis=-1, keepdims=True)
    return (x - mu) * lax.rsqrt(var + eps) * gamma + beta


def _mha(x_q2d, x_kv2d, bias, wq, bq, wk, bk, wv, bv, wo, bo,
         *, Bt, Sq, Skv, n_heads, head_dim):
    """Multi-head attention on flattened-row activations.

    x_q2d : (Bt*Sq,  H) f32 queries ; x_kv2d: (Bt*Skv, H) f32 keys/values
    bias  : additive mask bias, (Bt, Sq, Skv) or (Bt, 1, Skv)
    The 1/sqrt(head_dim) scale is pre-folded into wq / bq by the host packer.
    Returns (out (Bt*Sq, H) f32, attn (Bt, n_heads, Sq, Skv) f32).
    """
    H = n_heads * head_dim
    xq = x_q2d.astype(jnp.bfloat16)
    xkv = x_kv2d.astype(jnp.bfloat16)
    # QKV projections: M = Bt*S rows feeding the MXU, f32 accumulation.
    q = jnp.dot(xq, wq, preferred_element_type=jnp.float32) + bq
    k = jnp.dot(xkv, wk, preferred_element_type=jnp.float32) + bk
    v = jnp.dot(xkv, wv, preferred_element_type=jnp.float32) + bv

    # One batched contraction over all heads (== einsum 'bqhd,bkhd->bhqk'):
    # merge (batch, head) into a single leading batch dim.
    def to_heads(t, S):
        t = t.reshape(Bt, S, n_heads, head_dim)
        return jnp.swapaxes(t, 1, 2).reshape(Bt * n_heads, S, head_dim)

    qh = to_heads(q, Sq).astype(jnp.bfloat16)
    kh = to_heads(k, Skv).astype(jnp.bfloat16)
    vh = to_heads(v, Skv).astype(jnp.bfloat16)

    scores = jnp.einsum('bqd,bkd->bqk', qh, kh,
                        preferred_element_type=jnp.float32)
    scores = scores.reshape(Bt, n_heads, Sq, Skv) + bias[:, None, :, :]
    attn = _softmax_lastdim(scores)                        # f32 probabilities

    ctx = jnp.einsum('bqk,bkd->bqd',
                     attn.reshape(Bt * n_heads, Sq, Skv).astype(jnp.bfloat16),
                     vh, preferred_element_type=jnp.float32)
    ctx = jnp.swapaxes(ctx.reshape(Bt, n_heads, Sq, head_dim), 1, 2)
    ctx = ctx.reshape(Bt * Sq, H)

    out = jnp.dot(ctx.astype(jnp.bfloat16), wo,
                  preferred_element_type=jnp.float32) + bo
    return out, attn


# ----------------------------------------------------------------------------
# Pallas kernel: the FULL decoder stack.  grid = (batch_tiles, n_layers).
# Activations live in a VMEM scratch across the (arbitrary) layer axis.
# ----------------------------------------------------------------------------
def _decoder_stack_kernel(
    trg_ref, enc_ref, trg_keep_ref, src_keep_ref,
    wq1_ref, bq1_ref, wk1_ref, bk1_ref, wv1_ref, bv1_ref, wo1_ref, bo1_ref,
    ln1_g_ref, ln1_b_ref,
    wq2_ref, bq2_ref, wk2_ref, bk2_ref, wv2_ref, bv2_ref, wo2_ref, bo2_ref,
    ln2_g_ref, ln2_b_ref,
    w1_ref, b1_ref, w2_ref, b2_ref,
    ln3_g_ref, ln3_b_ref,
    out_ref, attn_ref,
    x_scr,
    *, n_heads, head_dim, eps,
):
    Bt, St, H = trg_ref.shape
    Ss = enc_ref.shape[1]
    layer = pl.program_id(1)

    # Layer 0: load the embedded target activations into the resident scratch.
    @pl.when(layer == 0)
    def _():
        x_scr[...] = trg_ref[...].reshape(Bt * St, H)

    x = x_scr[...]
    enc = enc_ref[...].reshape(Bt * Ss, H)

    # Additive attention biases from the tiny (Bt,1,S) keep masks (1 keep / 0 pad);
    # the causal part is built in-kernel.  Never materialized in HBM.
    trg_keep = trg_keep_ref[...]                           # (Bt, 1, St) f32
    src_keep = src_keep_ref[...]                           # (Bt, 1, Ss) f32
    q_idx = lax.broadcasted_iota(jnp.int32, (St, St), 0)
    k_idx = lax.broadcasted_iota(jnp.int32, (St, St), 1)
    causal = jnp.where(q_idx >= k_idx, 0.0, -_BIG).astype(jnp.float32)
    trg_bias = causal[None, :, :] + (trg_keep - 1.0) * jnp.float32(_BIG)  # (Bt,St,St)
    src_bias = (src_keep - 1.0) * jnp.float32(_BIG)                        # (Bt,1,Ss)

    # ---- Masked multi-head self attention + residual + LayerNorm -------------
    sa_out, _ = _mha(
        x, x, trg_bias,
        wq1_ref[...], bq1_ref[...], wk1_ref[...], bk1_ref[...],
        wv1_ref[...], bv1_ref[...], wo1_ref[...], bo1_ref[...],
        Bt=Bt, Sq=St, Skv=St, n_heads=n_heads, head_dim=head_dim)
    y = _layer_norm(x + sa_out, ln1_g_ref[...], ln1_b_ref[...], eps)

    # ---- Encoder-decoder (cross) attention + residual + LayerNorm ------------
    ca_out, attn = _mha(
        y, enc, src_bias,
        wq2_ref[...], bq2_ref[...], wk2_ref[...], bk2_ref[...],
        wv2_ref[...], bv2_ref[...], wo2_ref[...], bo2_ref[...],
        Bt=Bt, Sq=St, Skv=Ss, n_heads=n_heads, head_dim=head_dim)
    z = _layer_norm(y + ca_out, ln2_g_ref[...], ln2_b_ref[...], eps)

    # ---- Position-wise feed-forward + residual + LayerNorm -------------------
    # TODO(synk): tile over pf_dim columns at production sizes (v7x 64 MiB VMEM).
    h1 = jnp.dot(z.astype(jnp.bfloat16), w1_ref[...],
                 preferred_element_type=jnp.float32) + b1_ref[...]
    h1 = jnp.maximum(h1, 0.0)
    ff = jnp.dot(h1.astype(jnp.bfloat16), w2_ref[...],
                 preferred_element_type=jnp.float32) + b2_ref[...]
    new_x = _layer_norm(z + ff, ln3_g_ref[...], ln3_b_ref[...], eps)

    x_scr[...] = new_x                                     # carried to next layer

    # Only the final layer's activations / cross attention ever reach HBM.
    @pl.when(layer == pl.num_programs(1) - 1)
    def _():
        out_ref[...] = new_x.reshape(Bt, St, H).astype(out_ref.dtype)
        attn_ref[...] = attn.astype(attn_ref.dtype)        # single stacked store


def decoder_stack_pallas(trg_emb, enc_src, trg_keep, src_keep, packed, *, n_heads):
    """trg_emb: (B,St,H) f32; enc_src: (B,Ss,H) f32; *_keep: (B,1,S) f32 masks."""
    B, St, H = trg_emb.shape
    Ss = enc_src.shape[1]
    n_layers = packed["wq1"].shape[0]
    head_dim = H // n_heads

    # >= 2 steps on the "parallel" batch axis so both v7x TensorCores get work.
    Bt = B // 2 if (B % 2 == 0 and B >= 2) else B
    # TODO(synk): at large B/S pick Bt so Bt*St >= 256 and/or add a query-tile axis.
    grid = (B // Bt, n_layers)

    def act_map(b, l):
        return (b, 0, 0)

    in_specs = [
        pl.BlockSpec((Bt, St, H), act_map),        # embedded target (read at l==0)
        pl.BlockSpec((Bt, Ss, H), act_map),        # encoder output (resident per b)
        pl.BlockSpec((Bt, 1, St), act_map),        # trg key-pad keep mask
        pl.BlockSpec((Bt, 1, Ss), act_map),        # src key-pad keep mask
    ]
    weights = []
    for key in _LAYER_WEIGHT_KEYS:
        w = packed[key]

        def layer_map(b, l, _nd=w.ndim):
            return (l,) + (0,) * (_nd - 1)

        # Leading layer axis squeezed away; block changes with the layer grid
        # index -> automatic double-buffered prefetch of layer l+1 weights.
        in_specs.append(pl.BlockSpec((None,) + w.shape[1:], layer_map))
        weights.append(w)

    out_specs = [
        pl.BlockSpec((Bt, St, H), act_map),
        pl.BlockSpec((Bt, n_heads, St, Ss), lambda b, l: (b, 0, 0, 0)),
    ]
    out_shapes = [
        jax.ShapeDtypeStruct((B, St, H), jnp.float32),
        jax.ShapeDtypeStruct((B, n_heads, St, Ss), jnp.float32),
    ]

    kernel = functools.partial(
        _decoder_stack_kernel, n_heads=n_heads, head_dim=head_dim, eps=_LN_EPS)

    out, attn = pl.pallas_call(
        kernel,
        out_shape=out_shapes,
        grid_spec=pltpu.PrefetchScalarGridSpec(
            num_scalar_prefetch=0,
            grid=grid,
            in_specs=in_specs,
            out_specs=out_specs,
            scratch_shapes=[pltpu.VMEM((Bt * St, H), jnp.float32)],  # resident x
        ),
        compiler_params=pltpu.CompilerParams(
            # batch tiles independent; layer axis is a sequential carry.
            dimension_semantics=("parallel", "arbitrary"),
            # Safe on v7x (64 MiB physical); raise toward ~96 MiB on v5e/v6e.
            vmem_limit_bytes=48 * 1024 * 1024,
        ),
    )(trg_emb, enc_src, trg_keep, src_keep, *weights)
    return out, attn


# ----------------------------------------------------------------------------
# Final vocabulary projection (fc_out): tiled Pallas matmul, bf16 MXU inputs.
# ----------------------------------------------------------------------------
def _pick_tile(dim, prefs):
    for t in prefs:
        if dim % t == 0:
            return t
    return dim   # fall back to the full (untiled) dimension


def _linear_kernel(x_ref, w_ref, b_ref, o_ref):
    o_ref[...] = (jnp.dot(x_ref[...].astype(jnp.bfloat16), w_ref[...],
                          preferred_element_type=jnp.float32)
                  + b_ref[...]).astype(o_ref.dtype)


def linear_pallas(x2d, w_bf16, b):
    M, H = x2d.shape
    N = w_bf16.shape[1]
    tm = _pick_tile(M, (512, 256, 128))
    tn = _pick_tile(N, (2048, 1024, 512, 256, 128))
    grid = (M // tm, N // tn)
    return pl.pallas_call(
        _linear_kernel,
        out_shape=jax.ShapeDtypeStruct((M, N), jnp.float32),
        grid_spec=pltpu.PrefetchScalarGridSpec(
            num_scalar_prefetch=0,
            grid=grid,
            in_specs=[
                pl.BlockSpec((tm, H), lambda i, j: (i, 0)),
                pl.BlockSpec((H, tn), lambda i, j: (0, j)),
                pl.BlockSpec((1, tn), lambda i, j: (0, j)),
            ],
            out_specs=pl.BlockSpec((tm, tn), lambda i, j: (i, j)),
        ),
        compiler_params=pltpu.CompilerParams(
            dimension_semantics=("parallel", "parallel"),
            vmem_limit_bytes=48 * 1024 * 1024,
        ),
    )(x2d, w_bf16, b)


# ----------------------------------------------------------------------------
# Host-side weight packing: stack layers, fold attention scale, cast to bf16.
# ----------------------------------------------------------------------------
def pack_decoder_params(params, *, n_heads):
    H = params["tok_emb"].shape[1]
    head_dim = H // n_heads
    inv_scale = jnp.float32(1.0 / math.sqrt(float(head_dim)))
    packed = {
        "tok_emb": params["tok_emb"].astype(jnp.float32),
        "pos_emb": params["pos_emb"].astype(jnp.float32),
        "fc_out_w": params["fc_out_w"].astype(jnp.bfloat16),
        "fc_out_b": params["fc_out_b"].astype(jnp.float32),
    }
    for key in _LAYER_WEIGHT_KEYS:
        w = jnp.stack([lp[key] for lp in params["layers"]], axis=0)
        if key in ("wq1", "bq1", "wq2", "bq2"):
            w = w * inv_scale            # fold 1/sqrt(head_dim) into the Q path
        packed[key] = (w.astype(jnp.bfloat16) if key in _BF16_KEYS
                       else w.astype(jnp.float32))
    return packed


# ----------------------------------------------------------------------------
# Decoder forward (embedding gather is glue; everything else runs in kernels).
# ----------------------------------------------------------------------------
def decoder_forward(trg_tokens, enc_src, trg_keep_mask, src_keep_mask, packed, *, n_heads):
    """trg_tokens: (B,St) int32; enc_src: (B,Ss,H) f32;
    trg_keep_mask: (B,St) 1/0 key-pad mask (causal part is applied in-kernel);
    src_keep_mask: (B,Ss) 1/0 key-pad mask."""
    B, St = trg_tokens.shape
    Ss = enc_src.shape[1]
    H = packed["tok_emb"].shape[1]

    tok = packed["tok_emb"][trg_tokens]                    # (B, St, H) gather (glue)
    pos = packed["pos_emb"][jnp.arange(St)]                # (St, H)
    x = (tok * jnp.float32(math.sqrt(H)) + pos[None, :, :]).astype(jnp.float32)
    # dropout -> identity (eval mode)

    trg_keep = trg_keep_mask.astype(jnp.float32).reshape(B, 1, St)
    src_keep = src_keep_mask.astype(jnp.float32).reshape(B, 1, Ss)

    out_x, attention = decoder_stack_pallas(
        x, enc_src.astype(jnp.float32), trg_keep, src_keep, packed, n_heads=n_heads)

    logits = linear_pallas(out_x.reshape(B * St, H),
                           packed["fc_out_w"], packed["fc_out_b"])
    return logits.reshape(B, St, -1), attention


# ----------------------------------------------------------------------------
# Deterministic parameter init (shapes follow the PyTorch module __init__).
# Linear weights are stored as (in, out) so y = x @ W + b.
# ----------------------------------------------------------------------------
def init_params(key, *, output_dim, hid_dim, n_layers, pf_dim, max_length):
    def nrm(k, shape, scale=0.02):
        return (scale * jax.random.normal(k, shape)).astype(jnp.float32)

    keys = jax.random.split(key, 3 + n_layers)
    H, P = hid_dim, pf_dim
    params = {
        "tok_emb": nrm(keys[0], (output_dim, H), 0.1),
        "pos_emb": nrm(keys[1], (max_length, H), 0.1),
        "fc_out_w": nrm(keys[2], (H, output_dim)),
        "fc_out_b": jnp.zeros((1, output_dim), jnp.float32),
        "layers": [],
    }
    for li in range(n_layers):
        ks = jax.random.split(keys[3 + li], 10)
        layer = {
            # self attention
            "wq1": nrm(ks[0], (H, H)), "bq1": jnp.zeros((1, H), jnp.float32),
            "wk1": nrm(ks[1], (H, H)), "bk1": jnp.zeros((1, H), jnp.float32),
            "wv1": nrm(ks[2], (H, H)), "bv1": jnp.zeros((1, H), jnp.float32),
            "wo1": nrm(ks[3], (H, H)), "bo1": jnp.zeros((1, H), jnp.float32),
            "ln1_g": jnp.ones((1, H), jnp.float32),
            "ln1_b": jnp.zeros((1, H), jnp.float32),
            # encoder-decoder (cross) attention
            "wq2": nrm(ks[4], (H, H)), "bq2": jnp.zeros((1, H), jnp.float32),
            "wk2": nrm(ks[5], (H, H)), "bk2": jnp.zeros((1, H), jnp.float32),
            "wv2": nrm(ks[6], (H, H)), "bv2": jnp.zeros((1, H), jnp.float32),
            "wo2": nrm(ks[7], (H, H)), "bo2": jnp.zeros((1, H), jnp.float32),
            "ln2_g": jnp.ones((1, H), jnp.float32),
            "ln2_b": jnp.zeros((1, H), jnp.float32),
            # position-wise FFN
            "w1": nrm(ks[8], (H, P)), "b1": jnp.zeros((1, P), jnp.float32),
            "w2": nrm(ks[9], (P, H)), "b2": jnp.zeros((1, H), jnp.float32),
            "ln3_g": jnp.ones((1, H), jnp.float32),
            "ln3_b": jnp.zeros((1, H), jnp.float32),
        }
        params["layers"].append(layer)
    return params


if __name__ == "__main__":
    # Small shapes consistent with the module's forward.
    B = 2
    TRG_LEN = 8
    SRC_LEN = 16
    OUTPUT_DIM = 50       # target vocab size
    HID_DIM = 32
    N_LAYERS = 2
    N_HEADS = 4
    PF_DIM = 64
    MAX_LENGTH = 100

    key = jax.random.PRNGKey(0)
    k_par, k_trg, k_enc = jax.random.split(key, 3)

    params = init_params(
        k_par, output_dim=OUTPUT_DIM, hid_dim=HID_DIM,
        n_layers=N_LAYERS, pf_dim=PF_DIM, max_length=MAX_LENGTH,
    )
    packed = pack_decoder_params(params, n_heads=N_HEADS)

    trg = jax.random.randint(k_trg, (B, TRG_LEN), 0, OUTPUT_DIM, dtype=jnp.int32)
    enc_src = (0.5 * jax.random.normal(k_enc, (B, SRC_LEN, HID_DIM))).astype(jnp.float32)

    # Key-padding masks (causal part of trg_mask is built inside the kernel).
    trg_keep = jnp.ones((B, TRG_LEN), dtype=jnp.int32).at[1, -2:].set(0)
    src_keep = jnp.ones((B, SRC_LEN), dtype=jnp.int32).at[1, -5:].set(0)

    out, attn = decoder_forward(trg, enc_src, trg_keep, src_keep, packed,
                                n_heads=N_HEADS)
    out = jax.block_until_ready(out)
    attn = jax.block_until_ready(attn)

    assert out.shape == (B, TRG_LEN, OUTPUT_DIM), out.shape
    assert attn.shape == (B, N_HEADS, TRG_LEN, SRC_LEN), attn.shape
    assert bool(jnp.all(jnp.isfinite(out)))
    assert bool(jnp.all(jnp.isfinite(attn)))
    # Cross-attention rows sum to ~1 (exact softmax) and ignore padded source keys.
    assert bool(jnp.all(jnp.abs(jnp.sum(attn, axis=-1) - 1.0) < 1e-3))
    assert bool(jnp.all(attn[1, :, :, -5:] < 1e-6))
    print("KERNEL_OK")
</pallas_src>

<mosaic_0001>
module attributes {stable_mosaic.version = 11 : i64} {
  func.func @_decoder_stack_kernel(%arg0: i32, %arg1: i32, %arg2: memref<1x8x32xf32, #tpu.memory_space<vmem>>, %arg3: memref<1x16x32xf32, #tpu.memory_space<vmem>>, %arg4: memref<1x1x8xf32, #tpu.memory_space<vmem>>, %arg5: memref<1x1x16xf32, #tpu.memory_space<vmem>>, %arg6: memref<1x32x32xbf16, #tpu.memory_space<vmem>>, %arg7: memref<1x1x32xf32, #tpu.memory_space<vmem>>, %arg8: memref<1x32x32xbf16, #tpu.memory_space<vmem>>, %arg9: memref<1x1x32xf32, #tpu.memory_space<vmem>>, %arg10: memref<1x32x32xbf16, #tpu.memory_space<vmem>>, %arg11: memref<1x1x32xf32, #tpu.memory_space<vmem>>, %arg12: memref<1x32x32xbf16, #tpu.memory_space<vmem>>, %arg13: memref<1x1x32xf32, #tpu.memory_space<vmem>>, %arg14: memref<1x1x32xf32, #tpu.memory_space<vmem>>, %arg15: memref<1x1x32xf32, #tpu.memory_space<vmem>>, %arg16: memref<1x32x32xbf16, #tpu.memory_space<vmem>>, %arg17: memref<1x1x32xf32, #tpu.memory_space<vmem>>, %arg18: memref<1x32x32xbf16, #tpu.memory_space<vmem>>, %arg19: memref<1x1x32xf32, #tpu.memory_space<vmem>>, %arg20: memref<1x32x32xbf16, #tpu.memory_space<vmem>>, %arg21: memref<1x1x32xf32, #tpu.memory_space<vmem>>, %arg22: memref<1x32x32xbf16, #tpu.memory_space<vmem>>, %arg23: memref<1x1x32xf32, #tpu.memory_space<vmem>>, %arg24: memref<1x1x32xf32, #tpu.memory_space<vmem>>, %arg25: memref<1x1x32xf32, #tpu.memory_space<vmem>>, %arg26: memref<1x32x64xbf16, #tpu.memory_space<vmem>>, %arg27: memref<1x1x64xf32, #tpu.memory_space<vmem>>, %arg28: memref<1x64x32xbf16, #tpu.memory_space<vmem>>, %arg29: memref<1x1x32xf32, #tpu.memory_space<vmem>>, %arg30: memref<1x1x32xf32, #tpu.memory_space<vmem>>, %arg31: memref<1x1x32xf32, #tpu.memory_space<vmem>>, %arg32: memref<1x8x32xf32, #tpu.memory_space<vmem>>, %arg33: memref<1x4x8x16xf32, #tpu.memory_space<vmem>>, %arg34: memref<8x32xf32, #tpu.memory_space<vmem>>) attributes {dimension_semantics = [#tpu.dimension_semantics<parallel>, #tpu.dimension_semantics<arbitrary>], iteration_bounds = array<i64: 2, 2>, scalar_prefetch = 0 : i64, scratch_operands = 1 : i64, tpu.core_type = #tpu.core_type<tc>, window_params = [{transform_indices = @transform_0, window_bounds = array<i64: 1, 8, 32>}, {transform_indices = @transform_1, window_bounds = array<i64: 1, 16, 32>}, {transform_indices = @transform_2, window_bounds = array<i64: 1, 1, 8>}, {transform_indices = @transform_3, window_bounds = array<i64: 1, 1, 16>}, {transform_indices = @transform_4, window_bounds = array<i64: 1, 32, 32>}, {transform_indices = @transform_5, window_bounds = array<i64: 1, 1, 32>}, {transform_indices = @transform_6, window_bounds = array<i64: 1, 32, 32>}, {transform_indices = @transform_7, window_bounds = array<i64: 1, 1, 32>}, {transform_indices = @transform_8, window_bounds = array<i64: 1, 32, 32>}, {transform_indices = @transform_9, window_bounds = array<i64: 1, 1, 32>}, {transform_indices = @transform_10, window_bounds = array<i64: 1, 32, 32>}, {transform_indices = @transform_11, window_bounds = array<i64: 1, 1, 32>}, {transform_indices = @transform_12, window_bounds = array<i64: 1, 1, 32>}, {transform_indices = @transform_13, window_bounds = array<i64: 1, 1, 32>}, {transform_indices = @transform_14, window_bounds = array<i64: 1, 32, 32>}, {transform_indices = @transform_15, window_bounds = array<i64: 1, 1, 32>}, {transform_indices = @transform_16, window_bounds = array<i64: 1, 32, 32>}, {transform_indices = @transform_17, window_bounds = array<i64: 1, 1, 32>}, {transform_indices = @transform_18, window_bounds = array<i64: 1, 32, 32>}, {transform_indices = @transform_19, window_bounds = array<i64: 1, 1, 32>}, {transform_indices = @transform_20, window_bounds = array<i64: 1, 32, 32>}, {transform_indices = @transform_21, window_bounds = array<i64: 1, 1, 32>}, {transform_indices = @transform_22, window_bounds = array<i64: 1, 1, 32>}, {transform_indices = @transform_23, window_bounds = array<i64: 1, 1, 32>}, {transform_indices = @transform_24, window_bounds = array<i64: 1, 32, 64>}, {transform_indices = @transform_25, window_bounds = array<i64: 1, 1, 64>}, {transform_indices = @transform_26, window_bounds = array<i64: 1, 64, 32>}, {transform_indices = @transform_27, window_bounds = array<i64: 1, 1, 32>}, {transform_indices = @transform_28, window_bounds = array<i64: 1, 1, 32>}, {transform_indices = @transform_29, window_bounds = array<i64: 1, 1, 32>}, {transform_indices = @transform_30, window_bounds = array<i64: 1, 8, 32>}, {transform_indices = @transform_31, window_bounds = array<i64: 1, 4, 8, 16>}]} {
    %c0_i32 = arith.constant 0 : i32
    %0 = arith.cmpi eq, %arg1, %c0_i32 : i32
    %1 = arith.extui %0 : i1 to i32
    %c0_i32_0 = arith.constant 0 : i32
    %2 = arith.cmpi ne, %1, %c0_i32_0 : i32
    scf.if %2 {
      %c0_131 = arith.constant 0 : index
      %c0_132 = arith.constant 0 : index
      %c0_133 = arith.constant 0 : index
      %254 = vector.load %arg2[%c0_131, %c0_132, %c0_133] : memref<1x8x32xf32, #tpu.memory_space<vmem>>, vector<1x8x32xf32>
      %255 = vector.shape_cast %254 : vector<1x8x32xf32> to vector<8x32xf32>
      %c0_134 = arith.constant 0 : index
      %c0_135 = arith.constant 0 : index
      %256 = vector.load %arg34[%c0_134, %c0_135] : memref<8x32xf32, #tpu.memory_space<vmem>>, vector<8x32xf32>
      tpu.vector_store %arg34[%c0_134, %c0_135], %255 {strides = array<i32>} : memref<8x32xf32, #tpu.memory_space<vmem>>, vector<8x32xf32>,
    } else {
    }
    %c0 = arith.constant 0 : index
    %c0_1 = arith.constant 0 : index
    %3 = vector.load %arg34[%c0, %c0_1] : memref<8x32xf32, #tpu.memory_space<vmem>>, vector<8x32xf32>
    %c0_2 = arith.constant 0 : index
    %c0_3 = arith.constant 0 : index
    %c0_4 = arith.constant 0 : index
    %4 = vector.load %arg3[%c0_2, %c0_3, %c0_4] : memref<1x16x32xf32, #tpu.memory_space<vmem>>, vector<1x16x32xf32>
    %5 = vector.shape_cast %4 : vector<1x16x32xf32> to vector<16x32xf32>
    %c0_5 = arith.constant 0 : index
    %c0_6 = arith.constant 0 : index
    %c0_7 = arith.constant 0 : index
    %6 = vector.load %arg4[%c0_5, %c0_6, %c0_7] : memref<1x1x8xf32, #tpu.memory_space<vmem>>, vector<1x1x8xf32>
    %c0_8 = arith.constant 0 : index
    %c0_9 = arith.constant 0 : index
    %c0_10 = arith.constant 0 : index
    %7 = vector.load %arg5[%c0_8, %c0_9, %c0_10] : memref<1x1x16xf32, #tpu.memory_space<vmem>>, vector<1x1x16xf32>
    %8 = tpu.iota {dimensions = array<i32: 0>} : vector<8x8xi32>
    %9 = tpu.iota {dimensions = array<i32: 1>} : vector<8x8xi32>
    %10 = arith.cmpi sge, %8, %9 : vector<8x8xi32>
    %cst = arith.constant 0.000000e+00 : f32
    %cst_11 = arith.constant -1.000000e+10 : f32
    %11 = vector.broadcast %cst : f32 to vector<8x8xf32>
    %12 = vector.broadcast %cst_11 : f32 to vector<8x8xf32>
    %13 = arith.select %10, %11, %12 : vector<8x8xi1>, vector<8x8xf32>
    %14 = vector.shape_cast %13 : vector<8x8xf32> to vector<1x8x8xf32>
    %cst_12 = arith.constant 1.000000e+00 : f32
    %15 = vector.broadcast %cst_12 : f32 to vector<1x1x8xf32>
    %16 = arith.subf %6, %15 : vector<1x1x8xf32>
    %cst_13 = arith.constant 1.000000e+10 : f32
    %17 = vector.broadcast %cst_13 : f32 to vector<1x1x8xf32>
    %18 = arith.mulf %16, %17 : vector<1x1x8xf32>
    %19 = vector.broadcast %18 : vector<1x1x8xf32> to vector<1x8x8xf32>
    %20 = arith.addf %14, %19 : vector<1x8x8xf32>
    %cst_14 = arith.constant 1.000000e+00 : f32
    %21 = vector.broadcast %cst_14 : f32 to vector<1x1x16xf32>
    %22 = arith.subf %7, %21 : vector<1x1x16xf32>
    %cst_15 = arith.constant 1.000000e+10 : f32
    %23 = vector.broadcast %cst_15 : f32 to vector<1x1x16xf32>
    %24 = arith.mulf %22, %23 : vector<1x1x16xf32>
    %c0_16 = arith.constant 0 : index
    %c0_17 = arith.constant 0 : index
    %c0_18 = arith.constant 0 : index
    %25 = vector.load %arg6[%c0_16, %c0_17, %c0_18] : memref<1x32x32xbf16, #tpu.memory_space<vmem>>, vector<1x32x32xbf16>
    %26 = vector.shape_cast %25 : vector<1x32x32xbf16> to vector<32x32xbf16>
    %c0_19 = arith.constant 0 : index
    %c0_20 = arith.constant 0 : index
    %c0_21 = arith.constant 0 : index
    %27 = vector.load %arg7[%c0_19, %c0_20, %c0_21] : memref<1x1x32xf32, #tpu.memory_space<vmem>>, vector<1x1x32xf32>
    %28 = vector.shape_cast %27 : vector<1x1x32xf32> to vector<1x32xf32>
    %c0_22 = arith.constant 0 : index
    %c0_23 = arith.constant 0 : index
    %c0_24 = arith.constant 0 : index
    %29 = vector.load %arg8[%c0_22, %c0_23, %c0_24] : memref<1x32x32xbf16, #tpu.memory_space<vmem>>, vector<1x32x32xbf16>
    %30 = vector.shape_cast %29 : vector<1x32x32xbf16> to vector<32x32xbf16>
    %c0_25 = arith.constant 0 : index
    %c0_26 = arith.constant 0 : index
    %c0_27 = arith.constant 0 : index
    %31 = vector.load %arg9[%c0_25, %c0_26, %c0_27] : memref<1x1x32xf32, #tpu.memory_space<vmem>>, vector<1x1x32xf32>
    %32 = vector.shape_cast %31 : vector<1x1x32xf32> to vector<1x32xf32>
    %c0_28 = arith.constant 0 : index
    %c0_29 = arith.constant 0 : index
    %c0_30 = arith.constant 0 : index
    %33 = vector.load %arg10[%c0_28, %c0_29, %c0_30] : memref<1x32x32xbf16, #tpu.memory_space<vmem>>, vector<1x32x32xbf16>
    %34 = vector.shape_cast %33 : vector<1x32x32xbf16> to vector<32x32xbf16>
    %c0_31 = arith.constant 0 : index
    %c0_32 = arith.constant 0 : index
    %c0_33 = arith.constant 0 : index
    %35 = vector.load %arg11[%c0_31, %c0_32, %c0_33] : memref<1x1x32xf32, #tpu.memory_space<vmem>>, vector<1x1x32xf32>
    %36 = vector.shape_cast %35 : vector<1x1x32xf32> to vector<1x32xf32>
    %c0_34 = arith.constant 0 : index
    %c0_35 = arith.constant 0 : index
    %c0_36 = arith.constant 0 : index
    %37 = vector.load %arg12[%c0_34, %c0_35, %c0_36] : memref<1x32x32xbf16, #tpu.memory_space<vmem>>, vector<1x32x32xbf16>
    %38 = vector.shape_cast %37 : vector<1x32x32xbf16> to vector<32x32xbf16>
    %c0_37 = arith.constant 0 : index
    %c0_38 = arith.constant 0 : index
    %c0_39 = arith.constant 0 : index
    %39 = vector.load %arg13[%c0_37, %c0_38, %c0_39] : memref<1x1x32xf32, #tpu.memory_space<vmem>>, vector<1x1x32xf32>
    %40 = vector.shape_cast %39 : vector<1x1x32xf32> to vector<1x32xf32>
    %41 = arith.truncf %3 : vector<8x32xf32> to vector<8x32xbf16>
    %42 = arith.truncf %3 : vector<8x32xf32> to vector<8x32xbf16>
    %cst_40 = arith.constant dense<0.000000e+00> : vector<8x32xf32>
    %43 = tpu.matmul %41, %26, %cst_40 {dimension_numbers = #tpu.dot_dimension_numbers<[1], [0], [0], [1], [0, 0, 1, 1], [], []>} : vector<8x32xbf16>, vector<32x32xbf16>, vector<8x32xf32> -> vector<8x32xf32>
    %44 = vector.broadcast %28 : vector<1x32xf32> to vector<8x32xf32>
    %45 = arith.addf %43, %44 : vector<8x32xf32>
    %cst_41 = arith.constant dense<0.000000e+00> : vector<8x32xf32>
    %46 = tpu.matmul %42, %30, %cst_41 {dimension_numbers = #tpu.dot_dimension_numbers<[1], [0], [0], [1], [0, 0, 1, 1], [], []>} : vector<8x32xbf16>, vector<32x32xbf16>, vector<8x32xf32> -> vector<8x32xf32>
    %47 = vector.broadcast %32 : vector<1x32xf32> to vector<8x32xf32>
    %48 = arith.addf %46, %47 : vector<8x32xf32>
    %cst_42 = arith.constant dense<0.000000e+00> : vector<8x32xf32>
    %49 = tpu.matmul %42, %34, %cst_42 {dimension_numbers = #tpu.dot_dimension_numbers<[1], [0], [0], [1], [0, 0, 1, 1], [], []>} : vector<8x32xbf16>, vector<32x32xbf16>, vector<8x32xf32> -> vector<8x32xf32>
    %50 = vector.broadcast %36 : vector<1x32xf32> to vector<8x32xf32>
    %51 = arith.addf %49, %50 : vector<8x32xf32>
    %52 = vector.shape_cast %45 : vector<8x32xf32> to vector<1x8x4x8xf32>
    %53 = tpu.transpose %52, [0, 2, 1, 3] : vector<1x8x4x8xf32> -> vector<1x4x8x8xf32>
    %54 = vector.shape_cast %53 : vector<1x4x8x8xf32> to vector<4x8x8xf32>
    %55 = arith.truncf %54 : vector<4x8x8xf32> to vector<4x8x8xbf16>
    %56 = vector.shape_cast %48 : vector<8x32xf32> to vector<1x8x4x8xf32>
    %57 = tpu.transpose %56, [0, 2, 1, 3] : vector<1x8x4x8xf32> -> vector<1x4x8x8xf32>
    %58 = vector.shape_cast %57 : vector<1x4x8x8xf32> to vector<4x8x8xf32>
    %59 = arith.truncf %58 : vector<4x8x8xf32> to vector<4x8x8xbf16>
    %60 = vector.shape_cast %51 : vector<8x32xf32> to vector<1x8x4x8xf32>
    %61 = tpu.transpose %60, [0, 2, 1, 3] : vector<1x8x4x8xf32> -> vector<1x4x8x8xf32>
    %62 = vector.shape_cast %61 : vector<1x4x8x8xf32> to vector<4x8x8xf32>
    %63 = arith.truncf %62 : vector<4x8x8xf32> to vector<4x8x8xbf16>
    "tpu.trace_start"() <{level = 10 : i32, message = "bqd,bkd->bqk"}> : () -> ()
    %cst_43 = arith.constant dense<0.000000e+00> : vector<4x8x8xf32>
    %64 = tpu.matmul %55, %59, %cst_43 {dimension_numbers = #tpu.dot_dimension_numbers<[2], [2], [1], [1], [0, 0, 0, 1, 1, 1], [0], [0]>} : vector<4x8x8xbf16>, vector<4x8x8xbf16>, vector<4x8x8xf32> -> vector<4x8x8xf32>
    "tpu.trace_stop"() : () -> ()
    %65 = vector.shape_cast %64 : vector<4x8x8xf32> to vector<1x4x8x8xf32>
    %66 = vector.shape_cast %20 : vector<1x8x8xf32> to vector<1x1x8x8xf32>
    %67 = vector.broadcast %66 : vector<1x1x8x8xf32> to vector<1x4x8x8xf32>
    %68 = arith.addf %65, %67 : vector<1x4x8x8xf32>
    %cst_44 = arith.constant dense<0xFF800000> : vector<1x4x8xf32>
    %69 = vector.multi_reduction <maximumf>, %68, %cst_44 [3] : vector<1x4x8x8xf32> to vector<1x4x8xf32>
    %70 = vector.shape_cast %69 : vector<1x4x8xf32> to vector<1x4x8x1xf32>
    %71 = vector.broadcast %70 : vector<1x4x8x1xf32> to vector<1x4x8x8xf32>
    %72 = arith.subf %68, %71 : vector<1x4x8x8xf32>
    %73 = math.exp %72 : vector<1x4x8x8xf32>
    %cst_45 = arith.constant dense<0.000000e+00> : vector<1x4x8xf32>
    %74 = vector.multi_reduction <add>, %73, %cst_45 [3] : vector<1x4x8x8xf32> to vector<1x4x8xf32>
    %75 = vector.shape_cast %74 : vector<1x4x8xf32> to vector<1x4x8x1xf32>
    %76 = vector.broadcast %75 : vector<1x4x8x1xf32> to vector<1x4x8x8xf32>
    %77 = arith.divf %73, %76 : vector<1x4x8x8xf32>
    %78 = vector.shape_cast %77 : vector<1x4x8x8xf32> to vector<4x8x8xf32>
    %79 = arith.truncf %78 : vector<4x8x8xf32> to vector<4x8x8xbf16>
    "tpu.trace_start"() <{level = 10 : i32, message = "bqk,bkd->bqd"}> : () -> ()
    %cst_46 = arith.constant dense<0.000000e+00> : vector<4x8x8xf32>
    %80 = tpu.matmul %79, %63, %cst_46 {dimension_numbers = #tpu.dot_dimension_numbers<[2], [1], [1], [2], [0, 0, 0, 1, 1, 2], [0], [0]>} : vector<4x8x8xbf16>, vector<4x8x8xbf16>, vector<4x8x8xf32> -> vector<4x8x8xf32>
    "tpu.trace_stop"() : () -> ()
    %81 = vector.shape_cast %80 : vector<4x8x8xf32> to vector<1x4x8x8xf32>
    %82 = tpu.transpose %81, [0, 2, 1, 3] : vector<1x4x8x8xf32> -> vector<1x8x4x8xf32>
    %83 = vector.shape_cast %82 : vector<1x8x4x8xf32> to vector<8x32xf32>
    %84 = arith.truncf %83 : vector<8x32xf32> to vector<8x32xbf16>
    %cst_47 = arith.constant dense<0.000000e+00> : vector<8x32xf32>
    %85 = tpu.matmul %84, %38, %cst_47 {dimension_numbers = #tpu.dot_dimension_numbers<[1], [0], [0], [1], [0, 0, 1, 1], [], []>} : vector<8x32xbf16>, vector<32x32xbf16>, vector<8x32xf32> -> vector<8x32xf32>
    %86 = vector.broadcast %40 : vector<1x32xf32> to vector<8x32xf32>
    %87 = arith.addf %85, %86 : vector<8x32xf32>
    %88 = arith.addf %3, %87 : vector<8x32xf32>
    %c0_48 = arith.constant 0 : index
    %c0_49 = arith.constant 0 : index
    %c0_50 = arith.constant 0 : index
    %89 = vector.load %arg14[%c0_48, %c0_49, %c0_50] : memref<1x1x32xf32, #tpu.memory_space<vmem>>, vector<1x1x32xf32>
    %90 = vector.shape_cast %89 : vector<1x1x32xf32> to vector<1x32xf32>
    %c0_51 = arith.constant 0 : index
    %c0_52 = arith.constant 0 : index
    %c0_53 = arith.constant 0 : index
    %91 = vector.load %arg15[%c0_51, %c0_52, %c0_53] : memref<1x1x32xf32, #tpu.memory_space<vmem>>, vector<1x1x32xf32>
    %92 = vector.shape_cast %91 : vector<1x1x32xf32> to vector<1x32xf32>
    %cst_54 = arith.constant dense<0.000000e+00> : vector<8xf32>
    %93 = vector.multi_reduction <add>, %88, %cst_54 [1] : vector<8x32xf32> to vector<8xf32>
    %94 = vector.shape_cast %93 : vector<8xf32> to vector<8x1xf32>
    %cst_55 = arith.constant 3.200000e+01 : f32
    %95 = vector.broadcast %cst_55 : f32 to vector<8x1xf32>
    %96 = arith.divf %94, %95 : vector<8x1xf32>
    %97 = vector.broadcast %96 : vector<8x1xf32> to vector<8x32xf32>
    %98 = arith.subf %88, %97 : vector<8x32xf32>
    %99 = arith.mulf %98, %98 : vector<8x32xf32>
    %cst_56 = arith.constant dense<0.000000e+00> : vector<8xf32>
    %100 = vector.multi_reduction <add>, %99, %cst_56 [1] : vector<8x32xf32> to vector<8xf32>
    %101 = vector.shape_cast %100 : vector<8xf32> to vector<8x1xf32>
    %cst_57 = arith.constant 3.200000e+01 : f32
    %102 = vector.broadcast %cst_57 : f32 to vector<8x1xf32>
    %103 = arith.divf %101, %102 : vector<8x1xf32>
    %104 = vector.broadcast %96 : vector<8x1xf32> to vector<8x32xf32>
    %105 = arith.subf %88, %104 : vector<8x32xf32>
    %cst_58 = arith.constant 9.99999974E-6 : f32
    %106 = vector.broadcast %cst_58 : f32 to vector<8x1xf32>
    %107 = arith.addf %103, %106 : vector<8x1xf32>
    %108 = math.rsqrt %107 : vector<8x1xf32>
    %109 = vector.broadcast %108 : vector<8x1xf32> to vector<8x32xf32>
    %110 = arith.mulf %105, %109 : vector<8x32xf32>
    %111 = vector.broadcast %90 : vector<1x32xf32> to vector<8x32xf32>
    %112 = arith.mulf %110, %111 : vector<8x32xf32>
    %113 = vector.broadcast %92 : vector<1x32xf32> to vector<8x32xf32>
    %114 = arith.addf %112, %113 : vector<8x32xf32>
    %c0_59 = arith.constant 0 : index
    %c0_60 = arith.constant 0 : index
    %c0_61 = arith.constant 0 : index
    %115 = vector.load %arg16[%c0_59, %c0_60, %c0_61] : memref<1x32x32xbf16, #tpu.memory_space<vmem>>, vector<1x32x32xbf16>
    %116 = vector.shape_cast %115 : vector<1x32x32xbf16> to vector<32x32xbf16>
    %c0_62 = arith.constant 0 : index
    %c0_63 = arith.constant 0 : index
    %c0_64 = arith.constant 0 : index
    %117 = vector.load %arg17[%c0_62, %c0_63, %c0_64] : memref<1x1x32xf32, #tpu.memory_space<vmem>>, vector<1x1x32xf32>
    %118 = vector.shape_cast %117 : vector<1x1x32xf32> to vector<1x32xf32>
    %c0_65 = arith.constant 0 : index
    %c0_66 = arith.constant 0 : index
    %c0_67 = arith.constant 0 : index
    %119 = vector.load %arg18[%c0_65, %c0_66, %c0_67] : memref<1x32x32xbf16, #tpu.memory_space<vmem>>, vector<1x32x32xbf16>
    %120 = vector.shape_cast %119 : vector<1x32x32xbf16> to vector<32x32xbf16>
    %c0_68 = arith.constant 0 : index
    %c0_69 = arith.constant 0 : index
    %c0_70 = arith.constant 0 : index
    %121 = vector.load %arg19[%c0_68, %c0_69, %c0_70] : memref<1x1x32xf32, #tpu.memory_space<vmem>>, vector<1x1x32xf32>
    %122 = vector.shape_cast %121 : vector<1x1x32xf32> to vector<1x32xf32>
    %c0_71 = arith.constant 0 : index
    %c0_72 = arith.constant 0 : index
    %c0_73 = arith.constant 0 : index
    %123 = vector.load %arg20[%c0_71, %c0_72, %c0_73] : memref<1x32x32xbf16, #tpu.memory_space<vmem>>, vector<1x32x32xbf16>
    %124 = vector.shape_cast %123 : vector<1x32x32xbf16> to vector<32x32xbf16>
    %c0_74 = arith.constant 0 : index
    %c0_75 = arith.constant 0 : index
    %c0_76 = arith.constant 0 : index
    %125 = vector.load %arg21[%c0_74, %c0_75, %c0_76] : memref<1x1x32xf32, #tpu.memory_space<vmem>>, vector<1x1x32xf32>
    %126 = vector.shape_cast %125 : vector<1x1x32xf32> to vector<1x32xf32>
    %c0_77 = arith.constant 0 : index
    %c0_78 = arith.constant 0 : index
    %c0_79 = arith.constant 0 : index
    %127 = vector.load %arg22[%c0_77, %c0_78, %c0_79] : memref<1x32x32xbf16, #tpu.memory_space<vmem>>, vector<1x32x32xbf16>
    %128 = vector.shape_cast %127 : vector<1x32x32xbf16> to vector<32x32xbf16>
    %c0_80 = arith.constant 0 : index
    %c0_81 = arith.constant 0 : index
    %c0_82 = arith.constant 0 : index
    %129 = vector.load %arg23[%c0_80, %c0_81, %c0_82] : memref<1x1x32xf32, #tpu.memory_space<vmem>>, vector<1x1x32xf32>
    %130 = vector.shape_cast %129 : vector<1x1x32xf32> to vector<1x32xf32>
    %131 = arith.truncf %114 : vector<8x32xf32> to vector<8x32xbf16>
    %132 = arith.truncf %5 : vector<16x32xf32> to vector<16x32xbf16>
    %cst_83 = arith.constant dense<0.000000e+00> : vector<8x32xf32>
    %133 = tpu.matmul %131, %116, %cst_83 {dimension_numbers = #tpu.dot_dimension_numbers<[1], [0], [0], [1], [0, 0, 1, 1], [], []>} : vector<8x32xbf16>, vector<32x32xbf16>, vector<8x32xf32> -> vector<8x32xf32>
    %134 = vector.broadcast %118 : vector<1x32xf32> to vector<8x32xf32>
    %135 = arith.addf %133, %134 : vector<8x32xf32>
    %cst_84 = arith.constant dense<0.000000e+00> : vector<16x32xf32>
    %136 = tpu.matmul %132, %120, %cst_84 {dimension_numbers = #tpu.dot_dimension_numbers<[1], [0], [0], [1], [0, 0, 1, 1], [], []>} : vector<16x32xbf16>, vector<32x32xbf16>, vector<16x32xf32> -> vector<16x32xf32>
    %137 = vector.broadcast %122 : vector<1x32xf32> to vector<16x32xf32>
    %138 = arith.addf %136, %137 : vector<16x32xf32>
    %cst_85 = arith.constant dense<0.000000e+00> : vector<16x32xf32>
    %139 = tpu.matmul %132, %124, %cst_85 {dimension_numbers = #tpu.dot_dimension_numbers<[1], [0], [0], [1], [0, 0, 1, 1], [], []>} : vector<16x32xbf16>, vector<32x32xbf16>, vector<16x32xf32> -> vector<16x32xf32>
    %140 = vector.broadcast %126 : vector<1x32xf32> to vector<16x32xf32>
    %141 = arith.addf %139, %140 : vector<16x32xf32>
    %142 = vector.shape_cast %135 : vector<8x32xf32> to vector<1x8x4x8xf32>
    %143 = tpu.transpose %142, [0, 2, 1, 3] : vector<1x8x4x8xf32> -> vector<1x4x8x8xf32>
    %144 = vector.shape_cast %143 : vector<1x4x8x8xf32> to vector<4x8x8xf32>
    %145 = arith.truncf %144 : vector<4x8x8xf32> to vector<4x8x8xbf16>
    %146 = vector.shape_cast %138 : vector<16x32xf32> to vector<1x16x4x8xf32>
    %147 = tpu.transpose %146, [0, 2, 1, 3] : vector<1x16x4x8xf32> -> vector<1x4x16x8xf32>
    %148 = vector.shape_cast %147 : vector<1x4x16x8xf32> to vector<4x16x8xf32>
    %149 = arith.truncf %148 : vector<4x16x8xf32> to vector<4x16x8xbf16>
    %150 = vector.shape_cast %141 : vector<16x32xf32> to vector<1x16x4x8xf32>
    %151 = tpu.transpose %150, [0, 2, 1, 3] : vector<1x16x4x8xf32> -> vector<1x4x16x8xf32>
    %152 = vector.shape_cast %151 : vector<1x4x16x8xf32> to vector<4x16x8xf32>
    %153 = arith.truncf %152 : vector<4x16x8xf32> to vector<4x16x8xbf16>
    "tpu.trace_start"() <{level = 10 : i32, message = "bqd,bkd->bqk"}> : () -> ()
    %cst_86 = arith.constant dense<0.000000e+00> : vector<4x8x16xf32>
    %154 = tpu.matmul %145, %149, %cst_86 {dimension_numbers = #tpu.dot_dimension_numbers<[2], [2], [1], [1], [0, 0, 0, 1, 1, 1], [0], [0]>} : vector<4x8x8xbf16>, vector<4x16x8xbf16>, vector<4x8x16xf32> -> vector<4x8x16xf32>
    "tpu.trace_stop"() : () -> ()
    %155 = vector.shape_cast %154 : vector<4x8x16xf32> to vector<1x4x8x16xf32>
    %156 = vector.shape_cast %24 : vector<1x1x16xf32> to vector<1x1x1x16xf32>
    %157 = vector.broadcast %156 : vector<1x1x1x16xf32> to vector<1x4x8x16xf32>
    %158 = arith.addf %155, %157 : vector<1x4x8x16xf32>
    %cst_87 = arith.constant dense<0xFF800000> : vector<1x4x8xf32>
    %159 = vector.multi_reduction <maximumf>, %158, %cst_87 [3] : vector<1x4x8x16xf32> to vector<1x4x8xf32>
    %160 = vector.shape_cast %159 : vector<1x4x8xf32> to vector<1x4x8x1xf32>
    %161 = vector.broadcast %160 : vector<1x4x8x1xf32> to vector<1x4x8x16xf32>
    %162 = arith.subf %158, %161 : vector<1x4x8x16xf32>
    %163 = math.exp %162 : vector<1x4x8x16xf32>
    %cst_88 = arith.constant dense<0.000000e+00> : vector<1x4x8xf32>
    %164 = vector.multi_reduction <add>, %163, %cst_88 [3] : vector<1x4x8x16xf32> to vector<1x4x8xf32>
    %165 = vector.shape_cast %164 : vector<1x4x8xf32> to vector<1x4x8x1xf32>
    %166 = vector.broadcast %165 : vector<1x4x8x1xf32> to vector<1x4x8x16xf32>
    %167 = arith.divf %163, %166 : vector<1x4x8x16xf32>
    %168 = vector.shape_cast %167 : vector<1x4x8x16xf32> to vector<4x8x16xf32>
    %169 = arith.truncf %168 : vector<4x8x16xf32> to vector<4x8x16xbf16>
    "tpu.trace_start"() <{level = 10 : i32, message = "bqk,bkd->bqd"}> : () -> ()
    %cst_89 = arith.constant dense<0.000000e+00> : vector<4x8x8xf32>
    %170 = tpu.matmul %169, %153, %cst_89 {dimension_numbers = #tpu.dot_dimension_numbers<[2], [1], [1], [2], [0, 0, 0, 1, 1, 2], [0], [0]>} : vector<4x8x16xbf16>, vector<4x16x8xbf16>, vector<4x8x8xf32> -> vector<4x8x8xf32>
    "tpu.trace_stop"() : () -> ()
    %171 = vector.shape_cast %170 : vector<4x8x8xf32> to vector<1x4x8x8xf32>
    %172 = tpu.transpose %171, [0, 2, 1, 3] : vector<1x4x8x8xf32> -> vector<1x8x4x8xf32>
    %173 = vector.shape_cast %172 : vector<1x8x4x8xf32> to vector<8x32xf32>
    %174 = arith.truncf %173 : vector<8x32xf32> to vector<8x32xbf16>
    %cst_90 = arith.constant dense<0.000000e+00> : vector<8x32xf32>
    %175 = tpu.matmul %174, %128, %cst_90 {dimension_numbers = #tpu.dot_dimension_numbers<[1], [0], [0], [1], [0, 0, 1, 1], [], []>} : vector<8x32xbf16>, vector<32x32xbf16>, vector<8x32xf32> -> vector<8x32xf32>
    %176 = vector.broadcast %130 : vector<1x32xf32> to vector<8x32xf32>
    %177 = arith.addf %175, %176 : vector<8x32xf32>
    %178 = arith.addf %114, %177 : vector<8x32xf32>
    %c0_91 = arith.constant 0 : index
    %c0_92 = arith.constant 0 : index
    %c0_93 = arith.constant 0 : index
    %179 = vector.load %arg24[%c0_91, %c0_92, %c0_93] : memref<1x1x32xf32, #tpu.memory_space<vmem>>, vector<1x1x32xf32>
    %180 = vector.shape_cast %179 : vector<1x1x32xf32> to vector<1x32xf32>
    %c0_94 = arith.constant 0 : index
    %c0_95 = arith.constant 0 : index
    %c0_96 = arith.constant 0 : index
    %181 = vector.load %arg25[%c0_94, %c0_95, %c0_96] : memref<1x1x32xf32, #tpu.memory_space<vmem>>, vector<1x1x32xf32>
    %182 = vector.shape_cast %181 : vector<1x1x32xf32> to vector<1x32xf32>
    %cst_97 = arith.constant dense<0.000000e+00> : vector<8xf32>
    %183 = vector.multi_reduction <add>, %178, %cst_97 [1] : vector<8x32xf32> to vector<8xf32>
    %184 = vector.shape_cast %183 : vector<8xf32> to vector<8x1xf32>
    %cst_98 = arith.constant 3.200000e+01 : f32
    %185 = vector.broadcast %cst_98 : f32 to vector<8x1xf32>
    %186 = arith.divf %184, %185 : vector<8x1xf32>
    %187 = vector.broadcast %186 : vector<8x1xf32> to vector<8x32xf32>
    %188 = arith.subf %178, %187 : vector<8x32xf32>
    %189 = arith.mulf %188, %188 : vector<8x32xf32>
    %cst_99 = arith.constant dense<0.000000e+00> : vector<8xf32>
    %190 = vector.multi_reduction <add>, %189, %cst_99 [1] : vector<8x32xf32> to vector<8xf32>
    %191 = vector.shape_cast %190 : vector<8xf32> to vector<8x1xf32>
    %cst_100 = arith.constant 3.200000e+01 : f32
    %192 = vector.broadcast %cst_100 : f32 to vector<8x1xf32>
    %193 = arith.divf %191, %192 : vector<8x1xf32>
    %194 = vector.broadcast %186 : vector<8x1xf32> to vector<8x32xf32>
    %195 = arith.subf %178, %194 : vector<8x32xf32>
    %cst_101 = arith.constant 9.99999974E-6 : f32
    %196 = vector.broadcast %cst_101 : f32 to vector<8x1xf32>
    %197 = arith.addf %193, %196 : vector<8x1xf32>
    %198 = math.rsqrt %197 : vector<8x1xf32>
    %199 = vector.broadcast %198 : vector<8x1xf32> to vector<8x32xf32>
    %200 = arith.mulf %195, %199 : vector<8x32xf32>
    %201 = vector.broadcast %180 : vector<1x32xf32> to vector<8x32xf32>
    %202 = arith.mulf %200, %201 : vector<8x32xf32>
    %203 = vector.broadcast %182 : vector<1x32xf32> to vector<8x32xf32>
    %204 = arith.addf %202, %203 : vector<8x32xf32>
    %205 = arith.truncf %204 : vector<8x32xf32> to vector<8x32xbf16>
    %c0_102 = arith.constant 0 : index
    %c0_103 = arith.constant 0 : index
    %c0_104 = arith.constant 0 : index
    %206 = vector.load %arg26[%c0_102, %c0_103, %c0_104] : memref<1x32x64xbf16, #tpu.memory_space<vmem>>, vector<1x32x64xbf16>
    %207 = vector.shape_cast %206 : vector<1x32x64xbf16> to vector<32x64xbf16>
    %cst_105 = arith.constant dense<0.000000e+00> : vector<8x64xf32>
    %208 = tpu.matmul %205, %207, %cst_105 {dimension_numbers = #tpu.dot_dimension_numbers<[1], [0], [0], [1], [0, 0, 1, 1], [], []>} : vector<8x32xbf16>, vector<32x64xbf16>, vector<8x64xf32> -> vector<8x64xf32>
    %c0_106 = arith.constant 0 : index
    %c0_107 = arith.constant 0 : index
    %c0_108 = arith.constant 0 : index
    %209 = vector.load %arg27[%c0_106, %c0_107, %c0_108] : memref<1x1x64xf32, #tpu.memory_space<vmem>>, vector<1x1x64xf32>
    %210 = vector.shape_cast %209 : vector<1x1x64xf32> to vector<1x64xf32>
    %211 = vector.broadcast %210 : vector<1x64xf32> to vector<8x64xf32>
    %212 = arith.addf %208, %211 : vector<8x64xf32>
    %cst_109 = arith.constant 0.000000e+00 : f32
    %213 = vector.broadcast %cst_109 : f32 to vector<8x64xf32>
    %214 = arith.maximumf %212, %213 : vector<8x64xf32>
    %215 = arith.truncf %214 : vector<8x64xf32> to vector<8x64xbf16>
    %c0_110 = arith.constant 0 : index
    %c0_111 = arith.constant 0 : index
    %c0_112 = arith.constant 0 : index
    %216 = vector.load %arg28[%c0_110, %c0_111, %c0_112] : memref<1x64x32xbf16, #tpu.memory_space<vmem>>, vector<1x64x32xbf16>
    %217 = vector.shape_cast %216 : vector<1x64x32xbf16> to vector<64x32xbf16>
    %cst_113 = arith.constant dense<0.000000e+00> : vector<8x32xf32>
    %218 = tpu.matmul %215, %217, %cst_113 {dimension_numbers = #tpu.dot_dimension_numbers<[1], [0], [0], [1], [0, 0, 1, 1], [], []>} : vector<8x64xbf16>, vector<64x32xbf16>, vector<8x32xf32> -> vector<8x32xf32>
    %c0_114 = arith.constant 0 : index
    %c0_115 = arith.constant 0 : index
    %c0_116 = arith.constant 0 : index
    %219 = vector.load %arg29[%c0_114, %c0_115, %c0_116] : memref<1x1x32xf32, #tpu.memory_space<vmem>>, vector<1x1x32xf32>
    %220 = vector.shape_cast %219 : vector<1x1x32xf32> to vector<1x32xf32>
    %221 = vector.broadcast %220 : vector<1x32xf32> to vector<8x32xf32>
    %222 = arith.addf %218, %221 : vector<8x32xf32>
    %223 = arith.addf %204, %222 : vector<8x32xf32>
    %c0_117 = arith.constant 0 : index
    %c0_118 = arith.constant 0 : index
    %c0_119 = arith.constant 0 : index
    %224 = vector.load %arg30[%c0_117, %c0_118, %c0_119] : memref<1x1x32xf32, #tpu.memory_space<vmem>>, vector<1x1x32xf32>
    %225 = vector.shape_cast %224 : vector<1x1x32xf32> to vector<1x32xf32>
    %c0_120 = arith.constant 0 : index
    %c0_121 = arith.constant 0 : index
    %c0_122 = arith.constant 0 : index
    %226 = vector.load %arg31[%c0_120, %c0_121, %c0_122] : memref<1x1x32xf32, #tpu.memory_space<vmem>>, vector<1x1x32xf32>
    %227 = vector.shape_cast %226 : vector<1x1x32xf32> to vector<1x32xf32>
    %cst_123 = arith.constant dense<0.000000e+00> : vector<8xf32>
    %228 = vector.multi_reduction <add>, %223, %cst_123 [1] : vector<8x32xf32> to vector<8xf32>
    %229 = vector.shape_cast %228 : vector<8xf32> to vector<8x1xf32>
    %cst_124 = arith.constant 3.200000e+01 : f32
    %230 = vector.broadcast %cst_124 : f32 to vector<8x1xf32>
    %231 = arith.divf %229, %230 : vector<8x1xf32>
    %232 = vector.broadcast %231 : vector<8x1xf32> to vector<8x32xf32>
    %233 = arith.subf %223, %232 : vector<8x32xf32>
    %234 = arith.mulf %233, %233 : vector<8x32xf32>
    %cst_125 = arith.constant dense<0.000000e+00> : vector<8xf32>
    %235 = vector.multi_reduction <add>, %234, %cst_125 [1] : vector<8x32xf32> to vector<8xf32>
    %236 = vector.shape_cast %235 : vector<8xf32> to vector<8x1xf32>
    %cst_126 = arith.constant 3.200000e+01 : f32
    %237 = vector.broadcast %cst_126 : f32 to vector<8x1xf32>
    %238 = arith.divf %236, %237 : vector<8x1xf32>
    %239 = vector.broadcast %231 : vector<8x1xf32> to vector<8x32xf32>
    %240 = arith.subf %223, %239 : vector<8x32xf32>
    %cst_127 = arith.constant 9.99999974E-6 : f32
    %241 = vector.broadcast %cst_127 : f32 to vector<8x1xf32>
    %242 = arith.addf %238, %241 : vector<8x1xf32>
    %243 = math.rsqrt %242 : vector<8x1xf32>
    %244 = vector.broadcast %243 : vector<8x1xf32> to vector<8x32xf32>
    %245 = arith.mulf %240, %244 : vector<8x32xf32>
    %246 = vector.broadcast %225 : vector<1x32xf32> to vector<8x32xf32>
    %247 = arith.mulf %245, %246 : vector<8x32xf32>
    %248 = vector.broadcast %227 : vector<1x32xf32> to vector<8x32xf32>
    %249 = arith.addf %247, %248 : vector<8x32xf32>
    %c0_128 = arith.constant 0 : index
    %c0_129 = arith.constant 0 : index
    %250 = vector.load %arg34[%c0_128, %c0_129] : memref<8x32xf32, #tpu.memory_space<vmem>>, vector<8x32xf32>
    tpu.vector_store %arg34[%c0_128, %c0_129], %249 {strides = array<i32>} : memref<8x32xf32, #tpu.memory_space<vmem>>, vector<8x32xf32>,
    %c1_i32 = arith.constant 1 : i32
    %251 = arith.cmpi eq, %arg1, %c1_i32 : i32
    %252 = arith.extui %251 : i1 to i32
    %c0_i32_130 = arith.constant 0 : i32
    %253 = arith.cmpi ne, %252, %c0_i32_130 : i32
    scf.if %253 {
      %254 = vector.shape_cast %249 : vector<8x32xf32> to vector<1x8x32xf32>
      %c0_131 = arith.constant 0 : index
      %c0_132 = arith.constant 0 : index
      %c0_133 = arith.constant 0 : index
      %255 = vector.load %arg32[%c0_131, %c0_132, %c0_133] : memref<1x8x32xf32, #tpu.memory_space<vmem>>, vector<1x8x32xf32>
      tpu.vector_store %arg32[%c0_131, %c0_132, %c0_133], %254 {strides = array<i32>} : memref<1x8x32xf32, #tpu.memory_space<vmem>>, vector<1x8x32xf32>,
      %c0_134 = arith.constant 0 : index
      %c0_135 = arith.constant 0 : index
      %c0_136 = arith.constant 0 : index
      %c0_137 = arith.constant 0 : index
      %256 = vector.load %arg33[%c0_134, %c0_135, %c0_136, %c0_137] : memref<1x4x8x16xf32, #tpu.memory_space<vmem>>, vector<1x4x8x16xf32>
      tpu.vector_store %arg33[%c0_134, %c0_135, %c0_136, %c0_137], %167 {strides = array<i32>} : memref<1x4x8x16xf32, #tpu.memory_space<vmem>>, vector<1x4x8x16xf32>,
    } else {
    }
    return
  }
  func.func @transform_0(%arg0: i32, %arg1: i32) -> (i32, i32, i32) {
    %c0_i32 = arith.constant 0 : i32
    %c0_i32_0 = arith.constant 0 : i32
    %c0_i32_1 = arith.constant 0 : i32
    return %arg0, %c0_i32, %c0_i32_0 : i32, i32, i32
  }
  func.func @transform_1(%arg0: i32, %arg1: i32) -> (i32, i32, i32) {
    %c0_i32 = arith.constant 0 : i32
    %c0_i32_0 = arith.constant 0 : i32
    %c0_i32_1 = arith.constant 0 : i32
    return %arg0, %c0_i32, %c0_i32_0 : i32, i32, i32
  }
  func.func @transform_2(%arg0: i32, %arg1: i32) -> (i32, i32, i32) {
    %c0_i32 = arith.constant 0 : i32
    %c0_i32_0 = arith.constant 0 : i32
    %c0_i32_1 = arith.constant 0 : i32
    return %arg0, %c0_i32, %c0_i32_0 : i32, i32, i32
  }
  func.func @transform_3(%arg0: i32, %arg1: i32) -> (i32, i32, i32) {
    %c0_i32 = arith.constant 0 : i32
    %c0_i32_0 = arith.constant 0 : i32
    %c0_i32_1 = arith.constant 0 : i32
    return %arg0, %c0_i32, %c0_i32_0 : i32, i32, i32
  }
  func.func @transform_4(%arg0: i32, %arg1: i32) -> (i32, i32, i32) {
    %c0_i32 = arith.constant 0 : i32
    %c0_i32_0 = arith.constant 0 : i32
    %c0_i32_1 = arith.constant 0 : i32
    return %arg1, %c0_i32, %c0_i32_0 : i32, i32, i32
  }
  func.func @transform_5(%arg0: i32, %arg1: i32) -> (i32, i32, i32) {
    %c0_i32 = arith.constant 0 : i32
    %c0_i32_0 = arith.constant 0 : i32
    %c0_i32_1 = arith.constant 0 : i32
    return %arg1, %c0_i32, %c0_i32_0 : i32, i32, i32
  }
  func.func @transform_6(%arg0: i32, %arg1: i32) -> (i32, i32, i32) {
    %c0_i32 = arith.constant 0 : i32
    %c0_i32_0 = arith.constant 0 : i32
    %c0_i32_1 = arith.constant 0 : i32
    return %arg1, %c0_i32, %c0_i32_0 : i32, i32, i32
  }
  func.func @transform_7(%arg0: i32, %arg1: i32) -> (i32, i32, i32) {
    %c0_i32 = arith.constant 0 : i32
    %c0_i32_0 = arith.constant 0 : i32
    %c0_i32_1 = arith.constant 0 : i32
    return %arg1, %c0_i32, %c0_i32_0 : i32, i32, i32
  }
  func.func @transform_8(%arg0: i32, %arg1: i32) -> (i32, i32, i32) {
    %c0_i32 = arith.constant 0 : i32
    %c0_i32_0 = arith.constant 0 : i32
    %c0_i32_1 = arith.constant 0 : i32
    return %arg1, %c0_i32, %c0_i32_0 : i32, i32, i32
  }
  func.func @transform_9(%arg0: i32, %arg1: i32) -> (i32, i32, i32) {
    %c0_i32 = arith.constant 0 : i32
    %c0_i32_0 = arith.constant 0 : i32
    %c0_i32_1 = arith.constant 0 : i32
    return %arg1, %c0_i32, %c0_i32_0 : i32, i32, i32
  }
  func.func @transform_10(%arg0: i32, %arg1: i32) -> (i32, i32, i32) {
    %c0_i32 = arith.constant 0 : i32
    %c0_i32_0 = arith.constant 0 : i32
    %c0_i32_1 = arith.constant 0 : i32
    return %arg1, %c0_i32, %c0_i32_0 : i32, i32, i32
  }
  func.func @transform_11(%arg0: i32, %arg1: i32) -> (i32, i32, i32) {
    %c0_i32 = arith.constant 0 : i32
    %c0_i32_0 = arith.constant 0 : i32
    %c0_i32_1 = arith.constant 0 : i32
    return %arg1, %c0_i32, %c0_i32_0 : i32, i32, i32
  }
  func.func @transform_12(%arg0: i32, %arg1: i32) -> (i32, i32, i32) {
    %c0_i32 = arith.constant 0 : i32
    %c0_i32_0 = arith.constant 0 : i32
    %c0_i32_1 = arith.constant 0 : i32
    return %arg1, %c0_i32, %c0_i32_0 : i32, i32, i32
  }
  func.func @transform_13(%arg0: i32, %arg1: i32) -> (i32, i32, i32) {
    %c0_i32 = arith.constant 0 : i32
    %c0_i32_0 = arith.constant 0 : i32
    %c0_i32_1 = arith.constant 0 : i32
    return %arg1, %c0_i32, %c0_i32_0 : i32, i32, i32
  }
  func.func @transform_14(%arg0: i32, %arg1: i32) -> (i32, i32, i32) {
    %c0_i32 = arith.constant 0 : i32
    %c0_i32_0 = arith.constant 0 : i32
    %c0_i32_1 = arith.constant 0 : i32
    return %arg1, %c0_i32, %c0_i32_0 : i32, i32, i32
  }
  func.func @transform_15(%arg0: i32, %arg1: i32) -> (i32, i32, i32) {
    %c0_i32 = arith.constant 0 : i32
    %c0_i32_0 = arith.constant 0 : i32
    %c0_i32_1 = arith.constant 0 : i32
    return %arg1, %c0_i32, %c0_i32_0 : i32, i32, i32
  }
  func.func @transform_16(%arg0: i32, %arg1: i32) -> (i32, i32, i32) {
    %c0_i32 = arith.constant 0 : i32
    %c0_i32_0 = arith.constant 0 : i32
    %c0_i32_1 = arith.constant 0 : i32
    return %arg1, %c0_i32, %c0_i32_0 : i32, i32, i32
  }
  func.func @transform_17(%arg0: i32, %arg1: i32) -> (i32, i32, i32) {
    %c0_i32 = arith.constant 0 : i32
    %c0_i32_0 = arith.constant 0 : i32
    %c0_i32_1 = arith.constant 0 : i32
    return %arg1, %c0_i32, %c0_i32_0 : i32, i32, i32
  }
  func.func @transform_18(%arg0: i32, %arg1: i32) -> (i32, i32, i32) {
    %c0_i32 = arith.constant 0 : i32
    %c0_i32_0 = arith.constant 0 : i32
    %c0_i32_1 = arith.constant 0 : i32
    return %arg1, %c0_i32, %c0_i32_0 : i32, i32, i32
  }
  func.func @transform_19(%arg0: i32, %arg1: i32) -> (i32, i32, i32) {
    %c0_i32 = arith.constant 0 : i32
    %c0_i32_0 = arith.constant 0 : i32
    %c0_i32_1 = arith.constant 0 : i32
    return %arg1, %c0_i32, %c0_i32_0 : i32, i32, i32
  }
  func.func @transform_20(%arg0: i32, %arg1: i32) -> (i32, i32, i32) {
    %c0_i32 = arith.constant 0 : i32
    %c0_i32_0 = arith.constant 0 : i32
    %c0_i32_1 = arith.constant 0 : i32
    return %arg1, %c0_i32, %c0_i32_0 : i32, i32, i32
  }
  func.func @transform_21(%arg0: i32, %arg1: i32) -> (i32, i32, i32) {
    %c0_i32 = arith.constant 0 : i32
    %c0_i32_0 = arith.constant 0 : i32
    %c0_i32_1 = arith.constant 0 : i32
    return %arg1, %c0_i32, %c0_i32_0 : i32, i32, i32
  }
  func.func @transform_22(%arg0: i32, %arg1: i32) -> (i32, i32, i32) {
    %c0_i32 = arith.constant 0 : i32
    %c0_i32_0 = arith.constant 0 : i32
    %c0_i32_1 = arith.constant 0 : i32
    return %arg1, %c0_i32, %c0_i32_0 : i32, i32, i32
  }
  func.func @transform_23(%arg0: i32, %arg1: i32) -> (i32, i32, i32) {
    %c0_i32 = arith.constant 0 : i32
    %c0_i32_0 = arith.constant 0 : i32
    %c0_i32_1 = arith.constant 0 : i32
    return %arg1, %c0_i32, %c0_i32_0 : i32, i32, i32
  }
  func.func @transform_24(%arg0: i32, %arg1: i32) -> (i32, i32, i32) {
    %c0_i32 = arith.constant 0 : i32
    %c0_i32_0 = arith.constant 0 : i32
    %c0_i32_1 = arith.constant 0 : i32
    return %arg1, %c0_i32, %c0_i32_0 : i32, i32, i32
  }
  func.func @transform_25(%arg0: i32, %arg1: i32) -> (i32, i32, i32) {
    %c0_i32 = arith.constant 0 : i32
    %c0_i32_0 = arith.constant 0 : i32
    %c0_i32_1 = arith.constant 0 : i32
    return %arg1, %c0_i32, %c0_i32_0 : i32, i32, i32
  }
  func.func @transform_26(%arg0: i32, %arg1: i32) -> (i32, i32, i32) {
    %c0_i32 = arith.constant 0 : i32
    %c0_i32_0 = arith.constant 0 : i32
    %c0_i32_1 = arith.constant 0 : i32
    return %arg1, %c0_i32, %c0_i32_0 : i32, i32, i32
  }
  func.func @transform_27(%arg0: i32, %arg1: i32) -> (i32, i32, i32) {
    %c0_i32 = arith.constant 0 : i32
    %c0_i32_0 = arith.constant 0 : i32
    %c0_i32_1 = arith.constant 0 : i32
    return %arg1, %c0_i32, %c0_i32_0 : i32, i32, i32
  }
  func.func @transform_28(%arg0: i32, %arg1: i32) -> (i32, i32, i32) {
    %c0_i32 = arith.constant 0 : i32
    %c0_i32_0 = arith.constant 0 : i32
    %c0_i32_1 = arith.constant 0 : i32
    return %arg1, %c0_i32, %c0_i32_0 : i32, i32, i32
  }
  func.func @transform_29(%arg0: i32, %arg1: i32) -> (i32, i32, i32) {
    %c0_i32 = arith.constant 0 : i32
    %c0_i32_0 = arith.constant 0 : i32
    %c0_i32_1 = arith.constant 0 : i32
    return %arg1, %c0_i32, %c0_i32_0 : i32, i32, i32
  }
  func.func @transform_30(%arg0: i32, %arg1: i32) -> (i32, i32, i32) {
    %c0_i32 = arith.constant 0 : i32
    %c0_i32_0 = arith.constant 0 : i32
    %c0_i32_1 = arith.constant 0 : i32
    return %arg0, %c0_i32, %c0_i32_0 : i32, i32, i32
  }
  func.func @transform_31(%arg0: i32, %arg1: i32) -> (i32, i32, i32, i32) {
    %c0_i32 = arith.constant 0 : i32
    %c0_i32_0 = arith.constant 0 : i32
    %c0_i32_1 = arith.constant 0 : i32
    %c0_i32_2 = arith.constant 0 : i32
    return %arg0, %c0_i32, %c0_i32_0, %c0_i32_1 : i32, i32, i32, i32
  }
}

</mosaic_0001>

<bundles_post_ra>
// kernel: tpu_custom_call.1
= control target key start
LH: loop header
LB: loop body
LE: loop exit
PB: predicated region body
PF: predicated region fallthrough
CT: control target
= control target key end

     0   :  { %s6802_s6 = smov 1   ;;  %s6803_s10 = smov 2   ;;  %s8297_s0 = inlined_call_operand.smem [shape: u32[32], index: -1, kind: input, shape index: {}] }
   0x1   :  { %s6874_s5 = sld [smem:[%s8297_s0]]   ;;  %s6804_s14 = smov 3  }
   0x2   :  { %s6879_s9 = sld [smem:[%s8297_s0 + %s6802_s6]]   ;;  %s6805_s18 = smov 4  }
   0x3   :  { %s6884_s13 = sld [smem:[%s8297_s0 + %s6803_s10]]   ;;  %s6806_s22 = smov 5  }
   0x4   :  { %s6889_s17 = sld [smem:[%s8297_s0 + %s6804_s14]]   ;;  %s6807_s26 = smov 6  }
   0x5   :  { %s6894_s21 = sld [smem:[%s8297_s0 + %s6805_s18]]   ;;  %s6808_s30 = smov 7  }
   0x6   :  { %s6899_s25 = sld [smem:[%s8297_s0 + %s6806_s22]]   ;;  %s6809_s4 = smov 8  }
   0x7   :  { %8362 = sst [smem:[#allocation44_spill]] %s6874_s5  ;;  %s6810_s10 = smov 9  }
   0x8   :  { %8363 = sst [smem:[#allocation45_spill]] %s6879_s9  ;;  %s6811_s15 = smov 10  }
   0x9   :  { %8364 = sst [smem:[#allocation46_spill]] %s6884_s13  ;;  %s6812_s20 = smov 11  }
   0xa   :  { %8365 = sst [smem:[#allocation47_spill]] %s6889_s17  ;;  %s6814_s1 = smov 13  }
   0xb   :  { %8366 = sst [smem:[#allocation48_spill]] %s6894_s21  ;;  %s6815_s7 = smov 14  }
   0xc   :  { %8367 = sst [smem:[#allocation49_spill]] %s6899_s25  ;;  %s6817_s22 = smov 16  }
   0xd   :  { %s6904_s29 = sld [smem:[%s8297_s0 + %s6807_s26]]   ;;  %s6813_s26 = smov 12  }
   0xe   :  { %s6909_s3 = sld [smem:[%s8297_s0 + %s6808_s30]]   ;;  %s6818_s28 = smov 17  }
   0xf   :  { %s6914_s8 = sld [smem:[%s8297_s0 + %s6809_s4]]  }
  0x10   :  { %s6919_s14 = sld [smem:[%s8297_s0 + %s6810_s10]]  }
  0x11   :  { %s6924_s19 = sld [smem:[%s8297_s0 + %s6811_s15]]   ;;  %s6816_s15 = smov 15  }
  0x12   :  { %s6929_s24 = sld [smem:[%s8297_s0 + %s6812_s20]]  }
  0x13   :  { %8368 = sst [smem:[#allocation50_spill]] %s6904_s29 }
  0x14   :  { %8369 = sst [smem:[#allocation51_spill]] %s6909_s3 }
  0x15   :  { %8370 = sst [smem:[#allocation52_spill]] %s6914_s8 }
  0x16   :  { %8371 = sst [smem:[#allocation53_spill]] %s6919_s14 }
  0x17   :  { %8372 = sst [smem:[#allocation54_spill]] %s6924_s19 }
  0x18   :  { %8373 = sst [smem:[#allocation55_spill]] %s6929_s24 }
  0x19   :  { %s6934_s30 = sld [smem:[%s8297_s0 + %s6813_s26]]  }
  0x1a   :  { %s6939_s6 = sld [smem:[%s8297_s0 + %s6814_s1]]  }
  0x1b   :  { %s6944_s12 = sld [smem:[%s8297_s0 + %s6815_s7]]   ;;  %s6819_s7 = smov 18  }
  0x1c   :  { %s6949_s20 = sld [smem:[%s8297_s0 + %s6816_s15]]   ;;  %s6820_s15 = smov 19  }
  0x1d   :  { %s6954_s27 = sld [smem:[%s8297_s0 + %s6817_s22]]   ;;  %s6821_s22 = smov 20  }
  0x1e   :  { %s6959_s4 = sld [smem:[%s8297_s0 + %s6818_s28]]   ;;  %s6822_s28 = smov 21  }
  0x1f   :  { %8374 = sst [smem:[#allocation56_spill]] %s6934_s30 }
  0x20   :  { %8375 = sst [smem:[#allocation57_spill]] %s6939_s6 }
  0x21   :  { %8376 = sst [smem:[#allocation58_spill]] %s6944_s12 }
  0x22   :  { %8377 = sst [smem:[#allocation59_spill]] %s6949_s20 }
  0x23   :  { %8378 = sst [smem:[#allocation60_spill]] %s6954_s27 }
  0x24   :  { %8379 = sst [smem:[#allocation61_spill]] %s6959_s4 }
  0x25   :  { %s6964_s29 = sld [smem:[%s8297_s0 + %s6819_s7]]   ;;  %s6823_s7 = smov 22  }
  0x26   :  { %s6969_s21 = sld [smem:[%s8297_s0 + %s6820_s15]]   ;;  %s6824_s15 = smov 23  }
  0x27   :  { %s6974_s9 = sld [smem:[%s8297_s0 + %s6821_s22]]   ;;  %s6825_s22 = smov 24  }
  0x28   :  { %s6979_s4 = sld [smem:[%s8297_s0 + %s6822_s28]]   ;;  %s6826_s28 = smov 25  }
  0x29   :  { %s6994_s20 = sld [smem:[%s8297_s0 + %s6825_s22]]   ;;  %s6829_s22 = smov 28  }
  0x2b   :  { %8380 = sst [smem:[#allocation62_spill]] %s6964_s29 }
  0x2c   :  { %8381 = sst [smem:[#allocation63_spill]] %s6969_s21 }
  0x2d   :  { %8382 = sst [smem:[#allocation64_spill]] %s6974_s9 }
  0x2e   :  { %8383 = sst [smem:[#allocation65_spill]] %s6979_s4 }
  0x2f   :  { %s6984_s29 = sld [smem:[%s8297_s0 + %s6823_s7]]   ;;  %s6827_s7 = smov 26  }
  0x30   :  { %s6989_s21 = sld [smem:[%s8297_s0 + %s6824_s15]]   ;;  %s6828_s15 = smov 27  }
  0x31   :  { %8386 = sst [smem:[#allocation68_spill]] %s6994_s20 }
  0x32   :  { %s6999_s4 = sld [smem:[%s8297_s0 + %s6826_s28]]   ;;  %s6830_s28 = smov 29  }
  0x33   :  { %s7014_s20 = sld [smem:[%s8297_s0 + %s6829_s22]]  }
  0x35   :  { %8384 = sst [smem:[#allocation66_spill]] %s6984_s29 }
  0x36   :  { %8385 = sst [smem:[#allocation67_spill]] %s6989_s21 }
  0x37   :  { %s7004_s29 = sld [smem:[%s8297_s0 + %s6827_s7]]   ;;  %s6831_s7 = smov 30  }
  0x38   :  { %8387 = sst [smem:[#allocation69_spill]] %s6999_s4 }
  0x39   :  { %s7009_s21 = sld [smem:[%s8297_s0 + %s6828_s15]]   ;;  %s6832_s15 = smov 31  }
  0x3a   :  { %8390 = sst [smem:[#allocation72_spill]] %s7014_s20 }
  0x3b   :  { %s7019_s4 = sld [smem:[%s8297_s0 + %s6830_s28]]  }
  0x3d   :  { %8388 = sst [smem:[#allocation70_spill]] %s7004_s29 }
  0x3e   :  { %s7024_s29 = sld [smem:[%s8297_s0 + %s6831_s7]]  }
  0x3f   :  { %8389 = sst [smem:[#allocation71_spill]] %s7009_s21 }
  0x40   :  { %s7029_s21 = sld [smem:[%s8297_s0 + %s6832_s15]]  }
  0x41   :  { %8391 = sst [smem:[#allocation73_spill]] %s7019_s4 }
  0x44   :  { %8392 = sst [smem:[#allocation74_spill]] %s7024_s29 }
  0x46   :  { %8393 = sst [smem:[#allocation75_spill]] %s7029_s21 }
  0x47   :  { %69 = vsyncpa [#allocation4], 0 }
  0x48   :  { %71 = vsyncpa [#allocation4 + $0x1], 0 }
  0x49   :  { %72 = vsyncpa [#allocation7], 0 }
  0x4a   :  { %74 = vsyncpa [#allocation7 + $0x1], 0 }
  0x4b   :  { %75 = vsyncpa [#allocation10], 0 }
  0x4c   :  { %77 = vsyncpa [#allocation10 + $0x1], 0 }
  0x4d   :  { %78 = vsyncpa [#allocation13], 0 }
  0x4e   :  { %80 = vsyncpa [#allocation13 + $0x1], 0 }
  0x4f   :  { %81 = vsyncpa [#allocation16], 0 }
  0x50   :  { %83 = vsyncpa [#allocation16 + $0x1], 0 }
  0x51   :  { %84 = vsyncpa [#allocation19], 0 }
  0x52   :  { %86 = vsyncpa [#allocation19 + $0x1], 0 }
  0x53   :  { %87 = vsyncpa [#allocation22], 0 }
  0x54   :  { %89 = vsyncpa [#allocation22 + $0x1], 0 }
  0x55   :  { %90 = vsyncpa [#allocation25], 0 }
  0x56   :  { %92 = vsyncpa [#allocation25 + $0x1], 0 }
  0x57   :  { %93 = vsyncpa [#allocation28], 0 }
  0x58   :  { %95 = vsyncpa [#allocation28 + $0x1], 0 }
  0x59   :  { %96 = vsyncpa [#allocation5], 0 }
  0x5a   :  { %98 = vsyncpa [#allocation5 + $0x1], 0 }
  0x5b   :  { %99 = vsyncpa [#allocation32], 0 }
  0x5c   :  { %101 = vsyncpa [#allocation32 + $0x1], 0  ;;  %s7031_s0 = smov 0   ;;  %s7033_s22 = smov 0  }
  0x5d   :  { %s7035_s23 = smov 0   ;;  %s7037_s26 = smov 0  }
  0x5e   :  { %s7039_s28 = smov 0   ;;  %s7041_s1 = smov 0  }
  0x5f   :  { %s7043_s2 = smov 0   ;;  %s7045_s7 = smov 0  }
  0x60   :  { %s7047_s10 = smov 0   ;;  %s7049_s11 = smov 0  }
  0x61   :  { %s7051_s15 = smov 0  }
  0x62 LB: > { %s8394_s30 = sld [smem:[#allocation56_spill]]  ;;  %s7087_s16 = sadd.s32 4294967295, %s6800_s15   ;;  %s6792_s10 = sphi %s7047_s10, %s8528_s10   ;;  %s6788_s7 = sphi %s7045_s7, %s8527_s7   ;;  %s6784_s2 = sphi %s7043_s2, %s8526_s2   ;;  %s6780_s1 = sphi %s7041_s1, %s8525_s1   ;;  %s6776_s28 = sphi %s7039_s28, %s8524_s28   ;;  %s6772_s26 = sphi %s7037_s26, %s8523_s26   ;;  %s6768_s23 = sphi %s7035_s23, %s8522_s23   ;;  %s6764_s22 = sphi %s7033_s22, %s8521_s22   ;;  %s6760_s0 = sphi %s7031_s0, %s8520_s0   ;;  %s6800_s15 = sphi %s7051_s15, %s107_s15   ;;  %s6796_s11 = sphi %s7049_s11, %s8529_s11  }
  0x63   : > { %s8395_s5 = sld [smem:[#allocation44_spill]]  ;;  %s5533_s18 = sadd.s32 4294967294, %s6800_s15  }
  0x64   : > { %s8396_s27 = sld [smem:[#allocation60_spill]]  ;;  %s116_s21 = sadd.s32 1, %s6792_s10 }
  0x65   : > { %s8397_s19 = sld [smem:[#allocation54_spill]]  ;;  %s119_s29 = sadd.s32 1, %s6796_s11 }
  0x66   : > { %s8398_s12 = sld [smem:[#allocation58_spill]]  ;;  %p117_p0 = scmp.ge.s32.totalorder %s116_s21, 2 }
  0x67   : > { %s8399_s9 = sld [smem:[#allocation64_spill]]  ;;  %s126_s4 = sadd.s32 1, %s6780_s1 }
  0x68   : > { %s8400_s8 = sld [smem:[#allocation52_spill]]  ;;  %p133_p1 = scmp.ne.s32.totalorder %s6780_s1, %s6776_s28 }
  0x69   : > { %s8401_s25 = sld [smem:[#allocation49_spill]]  ;;  %p134_p2 = scmp.eq.s32.totalorder %s6800_s15, 0 }
  0x6a   : > { %s8402_s13 = sld [smem:[#allocation46_spill]]  ;;  %s8531_s21 = smov (%p117_p0, %s116_s21), 0 }
  0x6b   : > { %8403 = sst [smem:[#allocation76_spill]] %s6764_s22  ;;  %s8533_s29 = smov (!%p117_p0, %s119_s29), %s6796_s11 }
  0x6c   : > { %8404 = sst [smem:[#allocation77_spill]] %s6768_s23  ;;  %p7104_p3 = por %p134_p2, %p133_p1 }
  0x6d   : > { %8405 = sst [smem:[#allocation78_spill]] %s6772_s26  ;;  %p8312_p4 = scmp.ne.s32.totalorder %s6776_s28, %s6772_s26 }
  0x6e   : > { %8406 = sst [smem:[#allocation79_spill]] %s6776_s28  ;;  %p121_p5 = scmp.ge.s32.totalorder %s8533_s29, 2 }
  0x6f   : > { %8407 = sst [smem:[#allocation80_spill]] %s6780_s1  ;;  %p140_p6 = scmp.eq.s32.totalorder %s7087_s16, 0 }
  0x70   : > { %8408 = sst [smem:[#allocation81_spill]] %s6784_s2  ;;  %s253_s2 = ssub.s32 %s6792_s10, %s8531_s21 }
  0x71   : > { %8409 = sst [smem:[#allocation82_spill]] %s6788_s7  ;;  %s256_s7 = sadd.s32 1, %s6768_s23 }
  0x72   : > { %8410 = sst [smem:[#allocation83_spill]] %s6792_s10  ;;  %s8535_s29 = smov (%p121_p5, %s8533_s29), 0 }
  0x73   : > { %8411 = sst [smem:[#allocation84_spill]] %s6796_s11  ;;  %p7121_p7 = por %p140_p6, %p8312_p4 }
  0x74   : > { %8412 = sst [smem:[#allocation85_spill]] %s6800_s15  ;;  %p254_p8 = scmp.eq.s32.totalorder %s253_s2, 0 }
  0x75   : > { %8413 = sst [smem:[#allocation86_spill]] %s8531_s21  ;;  %s123_s24 = ssub.s32 %s6796_s11, %s8535_s29 }
  0x76   : > { %8415 = sst [smem:[#allocation87_spill]] %s8535_s29  ;;  %p263_p9 = scmp.ne.s32.totalorder %s6768_s23, %s6764_s22 }
  0x77   : > { %s8416_s6 = scalar_select %p7121_p7, 1, 0 }
  0x78   : > { %p124_p10 = scmp.eq.s32.totalorder %s123_s24, 0  ;;  %p269_p11 = scmp.ne.s32.totalorder %s6764_s22, %s6760_s0 }
  0x79   : > { %s7132_s14 = scalar_select %p254_p8, %s6768_s23, %s256_s7  }
  0x7a   : > { %s7135_s21 = scalar_select %p124_p10, %s6780_s1, %s126_s4  }
  0x7b   : > { %8417 = sst [smem:[#allocation88_spill]] %s7132_s14  ;;  %p7139_p12 = por %p263_p9, %p134_p2 }
  0x7c   : > { %8418 = sst [smem:[#allocation89_spill]] %s7135_s21  ;;  %p7145_p13 = por %p269_p11, %p140_p6 }
  0x7d   : > { %p917_p0 = scmp.eq.s32.totalorder %s7087_s16, 3  ;;  %p923_p5 = scmp.eq.s32.totalorder %s5533_s18, 3 }
  0x7e   : > { %s8420_s17 = scalar_select %p7145_p13, 1, 0 }
  0x7f   : > { %p7153_p4 = por %p917_p0, %p133_p1  ;;  %p8424_p8 = scmp.ne.s32.totalorder %s6776_s28, %s6772_s26 }
  0x80   : > { %8421 = sst [smem:[#allocation90_spill]] %s8420_s17  ;;  %p5535_p2 = scmp.ge.s32.totalorder %s6800_s15, 4 }
  0x81   : > { %s8422_s24 = scalar_select %p7153_p4, 1, 0 }
  0x82   : > { %p7160_p10 = por %p923_p5, %p8424_p8  ;;  %965 = sbr.rel (%p5535_p2) target bundleno = 524 (0x20c), region = 16 }
  0x83   : > { %8423 = sst [smem:[#allocation91_spill]] %s8422_s24  ;;  %s7166_s0 = sand.u32 (!%p5535_p2), 1, %s6780_s1  }
  0x84   : > { %s8425_s4 = scalar_select %p7160_p10, 1, 0 }
  0x85   : > { %s7169_s2 = sand.u32 (!%p5535_p2), 1, %s6800_s15   ;;  %s8318_s7 = sshll.u32 (!%p5535_p2), %s6796_s11, 4 }
  0x86   : > { %8426 = sst [smem:[#allocation92_spill]] %s8425_s4  ;;  %s998_s18 = scalar_lea.vmem (!%p5535_p2), [#allocation6], %s7166_s0 }
  0x87   : > { %s1005_s29 = sshll.u32 %s998_s18, 4  ;;  %s1003_s21 = scalar_lea.hbm %s8402_s13, %s8318_s7  ;;  %s1006_s29 = int_to_ptr.vmem [resolvable:$true] %s1005_s29 }
  0x88   : > { %s6176_s4 = scalar_lea.hbm %s1003_s21, 16  ;;  %s6180_s26 = scalar_lea.hbm %s8402_s13, 32 }
  0x89   : > { %p6177_p1 = scmp.ne.s32.totalorder %s1003_s21, %s6176_s4  ;;  %p6181_p11 = scmp.lt.s32.totalorder %s1003_s21, %s8402_s13 }
  0x8a   : > { %p6182_p0 = scmp.lt.s32.totalorder %s6180_s26, %s6176_s4 }
  0x8b   : > { %p6178_p6 = pnand %p6177_p1, %p7104_p3 }
  0x8c   : > { %p6183_p5 = por %p6182_p0, %p6181_p11 }
  0x8d   : > { %p6179_p9 = pneg %p6178_p6 }
  0x8f   : > { %p6184_p8 = pnand %p6183_p5, %p6179_p9 }
  0x91   : > { %6187 = shalt.err (!%p6184_p8)
}
  0x92   : > { %s6188_s1 = scalar_lea.vmem %s1006_s29, 16  ;;  %s6833_s18 = smov [#allocation6]  }
  0x93   : > { %p6189_p2 = scmp.ne.s32.totalorder %s1006_s29, %s6188_s1  ;;  %s6192_s7 = sshll.u32 %s6833_s18, 4  ;;  %s6193_s7 = int_to_ptr.vmem [resolvable:$false] %s6192_s7 }
  0x94   : > { %s6194_s14 = scalar_lea.vmem %s6193_s7, 32  ;;  %p6195_p13 = scmp.lt.s32.totalorder %s1006_s29, %s6193_s7 }
  0x95   : > { %p6190_p10 = pnand %p6189_p2, %p7104_p3  ;;  %p6196_p7 = scmp.lt.s32.totalorder %s6194_s14, %s6188_s1 }
  0x97   : > { %p6191_p4 = pneg %p6190_p10  ;;  %p6197_p1 = por %p6196_p7, %p6195_p13 }
  0x99   : > { %p6198_p6 = pnand %p6197_p1, %p6191_p4 }
  0x9b   : > { %6201 = shalt.err (!%p6198_p6)
}
  0x9c   : > { %s8427_s26 = scalar_lea.sflag [#allocation7], %s7169_s2  ;;  %s7188_s4 = sand.u32 1, %s6768_s23  }
  0x9d   : > { %5938 = dma.hbm_to_vmem [thread:$0]  (%p7104_p3), %s1003_s21, 16, %s1006_s29, %s8427_s26  }
  0x9e   : > { %s7191_s7 = sshll.u32 %s6792_s10, 4  ;;  %s1040_s1 = scalar_lea.vmem [#allocation9], %s7188_s4 }
  0x9f   : > { %s7195_s14 = scalar_lea.hbm %s8401_s25, %s7191_s7  ;;  %s1047_s18 = sshll.u32 %s1040_s1, 4  ;;  %s1048_s18 = int_to_ptr.vmem [resolvable:$true] %s1047_s18 }
  0xa0   : > { %s6202_s24 = scalar_lea.hbm %s7195_s14, 16  ;;  %s6206_s21 = scalar_lea.hbm %s8401_s25, 32 }
  0xa1   : > { %p6203_p4 = scmp.ne.s32.totalorder %s7195_s14, %s6202_s24  ;;  %p6207_p10 = scmp.lt.s32.totalorder %s7195_s14, %s8401_s25 }
  0xa2   : > { %p6208_p9 = scmp.lt.s32.totalorder %s6206_s21, %s6202_s24 }
  0xa3   : > { %p6204_p7 = pnand %p6203_p4, %p7139_p12 }
  0xa4   : > { %p6209_p11 = por %p6208_p9, %p6207_p10 }
  0xa5   : > { %p6205_p13 = pneg %p6204_p7 }
  0xa7   : > { %p6210_p0 = pnand %p6209_p11, %p6205_p13 }
  0xa9   : > { %6213 = shalt.err (!%p6210_p0)
}
  0xaa   : > { %s6214_s29 = scalar_lea.vmem %s1048_s18, 16  ;;  %s6834_s26 = smov [#allocation9]  }
  0xab   : > { %p6215_p5 = scmp.ne.s32.totalorder %s1048_s18, %s6214_s29  ;;  %s6218_s1 = sshll.u32 %s6834_s26, 4  ;;  %s6219_s1 = int_to_ptr.vmem [resolvable:$false] %s6218_s1 }
  0xac   : > { %s6220_s13 = scalar_lea.vmem %s6219_s1, 32  ;;  %p6221_p1 = scmp.lt.s32.totalorder %s1048_s18, %s6219_s1 }
  0xad   : > { %p6216_p8 = pnand %p6215_p5, %p7139_p12  ;;  %p6222_p6 = scmp.lt.s32.totalorder %s6220_s13, %s6214_s29 }
  0xaf   : > { %p6217_p2 = pneg %p6216_p8  ;;  %p6223_p4 = por %p6222_p6, %p6221_p1 }
  0xb1   : > { %p6224_p7 = pnand %p6223_p4, %p6217_p2 }
  0xb3   : > { %6227 = shalt.err (!%p6224_p7)
}
  0xb4   : > { %s8428_s24 = scalar_lea.sflag [#allocation10], %s7169_s2  ;;  %s7214_s21 = sshll.u32 %s7188_s4, 4 }
  0xb5   : > { %5940 = dma.hbm_to_vmem [thread:$0]  (%p7139_p12), %s7195_s14, 16, %s1048_s18, %s8428_s24  }
  0xb6   : > { %s7217_s13 = sshll.u32 %s6792_s10, 8  ;;  %s1083_s26 = scalar_lea.vmem [#allocation12], %s7214_s21 }
  0xb7   : > { %s7221_s29 = scalar_lea.hbm %s8400_s8, %s7217_s13  ;;  %s1090_s1 = sshll.u32 %s1083_s26, 4  ;;  %s7224_s1 = int_to_ptr.vmem [resolvable:$true] %s1090_s1 }
  0xb8   : > { %s6228_s23 = scalar_lea.hbm %s7221_s29, 256  ;;  %s6232_s14 = scalar_lea.hbm %s8400_s8, 512 }
  0xb9   : > { %p6229_p13 = scmp.ne.s32.totalorder %s7221_s29, %s6228_s23  ;;  %p6233_p11 = scmp.lt.s32.totalorder %s7221_s29, %s8400_s8 }
  0xba   : > { %p6234_p0 = scmp.lt.s32.totalorder %s6232_s14, %s6228_s23 }
  0xbb   : > { %p6230_p10 = pnand %p6229_p13, %p7139_p12 }
  0xbc   : > { %p6235_p5 = por %p6234_p0, %p6233_p11 }
  0xbd   : > { %p6231_p9 = pneg %p6230_p10 }
  0xbf   : > { %p6236_p8 = pnand %p6235_p5, %p6231_p9 }
  0xc1   : > { %6239 = shalt.err (!%p6236_p8)
}
  0xc2   : > { %s6240_s18 = scalar_lea.vmem %s7224_s1, 256  ;;  %s6835_s24 = smov [#allocation12]  }
  0xc3   : > { %p6241_p2 = scmp.ne.s32.totalorder %s7224_s1, %s6240_s18  ;;  %s6244_s26 = sshll.u32 %s6835_s24, 4  ;;  %s6245_s26 = int_to_ptr.vmem [resolvable:$false] %s6244_s26 }
  0xc4   : > { %s6246_s25 = scalar_lea.vmem %s6245_s26, 512  ;;  %p6247_p4 = scmp.lt.s32.totalorder %s7224_s1, %s6245_s26 }
  0xc5   : > { %p6242_p1 = pnand %p6241_p2, %p7139_p12  ;;  %p6248_p7 = scmp.lt.s32.totalorder %s6246_s25, %s6240_s18 }
  0xc7   : > { %p6243_p6 = pneg %p6242_p1  ;;  %p6249_p13 = por %p6248_p7, %p6247_p4 }
  0xc9   : > { %p6250_p10 = pnand %p6249_p13, %p6243_p6 }
  0xcb   : > { %6253 = shalt.err (!%p6250_p10)
}
  0xcc   : > { %s8340_s23 = smov 64   ;;  %s8339_s14 = smov 4  }
  0xcd   : > { %s8429_s25 = scalar_lea.sflag [#allocation13], %s7169_s2  ;;  %s7250_s18 = scalar_lea.hbm %s8397_s19, %s7217_s13 }
  0xce   : > { %5942 = dma.hbm_to_vmem [thread:$0]  (%p7139_p12), %s7221_s29, 256, %s7224_s1, %s8429_s25, %s8340_s23, %s8340_s23, %s8339_s14  }
  0xcf   : > { %s1121_s24 = scalar_lea.vmem [#allocation15], %s7214_s21  ;;  %s8330_s8 = scalar_lea.sflag [#allocation16], %s7169_s2 }
  0xd0   : > { %s1128_s26 = sshll.u32 %s1121_s24, 4  ;;  %s6254_s10 = scalar_lea.hbm %s7250_s18, 256  ;;  %s7253_s26 = int_to_ptr.vmem [resolvable:$true] %s1128_s26 }
  0xd1   : > { %p6255_p9 = scmp.ne.s32.totalorder %s7250_s18, %s6254_s10  ;;  %s6258_s17 = scalar_lea.hbm %s8397_s19, 512 }
  0xd2   : > { %p6259_p5 = scmp.lt.s32.totalorder %s7250_s18, %s8397_s19  ;;  %p6260_p8 = scmp.lt.s32.totalorder %s6258_s17, %s6254_s10 }
  0xd3   : > { %p6256_p11 = pnand %p6255_p9, %p7139_p12 }
  0xd4   : > { %p6261_p2 = por %p6260_p8, %p6259_p5 }
  0xd5   : > { %p6257_p0 = pneg %p6256_p11 }
  0xd7   : > { %p6262_p1 = pnand %p6261_p2, %p6257_p0 }
  0xd9   : > { %6265 = shalt.err (!%p6262_p1)
}
  0xda   : > { %s6266_s29 = scalar_lea.vmem %s7253_s26, 256  ;;  %s6838_s1 = smov [#allocation15]  }
  0xdb   : > { %p6267_p6 = scmp.ne.s32.totalorder %s7253_s26, %s6266_s29  ;;  %s6270_s25 = sshll.u32 %s6838_s1, 4  ;;  %s6271_s25 = int_to_ptr.vmem [resolvable:$false] %s6270_s25 }
  0xdc   : > { %s6272_s24 = scalar_lea.vmem %s6271_s25, 512  ;;  %p6273_p13 = scmp.lt.s32.totalorder %s7253_s26, %s6271_s25 }
  0xdd   : > { %p6268_p4 = pnand %p6267_p6, %p7139_p12  ;;  %p6274_p10 = scmp.lt.s32.totalorder %s6272_s24, %s6266_s29 }
  0xdf   : > { %p6269_p7 = pneg %p6268_p4  ;;  %p6275_p9 = por %p6274_p10, %p6273_p13 }
  0xe1   : > { %p6276_p11 = pnand %p6275_p9, %p6269_p7 }
  0xe3   : > { %6279 = shalt.err (!%p6276_p11)
}
  0xe4   : > { %5944 = dma.hbm_to_vmem [thread:$0]  (%p7139_p12), %s7250_s18, 256, %s7253_s26, %s8330_s8, %s8340_s23, %s8340_s23, %s8339_s14  }
  0xe5   : > { %s7279_s17 = scalar_lea.hbm %s8394_s30, %s7191_s7  ;;  %s1158_s10 = scalar_lea.vmem [#allocation18], %s7188_s4 }
  0xe6   : > { %s1165_s29 = sshll.u32 %s1158_s10, 4  ;;  %s8331_s1 = scalar_lea.sflag [#allocation19], %s7169_s2  ;;  %s1166_s29 = int_to_ptr.vmem [resolvable:$true] %s1165_s29 }
  0xe7   : > { %s6280_s25 = scalar_lea.hbm %s7279_s17, 16  ;;  %s6284_s24 = scalar_lea.hbm %s8394_s30, 32 }
  0xe8   : > { %p6281_p0 = scmp.ne.s32.totalorder %s7279_s17, %s6280_s25  ;;  %p6285_p2 = scmp.lt.s32.totalorder %s7279_s17, %s8394_s30 }
  0xe9   : > { %p6286_p1 = scmp.lt.s32.totalorder %s6284_s24, %s6280_s25 }
  0xea   : > { %p6282_p5 = pnand %p6281_p0, %p7139_p12 }
  0xeb   : > { %p6287_p6 = por %p6286_p1, %p6285_p2 }
  0xec   : > { %p6283_p8 = pneg %p6282_p5 }
  0xee   : > { %p6288_p4 = pnand %p6287_p6, %p6283_p8 }
  0xf0   : > { %6291 = shalt.err (!%p6288_p4)
}
  0xf1   : > { %s6292_s18 = scalar_lea.vmem %s1166_s29, 16  ;;  %s6839_s26 = smov [#allocation18]  }
  0xf2   : > { %p6293_p7 = scmp.ne.s32.totalorder %s1166_s29, %s6292_s18  ;;  %s6296_s10 = sshll.u32 %s6839_s26, 4  ;;  %s6297_s10 = int_to_ptr.vmem [resolvable:$false] %s6296_s10 }
  0xf3   : > { %s6298_s8 = scalar_lea.vmem %s6297_s10, 32  ;;  %p6299_p9 = scmp.lt.s32.totalorder %s1166_s29, %s6297_s10 }
  0xf4   : > { %p6294_p13 = pnand %p6293_p7, %p7139_p12  ;;  %p6300_p11 = scmp.lt.s32.totalorder %s6298_s8, %s6292_s18 }
  0xf6   : > { %p6295_p10 = pneg %p6294_p13  ;;  %p6301_p0 = por %p6300_p11, %p6299_p9 }
  0xf8   : > { %p6302_p5 = pnand %p6301_p0, %p6295_p10 }
  0xfa   : > { %6305 = shalt.err (!%p6302_p5)
}
  0xfb   : > { %5946 = dma.hbm_to_vmem [thread:$0]  (%p7139_p12), %s7279_s17, 16, %s1166_s29, %s8331_s1  }
  0xfc   : > { %s7299_s25 = scalar_lea.hbm %s8398_s12, %s7217_s13  ;;  %s1193_s8 = scalar_lea.vmem [#allocation21], %s7214_s21 }
  0xfd   : > { %s1200_s24 = sshll.u32 %s1193_s8, 4  ;;  %s8332_s18 = scalar_lea.sflag [#allocation22], %s7169_s2  ;;  %s7302_s24 = int_to_ptr.vmem [resolvable:$true] %s1200_s24 }
  0xfe   : > { %s6306_s26 = scalar_lea.hbm %s7299_s25, 256  ;;  %s6310_s10 = scalar_lea.hbm %s8398_s12, 512 }
  0xff   : > { %p6307_p8 = scmp.ne.s32.totalorder %s7299_s25, %s6306_s26  ;;  %p6311_p6 = scmp.lt.s32.totalorder %s7299_s25, %s8398_s12 }
 0x100   : > { %p6312_p4 = scmp.lt.s32.totalorder %s6310_s10, %s6306_s26 }
 0x101   : > { %p6308_p2 = pnand %p6307_p8, %p7139_p12 }
 0x102   : > { %p6313_p7 = por %p6312_p4, %p6311_p6 }
 0x103   : > { %p6309_p1 = pneg %p6308_p2 }
 0x105   : > { %p6314_p13 = pnand %p6313_p7, %p6309_p1 }
 0x107   : > { %6317 = shalt.err (!%p6314_p13)
}
 0x108   : > { %s6318_s17 = scalar_lea.vmem %s7302_s24, 256  ;;  %s6840_s29 = smov [#allocation21]  }
 0x109   : > { %p6319_p10 = scmp.ne.s32.totalorder %s7302_s24, %s6318_s17  ;;  %s6322_s8 = sshll.u32 %s6840_s29, 4  ;;  %s6323_s8 = int_to_ptr.vmem [resolvable:$false] %s6322_s8 }
 0x10a   : > { %s6324_s1 = scalar_lea.vmem %s6323_s8, 512  ;;  %p6325_p0 = scmp.lt.s32.totalorder %s7302_s24, %s6323_s8 }
 0x10b   : > { %p6320_p9 = pnand %p6319_p10, %p7139_p12  ;;  %p6326_p5 = scmp.lt.s32.totalorder %s6324_s1, %s6318_s17 }
 0x10d   : > { %p6321_p11 = pneg %p6320_p9  ;;  %p6327_p8 = por %p6326_p5, %p6325_p0 }
 0x10f   : > { %p6328_p2 = pnand %p6327_p8, %p6321_p11 }
 0x111   : > { %6331 = shalt.err (!%p6328_p2)
}
 0x112   : > { %5948 = dma.hbm_to_vmem [thread:$0]  (%p7139_p12), %s7299_s25, 256, %s7302_s24, %s8332_s18, %s8340_s23, %s8340_s23, %s8339_s14  }
 0x113   : > { %s7328_s1 = scalar_lea.hbm %s8396_s27, %s7217_s13  ;;  %s1231_s26 = scalar_lea.vmem [#allocation24], %s7214_s21 }
 0x114   : > { %s1238_s10 = sshll.u32 %s1231_s26, 4  ;;  %s8333_s17 = scalar_lea.sflag [#allocation25], %s7169_s2  ;;  %s7331_s10 = int_to_ptr.vmem [resolvable:$true] %s1238_s10 }
 0x115   : > { %s6332_s29 = scalar_lea.hbm %s7328_s1, 256  ;;  %s6336_s8 = scalar_lea.hbm %s8396_s27, 512 }
 0x116   : > { %p6333_p1 = scmp.ne.s32.totalorder %s7328_s1, %s6332_s29  ;;  %p6337_p7 = scmp.lt.s32.totalorder %s7328_s1, %s8396_s27 }
 0x117   : > { %p6338_p13 = scmp.lt.s32.totalorder %s6336_s8, %s6332_s29 }
 0x118   : > { %p6334_p6 = pnand %p6333_p1, %p7139_p12 }
 0x119   : > { %p6339_p10 = por %p6338_p13, %p6337_p7 }
 0x11a   : > { %p6335_p4 = pneg %p6334_p6 }
 0x11c   : > { %p6340_p9 = pnand %p6339_p10, %p6335_p4 }
 0x11e   : > { %6343 = shalt.err (!%p6340_p9)
}
 0x11f   : > { %s6344_s25 = scalar_lea.vmem %s7331_s10, 256  ;;  %s6841_s24 = smov [#allocation24]  }
 0x120   : > { %p6345_p11 = scmp.ne.s32.totalorder %s7331_s10, %s6344_s25  ;;  %s6348_s26 = sshll.u32 %s6841_s24, 4  ;;  %s6349_s26 = int_to_ptr.vmem [resolvable:$false] %s6348_s26 }
 0x121   : > { %s6350_s18 = scalar_lea.vmem %s6349_s26, 512  ;;  %p6351_p8 = scmp.lt.s32.totalorder %s7331_s10, %s6349_s26 }
 0x122   : > { %p6346_p0 = pnand %p6345_p11, %p7139_p12  ;;  %p6352_p2 = scmp.lt.s32.totalorder %s6350_s18, %s6344_s25 }
 0x124   : > { %p6347_p5 = pneg %p6346_p0  ;;  %p6353_p1 = por %p6352_p2, %p6351_p8 }
 0x126   : > { %p6354_p6 = pnand %p6353_p1, %p6347_p5 }
 0x128   : > { %6357 = shalt.err (!%p6354_p6)
}
 0x129   : > { %5950 = dma.hbm_to_vmem [thread:$0]  (%p7139_p12), %s7328_s1, 256, %s7331_s10, %s8333_s17, %s8340_s23, %s8340_s23, %s8339_s14  }
 0x12a   : > { %s7357_s18 = scalar_lea.hbm %s8399_s9, %s7217_s13  ;;  %s1283_s29 = scalar_lea.vmem [#allocation27], %s7214_s21 }
 0x12b   : > { %s1290_s8 = sshll.u32 %s1283_s29, 4  ;;  %s8338_s25 = scalar_lea.sflag [#allocation28], %s7169_s2  ;;  %s7360_s8 = int_to_ptr.vmem [resolvable:$true] %s1290_s8 }
 0x12c   : > { %s6358_s24 = scalar_lea.hbm %s7357_s18, 256  ;;  %s6362_s26 = scalar_lea.hbm %s8399_s9, 512 }
 0x12d   : > { %p6359_p4 = scmp.ne.s32.totalorder %s7357_s18, %s6358_s24  ;;  %p6363_p10 = scmp.lt.s32.totalorder %s7357_s18, %s8399_s9 }
 0x12e   : > { %p6364_p9 = scmp.lt.s32.totalorder %s6362_s26, %s6358_s24 }
 0x12f   : > { %p6360_p7 = pnand %p6359_p4, %p7139_p12 }
 0x130   : > { %p6365_p11 = por %p6364_p9, %p6363_p10 }
 0x131   : > { %p6361_p13 = pneg %p6360_p7 }
 0x133   : > { %p6366_p0 = pnand %p6365_p11, %p6361_p13 }
 0x135   : > { %6369 = shalt.err (!%p6366_p0)
}
 0x136   : > { %s6370_s1 = scalar_lea.vmem %s7360_s8, 256  ;;  %s6842_s10 = smov [#allocation27]  }
 0x137   : > { %p6371_p5 = scmp.ne.s32.totalorder %s7360_s8, %s6370_s1  ;;  %s6374_s29 = sshll.u32 %s6842_s10, 4  ;;  %s6375_s29 = int_to_ptr.vmem [resolvable:$false] %s6374_s29 }
 0x138   : > { %s6376_s17 = scalar_lea.vmem %s6375_s29, 512  ;;  %p6377_p1 = scmp.lt.s32.totalorder %s7360_s8, %s6375_s29 }
 0x139   : > { %p6372_p8 = pnand %p6371_p5, %p7139_p12  ;;  %p6378_p6 = scmp.lt.s32.totalorder %s6376_s17, %s6370_s1 }
 0x13b   : > { %p6373_p2 = pneg %p6372_p8  ;;  %p6379_p4 = por %p6378_p6, %p6377_p1 }
 0x13d   : > { %p6380_p7 = pnand %p6379_p4, %p6373_p2 }
 0x13f   : > { %6383 = shalt.err (!%p6380_p7)
}
 0x140   : > { %s8430_s24 = sld [smem:[#allocation47_spill]]  ;;  %s5536_s17 = sshll.u32 %s7166_s0, 3 }
 0x141   : > { %5952 = dma.hbm_to_vmem [thread:$0]  (%p7139_p12), %s7357_s18, 256, %s7360_s8, %s8338_s25, %s8340_s23, %s8340_s23, %s8339_s14  }
 0x142   : > { %s5537_s26 = sshll.u32 %s6796_s11, 7  ;;  %s973_s10 = scalar_lea.vmem [#allocation3], %s5536_s17 }
 0x143   : > { %s7387_s1 = scalar_lea.hbm %s8395_s5, %s5537_s26  ;;  %s980_s29 = sshll.u32 %s973_s10, 4  ;;  %s981_s29 = int_to_ptr.vmem [resolvable:$true] %s980_s29 }
 0x144   : > { %s8431_s9 = sshll.u32 %s6796_s11, 4  ;;  %s970_s19 = scalar_lea.sflag [#allocation4], %s7166_s0 }
 0x145   : > { %s6384_s27 = scalar_lea.hbm %s7387_s1, 128  ;;  %s6388_s18 = scalar_lea.hbm %s8395_s5, 256 }
 0x146   : > { %s7392_s12 = scalar_lea.hbm %s8430_s24, %s8431_s9  ;;  %p6385_p13 = scmp.ne.s32.totalorder %s7387_s1, %s6384_s27 }
 0x147   : > { %p6389_p11 = scmp.lt.s32.totalorder %s7387_s1, %s8395_s5  ;;  %p6390_p0 = scmp.lt.s32.totalorder %s6388_s18, %s6384_s27 }
 0x148   : > { %p6386_p10 = pnand %p6385_p13, %p7104_p3 }
 0x149   : > { %p6391_p5 = por %p6390_p0, %p6389_p11 }
 0x14a   : > { %p6387_p9 = pneg %p6386_p10 }
 0x14c   : > { %p6392_p8 = pnand %p6391_p5, %p6387_p9 }
 0x14e   : > { %6395 = shalt.err (!%p6392_p8)
}
 0x14f   : > { %s6396_s8 = scalar_lea.vmem %s981_s29, 128  ;;  %s6843_s9 = smov [#allocation3]  }
 0x150   : > { %p6397_p2 = scmp.ne.s32.totalorder %s981_s29, %s6396_s8  ;;  %s6400_s17 = sshll.u32 %s6843_s9, 4  ;;  %s6401_s17 = int_to_ptr.vmem [resolvable:$false] %s6400_s17 }
 0x151   : > { %s6402_s26 = scalar_lea.vmem %s6401_s17, 256  ;;  %p6403_p4 = scmp.lt.s32.totalorder %s981_s29, %s6401_s17 }
 0x152   : > { %p6398_p1 = pnand %p6397_p2, %p7104_p3  ;;  %p6404_p7 = scmp.lt.s32.totalorder %s6402_s26, %s6396_s8 }
 0x154   : > { %p6399_p6 = pneg %p6398_p1  ;;  %p6405_p13 = por %p6404_p7, %p6403_p4 }
 0x156   : > { %p6406_p10 = pnand %p6405_p13, %p6399_p6 }
 0x158   : > { %6409 = shalt.err (!%p6406_p10)
}
 0x159   : > { %s8432_s27 = sld [smem:[#allocation51_spill]]  ;;  %s1015_s10 = scalar_lea.vmem [#allocation8], %s7166_s0 }
 0x15a   : > { %5937 = dma.hbm_to_vmem [thread:$0]  (%p7104_p3), %s7387_s1, 128, %s981_s29, %s970_s19  }
 0x15b   : > { %s1022_s18 = sshll.u32 %s1015_s10, 4  ;;  %s6410_s9 = scalar_lea.hbm %s7392_s12, 16  ;;  %s1023_s18 = int_to_ptr.vmem [resolvable:$true] %s1022_s18 }
 0x15c   : > { %p6411_p9 = scmp.ne.s32.totalorder %s7392_s12, %s6410_s9  ;;  %s6414_s17 = scalar_lea.hbm %s8430_s24, 32 }
 0x15d   : > { %p6415_p5 = scmp.lt.s32.totalorder %s7392_s12, %s8430_s24  ;;  %p6416_p8 = scmp.lt.s32.totalorder %s6414_s17, %s6410_s9 }
 0x15e   : > { %p6412_p11 = pnand %p6411_p9, %p7104_p3 }
 0x15f   : > { %s7410_s8 = scalar_lea.hbm %s8432_s27, %s7191_s7  ;;  %p6417_p2 = por %p6416_p8, %p6415_p5 }
 0x160   : > { %p6413_p0 = pneg %p6412_p11 }
 0x162   : > { %p6418_p1 = pnand %p6417_p2, %p6413_p0 }
 0x164   : > { %6421 = shalt.err (!%p6418_p1)
}
 0x165   : > { %s6422_s26 = scalar_lea.vmem %s1023_s18, 16  ;;  %s6844_s19 = smov [#allocation8]  }
 0x166   : > { %p6423_p6 = scmp.ne.s32.totalorder %s1023_s18, %s6422_s26  ;;  %s6426_s0 = sshll.u32 %s6844_s19, 4  ;;  %s6427_s0 = int_to_ptr.vmem [resolvable:$false] %s6426_s0 }
 0x167   : > { %s6428_s1 = scalar_lea.vmem %s6427_s0, 32  ;;  %p6429_p13 = scmp.lt.s32.totalorder %s1023_s18, %s6427_s0 }
 0x168   : > { %p6424_p4 = pnand %p6423_p6, %p7104_p3  ;;  %p6430_p10 = scmp.lt.s32.totalorder %s6428_s1, %s6422_s26 }
 0x16a   : > { %p6425_p7 = pneg %p6424_p4  ;;  %p6431_p9 = por %p6430_p10, %p6429_p13 }
 0x16c   : > { %p6432_p11 = pnand %p6431_p9, %p6425_p7 }
 0x16e   : > { %6435 = shalt.err (!%p6432_p11)
}
 0x16f   : > { %s8433_s29 = scalar_lea.sflag [#allocation7], %s7169_s2  ;;  %s8434_s10 = sld [smem:[#allocation53_spill]] }
 0x170   : > { %5939 = dma.hbm_to_vmem [thread:$0]  (%p7104_p3), %s7392_s12, 16, %s1023_s18, %s8433_s29  }
 0x171   : > { %s1065_s17 = scalar_lea.vmem [#allocation11], %s7188_s4  ;;  %s6436_s0 = scalar_lea.hbm %s7410_s8, 16 }
 0x172   : > { %s1072_s26 = sshll.u32 %s1065_s17, 4  ;;  %p6437_p0 = scmp.ne.s32.totalorder %s7410_s8, %s6436_s0  ;;  %s1073_s26 = int_to_ptr.vmem [resolvable:$true] %s1072_s26 }
 0x173   : > { %s6440_s20 = scalar_lea.hbm %s8432_s27, 32  ;;  %p6441_p2 = scmp.lt.s32.totalorder %s7410_s8, %s8432_s27 }
 0x174   : > { %p6438_p5 = pnand %p6437_p0, %p7139_p12  ;;  %p6442_p1 = scmp.lt.s32.totalorder %s6440_s20, %s6436_s0 }
 0x175   : > { %s8435_s9 = smov %s8434_s10  ;;  %s7429_s19 = scalar_lea.hbm %s8434_s10, %s7191_s7 }
 0x176   : > { %p6439_p8 = pneg %p6438_p5  ;;  %p6443_p6 = por %p6442_p1, %p6441_p2 }
 0x178   : > { %p6444_p4 = pnand %p6443_p6, %p6439_p8 }
 0x17a   : > { %6447 = shalt.err (!%p6444_p4)
}
 0x17b   : > { %s6448_s1 = scalar_lea.vmem %s1073_s26, 16  ;;  %s6845_s12 = smov [#allocation11]  }
 0x17c   : > { %p6449_p7 = scmp.ne.s32.totalorder %s1073_s26, %s6448_s1  ;;  %s6452_s18 = sshll.u32 %s6845_s12, 4  ;;  %s6453_s18 = int_to_ptr.vmem [resolvable:$false] %s6452_s18 }
 0x17d   : > { %s6454_s29 = scalar_lea.vmem %s6453_s18, 32  ;;  %p6455_p10 = scmp.lt.s32.totalorder %s1073_s26, %s6453_s18 }
 0x17e   : > { %p6450_p3 = pnand %p6449_p7, %p7139_p12  ;;  %p6456_p9 = scmp.lt.s32.totalorder %s6454_s29, %s6448_s1 }
 0x180   : > { %p6451_p13 = pneg %p6450_p3  ;;  %p6457_p11 = por %p6456_p9, %p6455_p10 }
 0x182   : > { %p6458_p0 = pnand %p6457_p11, %p6451_p13 }
 0x184   : > { %6461 = shalt.err (!%p6458_p0)
}
 0x185   : > { %s8436_s10 = scalar_lea.sflag [#allocation10], %s7169_s2  ;;  %s8437_s17 = sld [smem:[#allocation55_spill]] }
 0x186   : > { %5941 = dma.hbm_to_vmem [thread:$0]  (%p7139_p12), %s7410_s8, 16, %s1073_s26, %s8436_s10  }
 0x187   : > { %s1103_s0 = scalar_lea.vmem [#allocation14], %s7188_s4  ;;  %s6462_s12 = scalar_lea.hbm %s7429_s19, 16 }
 0x188   : > { %s1110_s20 = sshll.u32 %s1103_s0, 4  ;;  %p6463_p5 = scmp.ne.s32.totalorder %s7429_s19, %s6462_s12  ;;  %s1111_s20 = int_to_ptr.vmem [resolvable:$true] %s1110_s20 }
 0x189   : > { %s6466_s18 = scalar_lea.hbm %s8435_s9, 32  ;;  %p6467_p1 = scmp.lt.s32.totalorder %s7429_s19, %s8435_s9 }
 0x18a   : > { %p6464_p8 = pnand %p6463_p5, %p7139_p12  ;;  %p6468_p6 = scmp.lt.s32.totalorder %s6466_s18, %s6462_s12 }
 0x18b   : > { %s7448_s1 = scalar_lea.hbm %s8437_s17, %s7191_s7 }
 0x18c   : > { %p6465_p2 = pneg %p6464_p8  ;;  %p6469_p4 = por %p6468_p6, %p6467_p1 }
 0x18e   : > { %p6470_p7 = pnand %p6469_p4, %p6465_p2 }
 0x190   : > { %6473 = shalt.err (!%p6470_p7)
}
 0x191   : > { %s6474_s29 = scalar_lea.vmem %s1111_s20, 16  ;;  %s6846_s8 = smov [#allocation14]  }
 0x192   : > { %p6475_p3 = scmp.ne.s32.totalorder %s1111_s20, %s6474_s29  ;;  %s6478_s26 = sshll.u32 %s6846_s8, 4  ;;  %s6479_s26 = int_to_ptr.vmem [resolvable:$false] %s6478_s26 }
 0x193   : > { %s6480_s10 = scalar_lea.vmem %s6479_s26, 32  ;;  %p6481_p9 = scmp.lt.s32.totalorder %s1111_s20, %s6479_s26 }
 0x194   : > { %p6476_p13 = pnand %p6475_p3, %p7139_p12  ;;  %p6482_p11 = scmp.lt.s32.totalorder %s6480_s10, %s6474_s29 }
 0x196   : > { %p6477_p10 = pneg %p6476_p13  ;;  %p6483_p0 = por %p6482_p11, %p6481_p9 }
 0x198   : > { %p6484_p5 = pnand %p6483_p0, %p6477_p10 }
 0x19a   : > { %6487 = shalt.err (!%p6484_p5)
}
 0x19b   : > { %s8438_s0 = scalar_lea.sflag [#allocation13], %s7169_s2  ;;  %s8439_s12 = sld [smem:[#allocation57_spill]] }
 0x19c   : > { %5943 = dma.hbm_to_vmem [thread:$0]  (%p7139_p12), %s7429_s19, 16, %s1111_s20, %s8438_s0  }
 0x19d   : > { %s1141_s18 = scalar_lea.vmem [#allocation17], %s7188_s4  ;;  %s6488_s26 = scalar_lea.hbm %s7448_s1, 16 }
 0x19e   : > { %s1148_s29 = sshll.u32 %s1141_s18, 4  ;;  %p6489_p8 = scmp.ne.s32.totalorder %s7448_s1, %s6488_s26  ;;  %s1149_s29 = int_to_ptr.vmem [resolvable:$true] %s1148_s29 }
 0x19f   : > { %s6492_s10 = scalar_lea.hbm %s8437_s17, 32  ;;  %p6493_p6 = scmp.lt.s32.totalorder %s7448_s1, %s8437_s17 }
 0x1a0   : > { %p6490_p2 = pnand %p6489_p8, %p7139_p12  ;;  %p6494_p4 = scmp.lt.s32.totalorder %s6492_s10, %s6488_s26 }
 0x1a1   : > { %s7467_s8 = scalar_lea.hbm %s8439_s12, %s7191_s7 }
 0x1a2   : > { %p6491_p1 = pneg %p6490_p2  ;;  %p6495_p7 = por %p6494_p4, %p6493_p6 }
 0x1a4   : > { %p6496_p3 = pnand %p6495_p7, %p6491_p1 }
 0x1a6   : > { %6499 = shalt.err (!%p6496_p3)
}
 0x1a7   : > { %s6500_s25 = scalar_lea.vmem %s1149_s29, 16  ;;  %s6847_s19 = smov [#allocation17]  }
 0x1a8   : > { %p6501_p13 = scmp.ne.s32.totalorder %s1149_s29, %s6500_s25  ;;  %s6504_s20 = sshll.u32 %s6847_s19, 4  ;;  %s6505_s20 = int_to_ptr.vmem [resolvable:$false] %s6504_s20 }
 0x1a9   : > { %s6506_s0 = scalar_lea.vmem %s6505_s20, 32  ;;  %p6507_p11 = scmp.lt.s32.totalorder %s1149_s29, %s6505_s20 }
 0x1aa   : > { %p6502_p10 = pnand %p6501_p13, %p7139_p12  ;;  %p6508_p0 = scmp.lt.s32.totalorder %s6506_s0, %s6500_s25 }
 0x1ac   : > { %p6503_p9 = pneg %p6502_p10  ;;  %p6509_p5 = por %p6508_p0, %p6507_p11 }
 0x1ae   : > { %p6510_p8 = pnand %p6509_p5, %p6503_p9 }
 0x1b0   : > { %6513 = shalt.err (!%p6510_p8)
}
 0x1b1   : > { %s8440_s18 = scalar_lea.sflag [#allocation16], %s7169_s2  ;;  %s8441_s26 = sld [smem:[#allocation59_spill]] }
 0x1b2   : > { %5945 = dma.hbm_to_vmem [thread:$0]  (%p7139_p12), %s7448_s1, 16, %s1149_s29, %s8440_s18  }
 0x1b3   : > { %s1175_s10 = scalar_lea.vmem [#allocation20], %s7188_s4  ;;  %s6514_s20 = scalar_lea.hbm %s7467_s8, 16 }
 0x1b4   : > { %s1182_s25 = sshll.u32 %s1175_s10, 4  ;;  %p6515_p2 = scmp.ne.s32.totalorder %s7467_s8, %s6514_s20  ;;  %s1183_s25 = int_to_ptr.vmem [resolvable:$true] %s1182_s25 }
 0x1b5   : > { %s6518_s0 = scalar_lea.hbm %s8439_s12, 32  ;;  %p6519_p4 = scmp.lt.s32.totalorder %s7467_s8, %s8439_s12 }
 0x1b6   : > { %p6516_p1 = pnand %p6515_p2, %p7139_p12  ;;  %p6520_p7 = scmp.lt.s32.totalorder %s6518_s0, %s6514_s20 }
 0x1b7   : > { %s8442_s14 = smov %s8441_s26  ;;  %s7486_s19 = scalar_lea.hbm %s8441_s26, %s7191_s7 }
 0x1b8   : > { %p6517_p6 = pneg %p6516_p1  ;;  %p6521_p3 = por %p6520_p7, %p6519_p4 }
 0x1ba   : > { %p6522_p13 = pnand %p6521_p3, %p6517_p6 }
 0x1bc   : > { %6525 = shalt.err (!%p6522_p13)
}
 0x1bd   : > { %s6526_s23 = scalar_lea.vmem %s1183_s25, 16  ;;  %s6848_s1 = smov [#allocation20]  }
 0x1be   : > { %p6527_p10 = scmp.ne.s32.totalorder %s1183_s25, %s6526_s23  ;;  %s6530_s29 = sshll.u32 %s6848_s1, 4  ;;  %s6531_s29 = int_to_ptr.vmem [resolvable:$false] %s6530_s29 }
 0x1bf   : > { %s6532_s18 = scalar_lea.vmem %s6531_s29, 32  ;;  %p6533_p0 = scmp.lt.s32.totalorder %s1183_s25, %s6531_s29 }
 0x1c0   : > { %p6528_p9 = pnand %p6527_p10, %p7139_p12  ;;  %p6534_p5 = scmp.lt.s32.totalorder %s6532_s18, %s6526_s23 }
 0x1c2   : > { %p6529_p11 = pneg %p6528_p9  ;;  %p6535_p8 = por %p6534_p5, %p6533_p0 }
 0x1c4   : > { %p6536_p2 = pnand %p6535_p8, %p6529_p11 }
 0x1c6   : > { %6539 = shalt.err (!%p6536_p2)
}
 0x1c7   : > { %s8443_s26 = scalar_lea.sflag [#allocation19], %s7169_s2  ;;  %s8444_s10 = sld [smem:[#allocation61_spill]] }
 0x1c8   : > { %5947 = dma.hbm_to_vmem [thread:$0]  (%p7139_p12), %s7467_s8, 16, %s1183_s25, %s8443_s26  }
 0x1c9   : > { %s1213_s0 = scalar_lea.vmem [#allocation23], %s7188_s4  ;;  %s6540_s29 = scalar_lea.hbm %s7486_s19, 16 }
 0x1ca   : > { %s1220_s23 = sshll.u32 %s1213_s0, 4  ;;  %p6541_p1 = scmp.ne.s32.totalorder %s7486_s19, %s6540_s29  ;;  %s1221_s23 = int_to_ptr.vmem [resolvable:$true] %s1220_s23 }
 0x1cb   : > { %s6544_s18 = scalar_lea.hbm %s8442_s14, 32  ;;  %p6545_p7 = scmp.lt.s32.totalorder %s7486_s19, %s8442_s14 }
 0x1cc   : > { %p6542_p6 = pnand %p6541_p1, %p7139_p12  ;;  %p6546_p3 = scmp.lt.s32.totalorder %s6544_s18, %s6540_s29 }
 0x1cd   : > { %s8445_s20 = smov %s8444_s10  ;;  %s7505_s1 = scalar_lea.hbm %s8444_s10, %s7191_s7 }
 0x1ce   : > { %p6543_p4 = pneg %p6542_p6  ;;  %p6547_p13 = por %p6546_p3, %p6545_p7 }
 0x1d0   : > { %p6548_p10 = pnand %p6547_p13, %p6543_p4 }
 0x1d2   : > { %6551 = shalt.err (!%p6548_p10)
}
 0x1d3   : > { %s6552_s5 = scalar_lea.vmem %s1221_s23, 16  ;;  %s6849_s8 = smov [#allocation23]  }
 0x1d4   : > { %p6553_p9 = scmp.ne.s32.totalorder %s1221_s23, %s6552_s5  ;;  %s6556_s7 = sshll.u32 %s6849_s8, 4  ;;  %s6557_s7 = int_to_ptr.vmem [resolvable:$false] %s6556_s7 }
 0x1d5   : > { %s6558_s25 = scalar_lea.vmem %s6557_s7, 32  ;;  %p6559_p5 = scmp.lt.s32.totalorder %s1221_s23, %s6557_s7 }
 0x1d6   : > { %p6554_p11 = pnand %p6553_p9, %p7139_p12  ;;  %p6560_p8 = scmp.lt.s32.totalorder %s6558_s25, %s6552_s5 }
 0x1d8   : > { %p6555_p0 = pneg %p6554_p11  ;;  %p6561_p2 = por %p6560_p8, %p6559_p5 }
 0x1da   : > { %p6562_p1 = pnand %p6561_p2, %p6555_p0 }
 0x1dc   : > { %6565 = shalt.err (!%p6562_p1)
}
 0x1dd   : > { %s8446_s26 = scalar_lea.sflag [#allocation22], %s7169_s2  ;;  %s8447_s10 = sld [smem:[#allocation68_spill]] }
 0x1de   : > { %5949 = dma.hbm_to_vmem [thread:$0]  (%p7139_p12), %s7486_s19, 16, %s1221_s23, %s8446_s26  }
 0x1df   : > { %s1251_s0 = scalar_lea.vmem [#allocation26], %s7188_s4  ;;  %s6566_s8 = scalar_lea.hbm %s7505_s1, 16 }
 0x1e0   : > { %s1258_s5 = sshll.u32 %s1251_s0, 4  ;;  %p6567_p6 = scmp.ne.s32.totalorder %s7505_s1, %s6566_s8  ;;  %s1259_s5 = int_to_ptr.vmem [resolvable:$true] %s1258_s5 }
 0x1e1   : > { %s6570_s7 = scalar_lea.hbm %s8445_s20, 32  ;;  %p6571_p3 = scmp.lt.s32.totalorder %s7505_s1, %s8445_s20 }
 0x1e2   : > { %p6568_p4 = pnand %p6567_p6, %p7139_p12  ;;  %p6572_p13 = scmp.lt.s32.totalorder %s6570_s7, %s6566_s8 }
 0x1e3   : > { %s8448_s29 = smov %s8447_s10  ;;  %s7524_s18 = scalar_lea.hbm %s8447_s10, %s7217_s13 }
 0x1e4   : > { %p6569_p7 = pneg %p6568_p4  ;;  %p6573_p10 = por %p6572_p13, %p6571_p3 }
 0x1e6   : > { %p6574_p9 = pnand %p6573_p10, %p6569_p7 }
 0x1e8   : > { %6577 = shalt.err (!%p6574_p9)
}
 0x1e9   : > { %s6578_s25 = scalar_lea.vmem %s1259_s5, 16  ;;  %s6850_s4 = smov [#allocation26]  }
 0x1ea   : > { %p6579_p11 = scmp.ne.s32.totalorder %s1259_s5, %s6578_s25  ;;  %s6582_s13 = sshll.u32 %s6850_s4, 4  ;;  %s6583_s13 = int_to_ptr.vmem [resolvable:$false] %s6582_s13 }
 0x1eb   : > { %s6584_s19 = scalar_lea.vmem %s6583_s13, 32  ;;  %p6585_p8 = scmp.lt.s32.totalorder %s1259_s5, %s6583_s13 }
 0x1ec   : > { %p6580_p0 = pnand %p6579_p11, %p7139_p12  ;;  %p6586_p2 = scmp.lt.s32.totalorder %s6584_s19, %s6578_s25 }
 0x1ee   : > { %p6581_p5 = pneg %p6580_p0  ;;  %p6587_p1 = por %p6586_p2, %p6585_p8 }
 0x1f0   : > { %p6588_p6 = pnand %p6587_p1, %p6581_p5 }
 0x1f2   : > { %6591 = shalt.err (!%p6588_p6)
}
 0x1f3   : > { %s8449_s23 = scalar_lea.sflag [#allocation25], %s7169_s2  ;;  %s1322_s26 = scalar_lea.vmem [#allocation29], %s7214_s21 }
 0x1f4   : > { %5951 = dma.hbm_to_vmem [thread:$0]  (%p7139_p12), %s7505_s1, 16, %s1259_s5, %s8449_s23  }
 0x1f5   : > { %s1329_s10 = sshll.u32 %s1322_s26, 4  ;;  %s6592_s0 = scalar_lea.hbm %s7524_s18, 256  ;;  %s1330_s10 = int_to_ptr.vmem [resolvable:$true] %s1329_s10 }
 0x1f6   : > { %p6593_p4 = scmp.ne.s32.totalorder %s7524_s18, %s6592_s0  ;;  %s6596_s8 = scalar_lea.hbm %s8448_s29, 512 }
 0x1f7   : > { %p6597_p13 = scmp.lt.s32.totalorder %s7524_s18, %s8448_s29  ;;  %p6598_p10 = scmp.lt.s32.totalorder %s6596_s8, %s6592_s0 }
 0x1f8   : > { %p6594_p7 = pnand %p6593_p4, %p7139_p12 }
 0x1f9   : > { %p6599_p9 = por %p6598_p10, %p6597_p13 }
 0x1fa   : > { %p6595_p3 = pneg %p6594_p7 }
 0x1fc   : > { %p6600_p11 = pnand %p6599_p9, %p6595_p3 }
 0x1fe   : > { %6603 = shalt.err (!%p6600_p11)
}
 0x1ff   : > { %s6604_s7 = scalar_lea.vmem %s1330_s10, 256  ;;  %s6851_s21 = smov [#allocation29]  }
 0x200   : > { %p6605_p0 = scmp.ne.s32.totalorder %s1330_s10, %s6604_s7  ;;  %s6608_s1 = sshll.u32 %s6851_s21, 4  ;;  %s6609_s1 = int_to_ptr.vmem [resolvable:$false] %s6608_s1 }
 0x201   : > { %s6610_s5 = scalar_lea.vmem %s6609_s1, 512  ;;  %p6611_p2 = scmp.lt.s32.totalorder %s1330_s10, %s6609_s1 }
 0x202   : > { %p6606_p5 = pnand %p6605_p0, %p7139_p12  ;;  %p6612_p1 = scmp.lt.s32.totalorder %s6610_s5, %s6604_s7 }
 0x204   : > { %p6607_p8 = pneg %p6606_p5  ;;  %p6613_p6 = por %p6612_p1, %p6611_p2 }
 0x206   : > { %p6614_p4 = pnand %p6613_p6, %p6607_p8 }
 0x208   : > { %6617 = shalt.err (!%p6614_p4)
}
 0x209   : > { %s8450_s25 = smov 4   ;;  %s8451_s4 = smov 64  }
 0x20a   : > { %s8452_s13 = scalar_lea.sflag [#allocation28], %s7169_s2 }
 0x20b   : > { %5953 = dma.hbm_to_vmem [thread:$0]  (%p7139_p12), %s7524_s18, 256, %s1330_s10, %s8452_s13, %s8451_s4, %s8451_s4, %s8450_s25  }
 0x20c PF: > { %p5566_p7 = scmp.ge.s32.totalorder %s6800_s15, 1  ;;  %p1369_p3 = scmp.lt.s32.totalorder %s6800_s15, 5 }
 0x20e   : > { %p1370_p13 = pnand %p5566_p7, %p1369_p3 }
 0x210   : > { %1373 = sbr.rel (%p1370_p13) target bundleno = 4856 (0x12f8), region = 140 }
 0x215   : > { %s7561_s19 = sand.u32 1, %s6776_s28   ;;  %p8454_p12 = scmp.ne.s32.totalorder %s8416_s6, 0 }
 0x216   : > { %s8342_s3 = sshll.u32 %s7561_s19, 3  ;;  %s1376_s23 = scalar_lea.sflag [#allocation4], %s7561_s19 }
 0x217   : > { %s7567_s2 = scalar_lea.vmem [#allocation3], %s8342_s3 }
 0x218   : > { %8453 = sst [smem:[#allocation93_spill]] %s7567_s2 }
 0x219   : > { %6715 = dma.done.wait (%p8454_p12), %s1376_s23, 128  }
 0x21a   : > { %6717 = vsyncadd (%p8454_p12), %s1376_s23, 4294967168  ;;  %s7574_s18 = sand.u32 1, %s7087_s16  }
 0x21b   : > { %s1385_s26 = scalar_lea.sflag [#allocation7], %s7574_s18 }
 0x21c   : > { %6719 = dma.done.wait (%p8454_p12), %s1385_s26, 32  }
 0x21d   : > { %6721 = vsyncadd (%p8454_p12), %s1385_s26, 4294967264  ;;  %s8455_s0 = sld [smem:[#allocation90_spill]]  ;;  %s7583_s8 = sand.u32 1, %s6764_s22  }
 0x21e   : > { %8456 = sst [smem:[#allocation94_spill]] %s7583_s8  ;;  %s1401_s21 = scalar_lea.sflag [#allocation10], %s7574_s18 }
 0x223   : > { %p8457_p10 = scmp.ne.s32.totalorder %s8455_s0, 0 }
 0x225   : > { %6723 = dma.done.wait (%p8457_p10), %s1401_s21, 32  }
 0x226   : > { %6725 = vsyncadd (%p8457_p10), %s1401_s21, 4294967264  ;;  %s7593_s6 = sshll.u32 %s7583_s8, 4  ;;  %s1417_s5 = scalar_lea.sflag [#allocation13], %s7574_s18 }
 0x227   : > { %6727 = dma.done.wait (%p8457_p10), %s1417_s5, 272  }
 0x228   : > { %6729 = vsyncadd (%p8457_p10), %s1417_s5, 4294967024  ;;  %s1434_s13 = scalar_lea.sflag [#allocation16], %s7574_s18 }
 0x229   : > { %6731 = dma.done.wait (%p8457_p10), %s1434_s13, 272  }
 0x22a   : > { %6733 = vsyncadd (%p8457_p10), %s1434_s13, 4294967024  ;;  %s1451_s21 = scalar_lea.sflag [#allocation19], %s7574_s18 }
 0x22b   : > { %6735 = dma.done.wait (%p8457_p10), %s1451_s21, 32  }
 0x22c   : > { %6737 = vsyncadd (%p8457_p10), %s1451_s21, 4294967264  ;;  %s1467_s23 = scalar_lea.sflag [#allocation22], %s7574_s18 }
 0x22d   : > { %6739 = dma.done.wait (%p8457_p10), %s1467_s23, 272  }
 0x22e   : > { %6741 = vsyncadd (%p8457_p10), %s1467_s23, 4294967024  ;;  %s1484_s7 = scalar_lea.sflag [#allocation25], %s7574_s18 }
 0x22f   : > { %6743 = dma.done.wait (%p8457_p10), %s1484_s7, 272  }
 0x230   : > { %6745 = vsyncadd (%p8457_p10), %s1484_s7, 4294967024  ;;  %s1501_s5 = scalar_lea.sflag [#allocation28], %s7574_s18 }
 0x231   : > { %6747 = dma.done.wait (%p8457_p10), %s1501_s5, 512  }
 0x232   : > { %6749 = vsyncadd (%p8457_p10), %s1501_s5, 4294966784  ;;  %s8458_s23 = sld [smem:[#allocation82_spill]]  ;;  %s5575_s4 = sshll.u32 %s7561_s19, 5 }
 0x233   : > { %s8459_s13 = sld [smem:[#allocation81_spill]] }
 0x234   : > { %s8460_s26 = sld [smem:[#allocation45_spill]] }
 0x235   : > { %s8461_s10 = sld [smem:[#allocation48_spill]] }
 0x236   : > { %s8462_s7 = sld [smem:[#allocation50_spill]] }
 0x237   : > { %s8463_s25 = sld [smem:[#allocation62_spill]] }
 0x238   : > { %s8464_s1 = sld [smem:[#allocation63_spill]]  ;;  %p1716_p9 = scmp.lt.s32.totalorder %s8458_s23, 1 }
 0x239   : > { %s8465_s16 = sld [smem:[#allocation65_spill]]  ;;  %p1721_p11 = scmp.lt.s32.totalorder %s8459_s13, 1 }
 0x23a   : > { %s8466_s3 = sld [smem:[#allocation66_spill]]  ;;  %s8537_s23 = smov (!%p1716_p9, %s8458_s23), 1 }
 0x23b   : > { %s8467_s21 = sld [smem:[#allocation67_spill]]  ;;  %s5687_s17 = sshll.u32 %s8537_s23, 4 }
 0x23c   : > { %s8468_s18 = sld [smem:[#allocation69_spill]]  ;;  %s7645_s20 = scalar_lea.vmem %s8460_s26, %s5687_s17 }
 0x23d   : > { %s8469_s9 = sld [smem:[#allocation71_spill]] }
 0x23e   : > { %s8470_s0 = sld [smem:[#allocation70_spill]] }
 0x23f   : > { %s8471_s5 = sld [smem:[#allocation72_spill]] }
 0x240   : > { %s7642_s12 = scalar_select %p1721_p11, %s8459_s13, 1 }
 0x241   : > { %s8472_s14 = sld [smem:[#allocation73_spill]] }
 0x242   : > { %8473 = sst [smem:[#allocation95_spill]] %s7645_s20  ;;  %s5688_s24 = sshll.u32 %s7642_s12, 4 }
 0x243   : > { %s7649_s27 = scalar_lea.vmem %s8461_s10, %s5688_s24  ;;  %s1730_s29 = scalar_lea.vmem %s8462_s7, %s5688_s24 }
 0x244   : > { %8474 = sst [smem:[#allocation96_spill]] %s7649_s27  ;;  %s7653_s30 = scalar_lea.vmem %s8463_s25, %s5688_s24 }
 0x245   : > { %s1738_s11 = scalar_lea.vmem %s8464_s1, %s7642_s12  ;;  %s1741_s28 = scalar_lea.vmem %s8465_s16, %s7642_s12 }
 0x246   : > { %s1744_s22 = scalar_lea.vmem %s8466_s3, %s7642_s12  ;;  %s1747_s15 = scalar_lea.vmem %s8467_s21, %s7642_s12 }
 0x247   : > { %s1750_s8 = scalar_lea.vmem %s8468_s18, %s7642_s12  ;;  %s5691_s2 = sshll.u32 %s7642_s12, 5 }
 0x248   : > { %s1758_s13 = scalar_lea.vmem %s8469_s9, %s7642_s12  ;;  %s7669_s23 = scalar_lea.vmem %s8470_s0, %s5691_s2 }
 0x249   : > { %s1761_s17 = scalar_lea.vmem %s8471_s5, %s7642_s12  ;;  %s1764_s26 = scalar_lea.vmem %s8472_s14, %s7642_s12 }
 0x24a   : > { %s1513_s20 = scalar_lea.vmem [#allocation29], %s7593_s6  ;;  %s8475_s10 = sshll.u32 %s7561_s19, 3 }
 0x24b   : > { %s7678_s27 = scalar_lea.vmem [#allocation30], %s8475_s10  ;;  %s7680_s7 = scalar_lea.vmem [#allocation31], %s5575_s4 }
 0x24c   : > { %s8476_s24 = sld [smem:[#allocation81_spill]] }
 0x252   : > { %p5586_p0 = scmp.ne.s32.totalorder %s8476_s24, 0 }
 0x253   : > { %s8477_s1 = sld [smem:[#allocation93_spill]] (!%p5586_p0) }
 0x254   : > { %1769 = sbr.rel (%p5586_p0) target bundleno = 603 (0x25b), region = 212 }
 0x259   : > { %v1770_v0 = vld [vmem:[%s8477_s1] sm:$0xff]  ;;  %vm1771_vm0 = vcmask 261120  }
 0x25a   : > { %1772 = vst.msk [vmem:[#allocation2] sm:$0xff] %vm1771_vm0, %v1770_v0 }
 0x25b PF: > { %v6116_v1 = vld [vmem:[%s1730_s29 + $0x8] sm:$0xff]   ;;  %s8478_s9 = sld [smem:[#allocation96_spill]]  ;;  %v6852_v2 = vmov 0.0   ;;  %v6118_v4 = vld [vmem:[%s1730_s29] sm:$0xff]   ;;  %vm6853_vm1 = vmmov 0   ;;  %vm1834_vm2 = vcmask 261120   ;;  %v1778_v22 = vlaneseq }
 0x25c   : > { %5765 = vmatprep.subr.bf16.mxu1 %v6852_v2  ;;  %5757 = vmatprep.subr.bf16.mxu0 %v6852_v2  ;;  %s8479_s14 = sld [smem:[#allocation94_spill]]  ;;  %s8482_s2 = scalar_lea.vmem [#allocation12], %s7593_s6  ;;  %v6857_v23 = vmov 1983009808   ;;  %v6858_v25 = vmov 1934713408  }
 0x25d   : > { %5766 = vmatpush3.bf16.msra.mxu1 %v6116_v1  ;;  %5769 = vmatprep.mubr.msk.bf16.mxu1 %vm6853_vm1, %v6852_v2  ;;  %v6120_v11 = vld [vmem:[%s8482_s2 + $0x8] sm:$0xff]   ;;  %s6854_s16 = smov 104   ;;  %s6855_s25 = smov 120   ;;  %v2007_v24 = vunpack.c.l.s4 %v6857_v23  ;;  %v2039_v26 = vunpack.c.l.s4 %v6858_v25  ;;  %v7726_v27 = vshrl.u32 %v1778_v22, 7  ;;  %vm2444_vm3 = vcmask 64512  }
 0x25e   : > { %5767 = vmatprep.subr.bf16.mxu1 %v6852_v2  ;;  %5761 = vmatprep.mubr.msk.bf16.mxu0 %vm6853_vm1, %v6852_v2  ;;  %s8483_s4 = smov %s8482_s2  ;;  %s6856_s21 = smov 112   ;;  %vm2684_vm5 = vcmask 1043456   ;;  %vm3015_vm6 = vcmask 130048   ;;  %vm3017_vm7 = vcmask 195584   ;;  %vm4823_vm8 = vcmask 523264  }
 0x25f   : > { %v6121_v18 = vld [vmem:[%s8483_s4] sm:$0xff]   ;;  %v2008_v28 = vunpack.c.0.s8 %v2007_v24  ;;  %v2040_v31 = vunpack.c.0.s8 %v2039_v26  ;;  %s8484_s18 = scalar_lea.vmem [#allocation6], %s7561_s19  ;;  %s8486_s5 = scalar_lea.vmem [#allocation15], %s7593_s6 }
 0x260   : > { %s8487_s10 = smov %s8486_s5  ;;  %s6860_s24 = smov 16  }
 0x261   : > { %v6117_v3 = vld [vmem:[%s8478_s9 + $0x8] sm:$0xff]   ;;  %v6119_v5 = vld [vmem:[%s8478_s9] sm:$0xff]   ;;  %5768 = vmatpush3.bf16.msra.mxu1 %v6118_v4  ;;  %v7729_v32 = vsub.s32 %v2008_v28, %v7726_v27  ;;  %v7732_v39 = vsub.s32 %v2040_v31, %v7726_v27  ;;  %s6861_s1 = smov 8   ;;  %s6862_s9 = smov 24  }
 0x262   : > { %5758 = vmatpush3.bf16.msra.mxu0 %v6117_v3  ;;  %v7692_v6 = vld [vmem:[#allocation2] sm:$0xff]  ;;  %5781 = vmatprep.subr.bf16.mxu1 %v6852_v2  ;;  %s8480_s29 = scalar_lea.vmem [#allocation11], %s8479_s14  ;;  %s8481_s3 = scalar_lea.vmem [#allocation9], %s8479_s14 }
 0x263   : > { %5759 = vmatprep.subr.bf16.mxu0 %v6852_v2  ;;  %v1815_v7 = vpack.c.bf16 %v7692_v6, %v7692_v6  ;;  %v5593_v8 = vld [vmem:[%s8480_s29] ss:$0 sm:$0xff]  ;;  %s8485_s0 = scalar_lea.vmem [#allocation14], %s8479_s14  ;;  %s8488_s29 = sld [smem:[#allocation95_spill]] }
 0x264   : > { %v5589_v10 = vld [vmem:[%s8481_s3] ss:$0 sm:$0xff]  ;;  %s8489_s3 = scalar_lea.vmem [#allocation17], %s8479_s14  ;;  %s8490_s2 = scalar_lea.vmem [#allocation24], %s7593_s6 }
 0x265   : > { %5770 = vmatmul.mubr.msk.bf16.vlgmr.msra.gmra.mxu1 %vm1834_vm2, %v1815_v7  ;;  %s8491_s4 = smov %s8490_s2 }
 0x266   : > { %5760 = vmatpush3.bf16.msra.mxu0 %v6119_v5  ;;  %5783 = vmatprep.mubr.msk.bf16.mxu1 %vm6853_vm1, %v6852_v2 }
 0x267   : > { %5773 = vmatprep.subr.bf16.mxu0 %v6852_v2 }
 0x269   : > { %5762 = vmatmul.mubr.msk.bf16.vlgmr.msra.gmra.mxu0 %vm1834_vm2, %v1815_v7 }
 0x26a   : > { %5777 = vmatprep.mubr.msk.bf16.mxu0 %vm6853_vm1, %v6852_v2  ;;  %5774 = vmatpush3.bf16.msra.mxu0 %v6120_v11 }
 0x26b   : > { %5775 = vmatprep.subr.bf16.mxu0 %v6852_v2 }
 0x26e   : > { %5776 = vmatpush3.bf16.msra.mxu0 %v6121_v18 }
 0x26f   : > { %5787 = vmatprep.subr.bf16.mxu0 %v6852_v2 }
 0x271   : > { %5778 = vmatmul.mubr.msk.bf16.vlgmr.msra.gmra.mxu0 %vm1834_vm2, %v1815_v7 }
 0x272   : > { %5789 = vmatprep.mubr.msk.bf16.mxu0 %vm6853_vm1, %v6852_v2 }
 0x325   : > { %v1930_v9 = vpop.f32.mrf.mxu1 }
 0x326   : > { %v1931_v12 = vadd.f32 %v5593_v8, %v1930_v9 }
 0x327   : > { %v5771_v14 = vpop.f32.mrf.mxu1 }
 0x328   : > { %2151 = vrot.lane.b32.xlu1 %v1931_v12, %s6854_s16  ;;  %2145 = vrot.lane.b32.xlu0 %v1931_v12, %s6855_s25 }
 0x329   : > { %v1872_v13 = vpop.f32.mrf.mxu0  ;;  %v1933_v17 = vpop.f32.mrf.mxu1 }
 0x32a   : > { %v1873_v15 = vadd.f32 %v5589_v10, %v1872_v13 }
 0x32b   : > { %v5763_v16 = vpop.f32.mrf.mxu0  ;;  %v5772_v20 = vpop.f32.mrf.mxu1 }
 0x32c   : > { %2148 = vrot.lane.b32.xlu0 %v1931_v12, %s6856_s21  ;;  %1995 = vrot.lane.b32.xlu1 %v1873_v15, %s6855_s25 }
 0x32d   : > { %v1875_v19 = vpop.f32.mrf.mxu0 }
 0x32f   : > { %v5764_v21 = vpop.f32.mrf.mxu0 }
 0x330   : > { %1998 = vrot.lane.b32.xlu0 %v1873_v15, %s6856_s21  ;;  %2001 = vrot.lane.b32.xlu1 %v1873_v15, %s6854_s16 }
 0x39a   : > { %v2152_v29 = vpop.permute.xlu1 %2151  ;;  %v2146_v30 = vpop.permute.xlu0 %2145 }
 0x39b   : > { %v2170_v33 = vcombine.low %v2146_v30, %v2152_v29  ;;  %v2171_v34 = vcombine.high %v2146_v30, %v2152_v29 }
 0x39d   : > { %v2178_v40 = vrot.slane %v2170_v33, %v7729_v32  ;;  %v2185_v41 = vrot.slane %v2171_v34, %v7729_v32 }
 0x39e   : > { %v2149_v35 = vpop.permute.xlu0 %2148  ;;  %v1996_v36 = vpop.permute.xlu1 %1995 }
 0x39f   : > { %v2154_v37 = vcombine.low %v1931_v12, %v2149_v35  ;;  %v2155_v38 = vcombine.high %v1931_v12, %v2149_v35 }
 0x3a1   : > { %v2162_v42 = vrot.slane %v2154_v37, %v7729_v32  ;;  %v2169_v43 = vrot.slane %v2155_v38, %v7729_v32 }
 0x3a2   : > { %v1999_v44 = vpop.permute.xlu0 %1998  ;;  %v2002_v45 = vpop.permute.xlu1 %2001 }
 0x3a3   : > { %v2186_v46 = vcombine.low %v2162_v42, %v2178_v40  ;;  %v2187_v47 = vcombine.high %v2162_v42, %v2178_v40  ;;  %v2202_v48 = vcombine.low %v2169_v43, %v2185_v41  ;;  %v2203_v49 = vcombine.high %v2169_v43, %v2185_v41 }
 0x3a4   : > { %v2004_v50 = vcombine.low %v1873_v15, %v1999_v44  ;;  %v2005_v51 = vcombine.high %v1873_v15, %v1999_v44  ;;  %v2020_v52 = vcombine.low %v1996_v36, %v2002_v45  ;;  %v2021_v53 = vcombine.high %v1996_v36, %v2002_v45 }
 0x3a5   : > { %v2194_v54 = vrot.slane %v2186_v46, %v7732_v39  ;;  %v2201_v55 = vrot.slane %v2187_v47, %v7732_v39  ;;  %v2210_v56 = vrot.slane %v2202_v48, %v7732_v39  ;;  %v2217_v57 = vrot.slane %v2203_v49, %v7732_v39 }
 0x3a6   : > { %v2012_v58 = vrot.slane %v2004_v50, %v7729_v32  ;;  %v2019_v59 = vrot.slane %v2005_v51, %v7729_v32  ;;  %v2028_v60 = vrot.slane %v2020_v52, %v7729_v32  ;;  %v2035_v61 = vrot.slane %v2021_v53, %v7729_v32 }
 0x3a7   : > { %v2222_v62 = vcombine.low %v2194_v54, %v2201_v55  ;;  %v5603_v63 = vcombine.high %v2194_v54, %v2201_v55  ;;  %v2238_v0 = vcombine.low %v2210_v56, %v2217_v57  ;;  %v5604_v1 = vcombine.high %v2210_v56, %v2217_v57 }
 0x3a8   : > { %v2036_v3 = vcombine.low %v2012_v58, %v2028_v60  ;;  %v2037_v4 = vcombine.high %v2012_v58, %v2028_v60  ;;  %v2052_v5 = vcombine.low %v2019_v59, %v2035_v61  ;;  %v2053_v7 = vcombine.high %v2019_v59, %v2035_v61 }
 0x3a9   : > { %v2229_v8 = vrot.slane %v2222_v62, %v7729_v32  ;;  %v2237_v9 = vrot.slane %v5603_v63, %v7729_v32  ;;  %v2245_v10 = vrot.slane %v2238_v0, %v7729_v32  ;;  %v2253_v11 = vrot.slane %v5604_v1, %v7729_v32  ;;  %v1988_v0 = vpop.f32.mrf.mxu0 }
 0x3aa   : > { %v2044_v12 = vrot.slane %v2036_v3, %v7732_v39  ;;  %v2051_v13 = vrot.slane %v2037_v4, %v7732_v39  ;;  %v2060_v14 = vrot.slane %v2052_v5, %v7732_v39  ;;  %v2067_v15 = vrot.slane %v2053_v7, %v7732_v39  ;;  %v1776_v5 = vld [vmem:[%s8484_s18] sm:$0x1]  ;;  %s8492_s18 = scalar_lea.vmem [#allocation21], %s7593_s6 }
 0x3ab   : > { %v2254_v16 = vcombine.low %v2229_v8, %v2237_v9  ;;  %v2270_v17 = vcombine.low %v2245_v10, %v2253_v11  ;;  %v2255_v18 = vcombine.high %v2229_v8, %v2237_v9  ;;  %v2271_v19 = vcombine.high %v2245_v10, %v2253_v11  ;;  %v5779_v1 = vpop.f32.mrf.mxu0 }
 0x3ac   : > { %v2072_v20 = vcombine.low %v2044_v12, %v2051_v13  ;;  %v5601_v21 = vcombine.high %v2044_v12, %v2051_v13  ;;  %v2088_v23 = vcombine.low %v2060_v14, %v2067_v15  ;;  %v5602_v24 = vcombine.high %v2060_v14, %v2067_v15 }
 0x3ad   : > { %v2262_v25 = vrot.slane %v2254_v16, %v7732_v39  ;;  %v2278_v26 = vrot.slane %v2270_v17, %v7732_v39  ;;  %v2269_v35 = vrot.slane %v2255_v18, %v7732_v39  ;;  %v2285_v36 = vrot.slane %v2271_v19, %v7732_v39  ;;  %v1991_v3 = vpop.f32.mrf.mxu0 }
 0x3ae   : > { %v2079_v28 = vrot.slane %v2072_v20, %v7729_v32  ;;  %v2087_v29 = vrot.slane %v5601_v21, %v7729_v32  ;;  %v2095_v30 = vrot.slane %v2088_v23, %v7729_v32  ;;  %v2103_v31 = vrot.slane %v5602_v24, %v7729_v32 }
 0x3af   : > { %v2286_v33 = vcombine.low %v2262_v25, %v2278_v26  ;;  %v2287_v34 = vcombine.high %v2262_v25, %v2278_v26  ;;  %v2288_v46 = vcombine.low %v2269_v35, %v2285_v36  ;;  %v2289_v47 = vcombine.high %v2269_v35, %v2285_v36  ;;  %v5780_v4 = vpop.f32.mrf.mxu0 }
 0x3b0   : > { %v2104_v37 = vcombine.low %v2079_v28, %v2087_v29  ;;  %v2120_v38 = vcombine.low %v2095_v30, %v2103_v31  ;;  %v2105_v48 = vcombine.high %v2079_v28, %v2087_v29  ;;  %v2121_v49 = vcombine.high %v2095_v30, %v2103_v31 }
 0x3b1   : > { %v2290_v40 = vpack.c.bf16 %v2286_v33, %v2286_v33  ;;  %v2291_v41 = vpack.c.bf16 %v2287_v34, %v2287_v34  ;;  %v2292_v52 = vpack.c.bf16 %v2288_v46, %v2288_v46  ;;  %v2293_v53 = vpack.c.bf16 %v2289_v47, %v2289_v47 }
 0x3b2   : > { %v2112_v42 = vrot.slane %v2104_v37, %v7732_v39  ;;  %v2128_v43 = vrot.slane %v2120_v38, %v7732_v39  ;;  %v2119_v56 = vrot.slane %v2105_v48, %v7732_v39  ;;  %v2135_v57 = vrot.slane %v2121_v49, %v7732_v39 }
 0x3b3   : > { %v2449_v44 = vsel %vm2444_vm3, %v2290_v40, 0  ;;  %v2495_v45 = vsel %vm2444_vm3, %v2291_v41, 0  ;;  %v2541_v58 = vsel %vm2444_vm3, %v2292_v52, 0  ;;  %v2587_v59 = vsel %vm2444_vm3, %v2293_v53, 0 }
 0x3b4   : > { %5782 = vmatpush3.bf16.xpose.msra.mxu1 %v2449_v44  ;;  %5788 = vmatpush3.bf16.xpose.msra.mxu0 %v2495_v45  ;;  %v2136_v50 = vcombine.low %v2112_v42, %v2128_v43  ;;  %v2137_v51 = vcombine.high %v2112_v42, %v2128_v43  ;;  %v2138_v60 = vcombine.low %v2119_v56, %v2135_v57  ;;  %v5587_v7 = vadd.f32 -1.0, %v1776_v5  ;;  %v5597_v42 = vld [vmem:[%s8485_s0] ss:$0 sm:$0xff]  ;;  %s8493_s0 = smov %s8492_s18 }
 0x3b5   : > { %5793 = vmatprep.subr.bf16.mxu1 %v6852_v2  ;;  %5799 = vmatprep.subr.bf16.mxu0 %v6852_v2  ;;  %v2139_v61 = vcombine.high %v2119_v56, %v2135_v57  ;;  %v1781_v8 = vand.u32 127, %v1778_v22  ;;  %v1789_v10 = vsub.s32 0, %v7726_v27  ;;  %v6859_v12 = vmov -1e+10  }
 0x3b6   : > { %v2140_v54 = vpack.c.bf16 %v2136_v50, %v2136_v50  ;;  %v2141_v55 = vpack.c.bf16 %v2137_v51, %v2137_v51  ;;  %v2142_v62 = vpack.c.bf16 %v2138_v60, %v2138_v60  ;;  %v1785_v9 = vmul.f32 1e+10, %v5587_v7 }
 0x3b7   : > { %v2143_v63 = vpack.c.bf16 %v2139_v61, %v2139_v61  ;;  %vm1782_vm4 = vcmp.ge.s32.totalorder %v7726_v27, %v1781_v8  ;;  %v1989_v43 = vadd.f32 %v5597_v42, %v1988_v0 }
 0x3b8   : > { %v1790_v11 = vrot.slane %v1785_v9, %v1789_v10  ;;  %v1783_v13 = vsel %vm1782_vm4, 0.0, %v6859_v12 }
 0x3ba   : > { %v1792_v14 = vadd.f32 %v1790_v11, %v1783_v13 }
 0x3bb   : > { %5784 = vmatmul.mubr.msk.bf16.vlgmr.msra.gmra.mxu1 %vm2444_vm3, %v2140_v54  ;;  %5790 = vmatmul.mubr.msk.bf16.vlgmr.msra.gmra.mxu0 %vm2444_vm3, %v2141_v55 }
 0x3bc   : > { %5794 = vmatpush3.bf16.xpose.msra.mxu1 %v2541_v58  ;;  %5800 = vmatpush3.bf16.xpose.msra.mxu0 %v2587_v59 }
 0x3bd   : > { %5795 = vmatprep.mubr.msk.bf16.mxu1 %vm6853_vm1, %v6852_v2  ;;  %5801 = vmatprep.mubr.msk.bf16.mxu0 %vm6853_vm1, %v6852_v2 }
 0x3be   : > { %5805 = vmatprep.subr.bf16.mxu1 %v6852_v2  ;;  %5811 = vmatprep.subr.bf16.mxu0 %v6852_v2 }
 0x3c3   : > { %5796 = vmatmul.mubr.msk.bf16.vlgmr.msra.gmra.mxu1 %vm2444_vm3, %v2142_v62  ;;  %5802 = vmatmul.mubr.msk.bf16.vlgmr.msra.gmra.mxu0 %vm2444_vm3, %v2143_v63 }
 0x3c4   : > { %5807 = vmatprep.mubr.msk.bf16.mxu1 %vm6853_vm1, %v6852_v2  ;;  %5813 = vmatprep.mubr.msk.bf16.mxu0 %vm6853_vm1, %v6852_v2 }
 0x47b   : > { %v2485_v15 = vpop.f32.mrf.mxu1  ;;  %v2531_v16 = vpop.f32.mrf.mxu0 }
 0x47c   : > { %v2629_v17 = vadd.f32 %v2485_v15, %v1792_v14  ;;  %v2630_v18 = vadd.f32 %v2531_v16, %v1792_v14 }
 0x47d   : > { %v5785_v19 = vpop.f32.mrf.mxu1  ;;  %v5791_v20 = vpop.f32.mrf.mxu0 }
 0x47e   : > { %v2633_v21 = vsel %vm2444_vm3, %v2629_v17, -inf  ;;  %v2636_v22 = vsel %vm2444_vm3, %v2630_v18, -inf }
 0x47f   : > { %2634 = vmax.xlane.f32.xlu0 %v2633_v21  ;;  %v2488_v23 = vpop.f32.mrf.mxu1  ;;  %2637 = vmax.xlane.f32.xlu1 %v2636_v22  ;;  %v2534_v24 = vpop.f32.mrf.mxu0 }
 0x481   : > { %v5786_v25 = vpop.f32.mrf.mxu1  ;;  %v5792_v26 = vpop.f32.mrf.mxu0 }
 0x483   : > { %v2577_v28 = vpop.f32.mrf.mxu1  ;;  %v2623_v29 = vpop.f32.mrf.mxu0 }
 0x484   : > { %v2631_v30 = vadd.f32 %v2577_v28, %v1792_v14  ;;  %v2632_v34 = vadd.f32 %v2623_v29, %v1792_v14 }
 0x485   : > { %v5797_v31 = vpop.f32.mrf.mxu1  ;;  %v5803_v33 = vpop.f32.mrf.mxu0 }
 0x486   : > { %v2639_v35 = vsel %vm2444_vm3, %v2631_v30, -inf  ;;  %v2642_v41 = vsel %vm2444_vm3, %v2632_v34, -inf }
 0x487   : > { %2640 = vmax.xlane.f32.xlu0 %v2639_v35  ;;  %v2580_v36 = vpop.f32.mrf.mxu1  ;;  %v2626_v37 = vpop.f32.mrf.mxu0 }
 0x489   : > { %v5798_v38 = vpop.f32.mrf.mxu1  ;;  %v5804_v40 = vpop.f32.mrf.mxu0 }
 0x48b   : > { %2643 = vmax.xlane.f32.xlu0 %v2642_v41 }
 0x490   : > { %2295 = vrot.lane.b32.xlu1 %v1989_v43, %s6855_s25 }
 0x508   : > { %v2635_v44 = vpop.xlane.xlu0 %2634  ;;  %v2638_v45 = vpop.xlane.xlu1 %2637 }
 0x509   : > { %v2645_v46 = vsub.f32 %v2629_v17, %v2635_v44  ;;  %v2646_v47 = vsub.f32 %v2630_v18, %v2638_v45 }
 0x50b   : > { %v2649_v48 = vmul.f32 1.442695, %v2645_v46  ;;  %v2651_v49 = vmul.f32 1.442695, %v2646_v47 }
 0x50c   : > { %v2296_v0 = vpop.permute.xlu1 %2295 }
 0x50d   : > { %6138 = vpow2.f32 %v2649_v48 }
 0x50e   : > { %6140 = vpow2.f32 %v2651_v49 }
 0x510   : > { %v2641_v54 = vpop.xlane.xlu0 %2640 }
 0x511   : > { %v2647_v56 = vsub.f32 %v2631_v30, %v2641_v54 }
 0x513   : > { %v2653_v58 = vmul.f32 1.442695, %v2647_v56 }
 0x514   : > { %v2644_v55 = vpop.xlane.xlu0 %2643 }
 0x515   : > { %v2648_v57 = vsub.f32 %v2632_v34, %v2644_v55  ;;  %6142 = vpow2.f32 %v2653_v58 }
 0x517   : > { %v2655_v59 = vmul.f32 1.442695, %v2648_v57 }
 0x519   : > { %6144 = vpow2.f32 %v2655_v59 }
 0x51a   : > { %v7800_v50 = vpop.eup %6138 }
 0x51b   : > { %v7802_v51 = vpop.eup %6140  ;;  %v2657_v52 = vsel %vm2444_vm3, %v7800_v50, 0.0 }
 0x51c   : > { %2658 = vadd.xlane.f32.xlu1 %v2657_v52  ;;  %v2660_v53 = vsel %vm2444_vm3, %v7802_v51, 0.0 }
 0x51d   : > { %2661 = vadd.xlane.f32.xlu0 %v2660_v53 }
 0x522   : > { %v7810_v60 = vpop.eup %6142 }
 0x523   : > { %v2663_v62 = vsel %vm2444_vm3, %v7810_v60, 0.0 }
 0x526   : > { %v7812_v61 = vpop.eup %6144 }
 0x527   : > { %v2666_v63 = vsel %vm2444_vm3, %v7812_v61, 0.0 }
 0x52d   : > { %2301 = vrot.lane.b32.xlu1 %v1989_v43, %s6854_s16 }
 0x533   : > { %2298 = vrot.lane.b32.xlu0 %v1989_v43, %s6856_s21 }
 0x551   : > { %2664 = vadd.xlane.f32.xlu1 %v2663_v62 }
 0x552   : > { %2667 = vadd.xlane.f32.xlu0 %v2666_v63 }
 0x5a5   : > { %v2659_v1 = vpop.xlane.xlu1 %2658 }
 0x5a6   : > { %v2662_v3 = vpop.xlane.xlu0 %2661  ;;  %6146 = vrcp.f32 %v2659_v1 }
 0x5a7   : > { %6148 = vrcp.f32 %v2662_v3 }
 0x5a9   : > { %v2302_v4 = vpop.permute.xlu1 %2301 }
 0x5aa   : > { %v2320_v5 = vcombine.low %v2296_v0, %v2302_v4  ;;  %v2321_v7 = vcombine.high %v2296_v0, %v2302_v4  ;;  %v2299_v8 = vpop.permute.xlu0 %2298 }
 0x5ab   : > { %v2304_v9 = vcombine.low %v1989_v43, %v2299_v8  ;;  %v2305_v11 = vcombine.high %v1989_v43, %v2299_v8 }
 0x5ac   : > { %v2328_v12 = vrot.slane %v2320_v5, %v7729_v32  ;;  %v2335_v13 = vrot.slane %v2321_v7, %v7729_v32 }
 0x5ad   : > { %v2312_v14 = vrot.slane %v2304_v9, %v7729_v32  ;;  %v2319_v15 = vrot.slane %v2305_v11, %v7729_v32 }
 0x5af   : > { %v2336_v16 = vcombine.low %v2312_v14, %v2328_v12  ;;  %v2337_v17 = vcombine.high %v2312_v14, %v2328_v12  ;;  %v2352_v18 = vcombine.low %v2319_v15, %v2335_v13  ;;  %v2353_v19 = vcombine.high %v2319_v15, %v2335_v13 }
 0x5b1   : > { %v2344_v20 = vrot.slane %v2336_v16, %v7732_v39  ;;  %v2351_v21 = vrot.slane %v2337_v17, %v7732_v39  ;;  %v2360_v22 = vrot.slane %v2352_v18, %v7732_v39  ;;  %v2367_v23 = vrot.slane %v2353_v19, %v7732_v39 }
 0x5b3   : > { %v2372_v24 = vcombine.low %v2344_v20, %v2351_v21  ;;  %v5605_v25 = vcombine.high %v2344_v20, %v2351_v21  ;;  %v2388_v26 = vcombine.low %v2360_v22, %v2367_v23  ;;  %v5606_v28 = vcombine.high %v2360_v22, %v2367_v23  ;;  %v6147_v38 = vpop.eup %6146 }
 0x5b4   : > { %v6149_v44 = vpop.eup %6148  ;;  %v2670_v53 = vmul.f32 %v6147_v38, %v7800_v50 }
 0x5b5   : > { %v2379_v29 = vrot.slane %v2372_v24, %v7729_v32  ;;  %v2387_v30 = vrot.slane %v5605_v25, %v7729_v32  ;;  %v2395_v31 = vrot.slane %v2388_v26, %v7729_v32  ;;  %v2403_v33 = vrot.slane %v5606_v28, %v7729_v32 }
 0x5b6   : > { %v2672_v54 = vmul.f32 %v6149_v44, %v7802_v51  ;;  %v2677_v59 = vpack.c.bf16 %v2670_v53, %v2670_v53 }
 0x5b7   : > { %v2404_v34 = vcombine.low %v2379_v29, %v2387_v30  ;;  %v2420_v35 = vcombine.low %v2395_v31, %v2403_v33  ;;  %v2405_v36 = vcombine.high %v2379_v29, %v2387_v30  ;;  %v2421_v37 = vcombine.high %v2395_v31, %v2403_v33 }
 0x5b8   : > { %v2678_v62 = vpack.c.bf16 %v2672_v54, %v2672_v54 }
 0x5b9   : > { %v2412_v40 = vrot.slane %v2404_v34, %v7732_v39  ;;  %v2428_v41 = vrot.slane %v2420_v35, %v7732_v39  ;;  %v2419_v42 = vrot.slane %v2405_v36, %v7732_v39  ;;  %v2435_v43 = vrot.slane %v2421_v37, %v7732_v39  ;;  %v6122_v37 = vld [vmem:[%s8486_s5 + $0x8] sm:$0xff]   ;;  %s8494_s5 = scalar_lea.vmem [#allocation26], %s8479_s14 }
 0x5bb   : > { %v2436_v45 = vcombine.low %v2412_v40, %v2428_v41  ;;  %v2437_v46 = vcombine.high %v2412_v40, %v2428_v41  ;;  %v2438_v47 = vcombine.low %v2419_v42, %v2435_v43  ;;  %v2439_v48 = vcombine.high %v2419_v42, %v2435_v43 }
 0x5bd   : > { %v2440_v49 = vpack.c.bf16 %v2436_v45, %v2436_v45  ;;  %v2441_v52 = vpack.c.bf16 %v2437_v46, %v2437_v46  ;;  %v2442_v57 = vpack.c.bf16 %v2438_v47, %v2438_v47  ;;  %v2443_v58 = vpack.c.bf16 %v2439_v48, %v2439_v48  ;;  %v6123_v48 = vld [vmem:[%s8487_s10] sm:$0xff]   ;;  %s8495_s10 = scalar_lea.vmem [#allocation18], %s8479_s14 }
 0x5bf   : > { %v2686_v55 = vsel %vm2684_vm5, %v2440_v49, 0  ;;  %v2732_v56 = vsel %vm2684_vm5, %v2441_v52, 0  ;;  %v2778_v50 = vsel %vm2684_vm5, %v2442_v57, 0  ;;  %v2824_v51 = vsel %vm2684_vm5, %v2443_v58, 0 }
 0x5c0   : > { %5806 = vmatpush3.bf16.msra.mxu1 %v2686_v55  ;;  %5812 = vmatpush3.bf16.msra.mxu0 %v2732_v56 }
 0x5c1   : > { %5817 = vmatprep.subr.bf16.mxu1 %v6852_v2  ;;  %5823 = vmatprep.subr.bf16.mxu0 %v6852_v2 }
 0x5c3   : > { %5808 = vmatmul.mubr.msk.bf16.vlgmr.msra.gmra.mxu1 %vm2444_vm3, %v2677_v59  ;;  %5814 = vmatmul.mubr.msk.bf16.vlgmr.msra.gmra.mxu0 %vm2444_vm3, %v2678_v62 }
 0x5c4   : > { %5818 = vmatpush3.bf16.msra.mxu1 %v2778_v50  ;;  %5824 = vmatpush3.bf16.msra.mxu0 %v2824_v51 }
 0x5c5   : > { %5819 = vmatprep.mubr.msk.bf16.mxu1 %vm6853_vm1, %v6852_v2  ;;  %5825 = vmatprep.mubr.msk.bf16.mxu0 %vm6853_vm1, %v6852_v2 }
 0x5c6   : > { %5829 = vmatprep.subr.bf16.mxu1 %v6852_v2  ;;  %5837 = vmatprep.subr.bf16.mxu0 %v6852_v2 }
 0x5da   : > { %v2665_v63 = vpop.xlane.xlu1 %2664 }
 0x5db   : > { %6150 = vrcp.f32 %v2665_v63  ;;  %v2668_v0 = vpop.xlane.xlu0 %2667 }
 0x5dc   : > { %6152 = vrcp.f32 %v2668_v0 }
 0x5e8   : > { %v6151_v1 = vpop.eup %6150 }
 0x5e9   : > { %v6153_v3 = vpop.eup %6152  ;;  %v2674_v4 = vmul.f32 %v6151_v1, %v7810_v60 }
 0x5ea   : > { %v2676_v5 = vmul.f32 %v6153_v3, %v7812_v61 }
 0x5eb   : > { %v2679_v7 = vpack.c.bf16 %v2674_v4, %v2674_v4 }
 0x5ec   : > { %v2680_v8 = vpack.c.bf16 %v2676_v5, %v2676_v5 }
 0x5ed   : > { %5820 = vmatmul.mubr.msk.bf16.vlgmr.msra.gmra.mxu1 %vm2444_vm3, %v2679_v7 }
 0x5ee   : > { %5826 = vmatmul.mubr.msk.bf16.vlgmr.msra.gmra.mxu0 %vm2444_vm3, %v2680_v8  ;;  %5833 = vmatprep.mubr.msk.bf16.mxu1 %vm6853_vm1, %v6852_v2 }
 0x5ef   : > { %5841 = vmatprep.mubr.msk.bf16.mxu0 %vm6853_vm1, %v6852_v2  ;;  %5830 = vmatpush3.bf16.msra.mxu1 %v6122_v37 }
 0x5f0   : > { %5831 = vmatprep.subr.bf16.mxu1 %v6852_v2 }
 0x5f3   : > { %5832 = vmatpush3.bf16.msra.mxu1 %v6123_v48 }
 0x5f4   : > { %5845 = vmatprep.subr.bf16.mxu1 %v6852_v2 }
 0x683   : > { %v2722_v9 = vpop.f32.mrf.mxu1  ;;  %v2768_v11 = vpop.f32.mrf.mxu0 }
 0x685   : > { %v5809_v12 = vpop.f32.mrf.mxu1  ;;  %v5815_v13 = vpop.f32.mrf.mxu0 }
 0x686   : > { %v5617_v13 = vld [vmem:[%s8489_s3] ss:$0 sm:$0xff]  ;;  %s8498_s3 = scalar_lea.vmem [#allocation23], %s8479_s14 }
 0x687   : > { %v2725_v14 = vpop.f32.mrf.mxu1  ;;  %v2771_v60 = vpop.f32.mrf.mxu0 }
 0x689   : > { %v5810_v15 = vpop.f32.mrf.mxu1  ;;  %v5816_v61 = vpop.f32.mrf.mxu0 }
 0x6ad   : > { %v2814_v16 = vpop.f32.mrf.mxu1 }
 0x6ae   : > { %v2866_v17 = vcombine.low %v2722_v9, %v2814_v16  ;;  %v2867_v18 = vcombine.high %v2722_v9, %v2814_v16  ;;  %v2860_v19 = vpop.f32.mrf.mxu0 }
 0x6af   : > { %v2882_v20 = vcombine.low %v2768_v11, %v2860_v19  ;;  %v2883_v21 = vcombine.high %v2768_v11, %v2860_v19  ;;  %v5821_v22 = vpop.f32.mrf.mxu1  ;;  %v6124_v19 = vld [vmem:[%s8490_s2 + $0x8] sm:$0xff]  }
 0x6b0   : > { %v2874_v23 = vrot.slane %v2866_v17, %v7729_v32  ;;  %v2881_v24 = vrot.slane %v2867_v18, %v7729_v32  ;;  %v5827_v25 = vpop.f32.mrf.mxu0  ;;  %v1775_v22 = vld [vmem:[%s8488_s29 + $0x8] sm:$0xff] }
 0x6b1   : > { %v2890_v26 = vrot.slane %v2882_v20, %v7729_v32  ;;  %v2897_v28 = vrot.slane %v2883_v21, %v7729_v32  ;;  %v2817_v29 = vpop.f32.mrf.mxu1  ;;  %v6125_v20 = vld [vmem:[%s8491_s4] sm:$0xff]  }
 0x6b2   : > { %v2863_v30 = vpop.f32.mrf.mxu0  ;;  %v1774_v21 = vld [vmem:[%s8488_s29] sm:$0xff]  ;;  %s8496_s29 = scalar_lea.vmem [#allocation20], %s8479_s14  ;;  %s8500_s14 = scalar_lea.vmem [#allocation27], %s7593_s6 }
 0x6b3   : > { %v2898_v31 = vcombine.low %v2874_v23, %v2890_v26  ;;  %v2899_v33 = vcombine.high %v2874_v23, %v2890_v26  ;;  %v2914_v34 = vcombine.low %v2881_v24, %v2897_v28  ;;  %v2915_v35 = vcombine.high %v2881_v24, %v2897_v28  ;;  %v5822_v36 = vpop.f32.mrf.mxu1  ;;  %v6126_v29 = vld [vmem:[%s8492_s18 + $0x8] sm:$0xff]  }
 0x6b4   : > { %v5828_v38 = vpop.f32.mrf.mxu0  ;;  %v7900_v23 = vpack.c.bf16 %v1775_v22, %v1774_v21  ;;  %5838 = vmatpush3.bf16.msra.mxu0 %v6126_v29  ;;  %v6127_v30 = vld [vmem:[%s8493_s0] sm:$0xff]  }
 0x6b5   : > { %v2906_v40 = vrot.slane %v2898_v31, %v7732_v39  ;;  %v2913_v41 = vrot.slane %v2899_v33, %v7732_v39  ;;  %v2922_v42 = vrot.slane %v2914_v34, %v7732_v39  ;;  %v2929_v43 = vrot.slane %v2915_v35, %v7732_v39  ;;  %5839 = vmatprep.subr.bf16.mxu0 %v6852_v2  ;;  %v5627_v31 = vld [vmem:[%s8494_s5] ss:$0 sm:$0xff] }
 0x6b7   : > { %v2934_v44 = vcombine.low %v2906_v40, %v2913_v41  ;;  %v5615_v45 = vcombine.high %v2906_v40, %v2913_v41  ;;  %v2950_v46 = vcombine.low %v2922_v42, %v2929_v43  ;;  %v5616_v47 = vcombine.high %v2922_v42, %v2929_v43 }
 0x6b8   : > { %5840 = vmatpush3.bf16.msra.mxu0 %v6127_v30 }
 0x6b9   : > { %v2941_v49 = vrot.slane %v2934_v44, %v7729_v32  ;;  %v2949_v52 = vrot.slane %v5615_v45, %v7729_v32  ;;  %v2957_v53 = vrot.slane %v2950_v46, %v7729_v32  ;;  %v2965_v54 = vrot.slane %v5616_v47, %v7729_v32  ;;  %5853 = vmatprep.subr.bf16.mxu0 %v6852_v2  ;;  %v5621_v44 = vld [vmem:[%s8495_s10] ss:$0 sm:$0xff] }
 0x6ba   : > { %v5622_v46 = vld [vmem:[%s8496_s29] ss:$0 sm:$0xff] }
 0x6bb   : > { %v2967_v55 = vcombine.high %v2941_v49, %v2949_v52  ;;  %v2983_v56 = vcombine.high %v2957_v53, %v2965_v54  ;;  %v2966_v57 = vcombine.low %v2941_v49, %v2949_v52  ;;  %v2982_v58 = vcombine.low %v2957_v53, %v2965_v54 }
 0x6bd   : > { %v2981_v59 = vrot.slane %v2967_v55, %v7732_v39  ;;  %v2997_v62 = vrot.slane %v2983_v56, %v7732_v39  ;;  %v2974_v50 = vrot.slane %v2966_v57, %v7732_v39  ;;  %v2990_v51 = vrot.slane %v2982_v58, %v7732_v39 }
 0x6bf   : > { %v3000_v63 = vcombine.low %v2981_v59, %v2997_v62  ;;  %v2999_v0 = vcombine.high %v2974_v50, %v2990_v51  ;;  %v2998_v1 = vcombine.low %v2974_v50, %v2990_v51  ;;  %v3001_v3 = vcombine.high %v2981_v59, %v2997_v62 }
 0x6c1   : > { %3007 = vrot.lane.b32.xlu1 %v3000_v63, %s6860_s24  ;;  %3003 = vrot.lane.b32.xlu0 %v2999_v0, %s6861_s1 }
 0x6c5   : > { %3011 = vrot.lane.b32.xlu1 %v3001_v3, %s6862_s9 }
 0x733   : > { %v3008_v4 = vpop.permute.xlu1 %3007  ;;  %v3004_v5 = vpop.permute.xlu0 %3003 }
 0x734   : > { %v3014_v7 = vsel %vm2444_vm3, %v2998_v1, %v3004_v5 }
 0x735   : > { %v3016_v9 = vsel %vm3015_vm6, %v3014_v7, %v3008_v4 }
 0x737   : > { %v3012_v8 = vpop.permute.xlu1 %3011 }
 0x738   : > { %v3018_v11 = vsel %vm3017_vm7, %v3016_v9, %v3012_v8 }
 0x739   : > { %v3019_v12 = vpack.c.bf16 %v3018_v11, %v3018_v11 }
 0x73b   : > { %5834 = vmatmul.mubr.msk.bf16.vlgmr.msra.gmra.mxu1 %vm1834_vm2, %v3019_v12 }
 0x73c   : > { %5849 = vmatprep.mubr.msk.bf16.mxu1 %vm6853_vm1, %v6852_v2  ;;  %5846 = vmatpush3.bf16.msra.mxu1 %v6124_v19 }
 0x73d   : > { %5847 = vmatprep.subr.bf16.mxu1 %v6852_v2 }
 0x740   : > { %5848 = vmatpush3.bf16.msra.mxu1 %v6125_v20 }
 0x741   : > { %5861 = vmatprep.subr.bf16.mxu1 %v6852_v2 }
 0x743   : > { %5850 = vmatmul.mubr.msk.bf16.vlgmr.msra.gmra.mxu1 %vm1834_vm2, %v7900_v23 }
 0x744   : > { %5863 = vmatprep.mubr.msk.bf16.mxu1 %vm6853_vm1, %v6852_v2 }
 0x7fb   : > { %v3075_v14 = vpop.f32.mrf.mxu1 }
 0x7fc   : > { %v3076_v60 = vadd.f32 %v5617_v13, %v3075_v14 }
 0x7fd   : > { %v5835_v15 = vpop.f32.mrf.mxu1 }
 0x7fe   : > { %v3081_v61 = vadd.f32 %v3076_v60, %v7692_v6 }
 0x7ff   : > { %v3078_v16 = vpop.f32.mrf.mxu1 }
 0x800   : > { %v3084_v17 = vsel %vm1834_vm2, %v3081_v61, 0.0 }
 0x801   : > { %3085 = vadd.xlane.f32.xlu0 %v3084_v17  ;;  %v5836_v18 = vpop.f32.mrf.mxu1 }
 0x803   : > { %v3250_v33 = vpop.f32.mrf.mxu1 }
 0x804   : > { %v3251_v34 = vadd.f32 %v5627_v31, %v3250_v33 }
 0x805   : > { %v5851_v35 = vpop.f32.mrf.mxu1 }
 0x807   : > { %v3253_v36 = vpop.f32.mrf.mxu1 }
 0x808   : > { %v3254_v37 = vadd.f32 %v5627_v31, %v3253_v36 }
 0x809   : > { %v5852_v38 = vpop.f32.mrf.mxu1 }
 0x817   : > { %3468 = vrot.lane.b32.xlu0 %v3251_v34, %s6855_s25 }
 0x81b   : > { %3474 = vrot.lane.b32.xlu0 %v3251_v34, %s6856_s21 }
 0x81f   : > { %3480 = vrot.lane.b32.xlu0 %v3251_v34, %s6854_s16 }
 0x88a   : > { %v3086_v6 = vpop.xlane.xlu0 %3085 }
 0x88b   : > { %v3088_v24 = vmul.f32 0.03125, %v3086_v6 }
 0x88d   : > { %v3089_v25 = vsub.f32 %v3081_v61, %v3088_v24 }
 0x88e   : > { %v3469_v52 = vpop.permute.xlu0 %3468 }
 0x88f   : > { %v3090_v26 = vmul.f32 %v3089_v25, %v3089_v25 }
 0x891   : > { %v3091_v28 = vsel %vm1834_vm2, %v3090_v26, 0.0 }
 0x892   : > { %3092 = vadd.xlane.f32.xlu1 %v3091_v28  ;;  %v3475_v54 = vpop.permute.xlu0 %3474 }
 0x893   : > { %v3486_v58 = vcombine.low %v3251_v34, %v3475_v54  ;;  %v3487_v59 = vcombine.high %v3251_v34, %v3475_v54 }
 0x895   : > { %v3494_v3 = vrot.slane %v3486_v58, %v7729_v32  ;;  %v3501_v4 = vrot.slane %v3487_v59, %v7729_v32 }
 0x896   : > { %v3481_v56 = vpop.permute.xlu0 %3480 }
 0x897   : > { %v3502_v62 = vcombine.low %v3469_v52, %v3481_v56  ;;  %v3503_v50 = vcombine.high %v3469_v52, %v3481_v56 }
 0x899   : > { %v3510_v5 = vrot.slane %v3502_v62, %v7729_v32  ;;  %v3517_v7 = vrot.slane %v3503_v50, %v7729_v32 }
 0x89b   : > { %v3518_v13 = vcombine.low %v3494_v3, %v3510_v5  ;;  %v3519_v14 = vcombine.high %v3494_v3, %v3510_v5  ;;  %v3534_v60 = vcombine.low %v3501_v4, %v3517_v7  ;;  %v3535_v15 = vcombine.high %v3501_v4, %v3517_v7 }
 0x89d   : > { %v3526_v19 = vrot.slane %v3518_v13, %v7732_v39  ;;  %v3533_v20 = vrot.slane %v3519_v14, %v7732_v39  ;;  %v3542_v21 = vrot.slane %v3534_v60, %v7732_v39  ;;  %v3549_v22 = vrot.slane %v3535_v15, %v7732_v39 }
 0x89f   : > { %v3622_v28 = vcombine.low %v3526_v19, %v3533_v20  ;;  %v5637_v29 = vcombine.high %v3526_v19, %v3533_v20  ;;  %v3638_v30 = vcombine.low %v3542_v21, %v3549_v22  ;;  %v5638_v31 = vcombine.high %v3542_v21, %v3549_v22 }
 0x8a1   : > { %v3637_v38 = vrot.slane %v5637_v29, %v7729_v32 }
 0x8a3   : > { %3470 = vrot.lane.b32.xlu1 %v3254_v37, %s6855_s25 }
 0x8a7   : > { %3476 = vrot.lane.b32.xlu1 %v3254_v37, %s6856_s21 }
 0x8ab   : > { %3482 = vrot.lane.b32.xlu1 %v3254_v37, %s6854_s16 }
 0x91b   : > { %v3093_v40 = vpop.xlane.xlu1 %3092 }
 0x91c   : > { %v3094_v41 = vmul.f32 0.03125, %v3093_v40  ;;  %v3645_v40 = vrot.slane %v3638_v30, %v7729_v32 }
 0x91e   : > { %v3095_v42 = vadd.f32 1e-05, %v3094_v41  ;;  %v3653_v41 = vrot.slane %v5638_v31, %v7729_v32 }
 0x91f   : > { %v3471_v53 = vpop.permute.xlu1 %3470 }
 0x920   : > { %6154 = vrsqrt.f32 %v3095_v42 }
 0x923   : > { %v3477_v55 = vpop.permute.xlu1 %3476 }
 0x924   : > { %v3554_v51 = vcombine.low %v3254_v37, %v3477_v55  ;;  %v3555_v63 = vcombine.high %v3254_v37, %v3477_v55  ;;  %v3629_v37 = vrot.slane %v3622_v28, %v7729_v32  ;;  %v3671_v55 = vcombine.high %v3645_v40, %v3653_v41 }
 0x926   : > { %v3562_v8 = vrot.slane %v3554_v51, %v7729_v32  ;;  %v3569_v9 = vrot.slane %v3555_v63, %v7729_v32  ;;  %v3655_v54 = vcombine.high %v3629_v37, %v3637_v38  ;;  %v6129_v51 = vld [vmem:[%s7653_s30] sm:$0xff]  }
 0x927   : > { %v3483_v57 = vpop.permute.xlu1 %3482 }
 0x928   : > { %v3570_v0 = vcombine.low %v3471_v53, %v3483_v57  ;;  %v3571_v1 = vcombine.high %v3471_v53, %v3483_v57  ;;  %v3669_v63 = vrot.slane %v3655_v54, %v7732_v39 }
 0x92a   : > { %v3578_v11 = vrot.slane %v3570_v0, %v7729_v32  ;;  %v3585_v12 = vrot.slane %v3571_v1, %v7729_v32  ;;  %v3685_v0 = vrot.slane %v3671_v55, %v7732_v39 }
 0x92c   : > { %v3586_v61 = vcombine.low %v3562_v8, %v3578_v11  ;;  %v3587_v16 = vcombine.high %v3562_v8, %v3578_v11  ;;  %v3602_v17 = vcombine.low %v3569_v9, %v3585_v12  ;;  %v3603_v18 = vcombine.high %v3569_v9, %v3585_v12 }
 0x92d   : > { %v6155_v43 = vpop.eup %6154  ;;  %v3688_v9 = vcombine.low %v3669_v63, %v3685_v0  ;;  %v3689_v12 = vcombine.high %v3669_v63, %v3685_v0 }
 0x92e   : > { %v3097_v45 = vmul.f32 %v6155_v43, %v3089_v25  ;;  %v3594_v6 = vrot.slane %v3586_v61, %v7732_v39  ;;  %v3601_v24 = vrot.slane %v3587_v16, %v7732_v39  ;;  %v3610_v25 = vrot.slane %v3602_v17, %v7732_v39 }
 0x92f   : > { %v3617_v26 = vrot.slane %v3603_v18, %v7732_v39  ;;  %v5623_v18 = vld [vmem:[%s8498_s3] ss:$0 sm:$0xff] }
 0x930   : > { %v3104_v47 = vmul.f32 %v5621_v44, %v3097_v45  ;;  %v3690_v33 = vcombine.low %v3594_v6, %v3601_v24  ;;  %v5639_v34 = vcombine.high %v3594_v6, %v3601_v24  ;;  %v5631_v6 = vld [vmem:[%s1738_s11] ss:$0 sm:$0xff]  ;;  %s8499_s11 = scalar_lea.vmem [#allocation8], %s7561_s19 }
 0x931   : > { %v3706_v35 = vcombine.low %v3610_v25, %v3617_v26  ;;  %v5640_v36 = vcombine.high %v3610_v25, %v3617_v26 }
 0x932   : > { %v7926_v48 = vadd.f32 %v5622_v46, %v3104_v47  ;;  %v3697_v42 = vrot.slane %v3690_v33, %v7729_v32  ;;  %v3705_v43 = vrot.slane %v5639_v34, %v7729_v32  ;;  %v6128_v46 = vld [vmem:[%s7653_s30 + $0x8] sm:$0xff]   ;;  %v3654_v47 = vcombine.low %v3629_v37, %v3637_v38 }
 0x933   : > { %v3713_v44 = vrot.slane %v3706_v35, %v7729_v32  ;;  %v3721_v45 = vrot.slane %v5640_v36, %v7729_v32 }
 0x934   : > { %v3132_v49 = vpack.c.bf16 %v7926_v48, %v7926_v48  ;;  %v3722_v52 = vcombine.low %v3697_v42, %v3705_v43  ;;  %v3723_v56 = vcombine.high %v3697_v42, %v3705_v43  ;;  %v3662_v58 = vrot.slane %v3654_v47, %v7732_v39 }
 0x935   : > { %v3738_v53 = vcombine.low %v3713_v44, %v3721_v45  ;;  %v3739_v57 = vcombine.high %v3713_v44, %v3721_v45 }
 0x936   : > { %5842 = vmatmul.mubr.msk.bf16.vlgmr.msra.gmra.mxu0 %vm1834_vm2, %v3132_v49  ;;  %v3670_v49 = vcombine.low %v3645_v40, %v3653_v41  ;;  %v3730_v62 = vrot.slane %v3722_v52, %v7732_v39  ;;  %v3737_v1 = vrot.slane %v3723_v56, %v7732_v39 }
 0x937   : > { %5857 = vmatprep.mubr.msk.bf16.mxu0 %vm6853_vm1, %v6852_v2  ;;  %5854 = vmatpush3.bf16.msra.mxu0 %v6128_v46  ;;  %v3746_v50 = vrot.slane %v3738_v53, %v7732_v39  ;;  %v3753_v3 = vrot.slane %v3739_v57, %v7732_v39 }
 0x938   : > { %5855 = vmatprep.subr.bf16.mxu0 %v6852_v2  ;;  %v3678_v59 = vrot.slane %v3670_v49, %v7732_v39 }
 0x939   : > { %v3754_v5 = vcombine.low %v3730_v62, %v3746_v50  ;;  %v3755_v8 = vcombine.high %v3730_v62, %v3746_v50  ;;  %v3756_v11 = vcombine.low %v3737_v1, %v3753_v3  ;;  %v3757_v13 = vcombine.high %v3737_v1, %v3753_v3 }
 0x93a   : > { %v3686_v4 = vcombine.low %v3662_v58, %v3678_v59  ;;  %v3687_v7 = vcombine.high %v3662_v58, %v3678_v59 }
 0x93b   : > { %5856 = vmatpush3.bf16.msra.mxu0 %v6129_v51  ;;  %v7969_v15 = vpack.c.bf16 %v3756_v11, %v3688_v9  ;;  %v7971_v61 = vpack.c.bf16 %v3757_v13, %v3689_v12 }
 0x93c   : > { %5867 = vmatprep.subr.bf16.mxu0 %v6852_v2  ;;  %v3758_v14 = vpack.c.bf16 %v3754_v5, %v3686_v4  ;;  %v3759_v60 = vpack.c.bf16 %v3755_v8, %v3687_v7 }
 0x93e   : > { %5858 = vmatmul.mubr.msk.bf16.vlgmr.msra.gmra.mxu0 %vm1834_vm2, %v7900_v23  ;;  %v4062_v16 = vsel %vm2444_vm3, %v3758_v14, 0  ;;  %v4108_v17 = vsel %vm2444_vm3, %v3759_v60, 0  ;;  %v4154_v14 = vsel %vm2444_vm3, %v7969_v15, 0  ;;  %v4200_v60 = vsel %vm2444_vm3, %v7971_v61, 0  ;;  %v1777_v61 = vld [vmem:[%s8499_s11] sm:$0x1] }
 0x93f   : > { %5862 = vmatpush3.bf16.xpose.msra.mxu1 %v4062_v16  ;;  %5868 = vmatpush3.bf16.xpose.msra.mxu0 %v4108_v17 }
 0x940   : > { %5869 = vmatprep.mubr.msk.bf16.mxu0 %vm6853_vm1, %v6852_v2  ;;  %5873 = vmatprep.subr.bf16.mxu1 %v6852_v2 }
 0x941   : > { %5879 = vmatprep.subr.bf16.mxu0 %v6852_v2 }
 0x9f6   : > { %v3189_v19 = vpop.f32.mrf.mxu0 }
 0x9f7   : > { %v3190_v20 = vadd.f32 %v5623_v18, %v3189_v19  ;;  %v5588_v19 = vadd.f32 -1.0, %v1777_v61 }
 0x9f8   : > { %v5843_v23 = vpop.f32.mrf.mxu0 }
 0x9f9   : > { %3320 = vrot.lane.b32.xlu1 %v3190_v20, %s6856_s21  ;;  %3317 = vrot.lane.b32.xlu0 %v3190_v20, %s6855_s25 }
 0x9fa   : > { %v3192_v21 = vpop.f32.mrf.mxu0 }
 0x9fc   : > { %v5844_v22 = vpop.f32.mrf.mxu0 }
 0x9fd   : > { %3323 = vrot.lane.b32.xlu0 %v3190_v20, %s6854_s16 }
 0x9fe   : > { %v3309_v24 = vpop.f32.mrf.mxu0 }
 0x9ff   : > { %v7989_v25 = vadd.f32 %v5631_v6, %v3309_v24 }
 0xa00   : > { %v5859_v26 = vpop.f32.mrf.mxu0 }
 0xa01   : > { %3764 = vrot.lane.b32.xlu0 %v7989_v25, %s6855_s25 }
 0xa02   : > { %v3312_v28 = vpop.f32.mrf.mxu0 }
 0xa03   : > { %v7993_v29 = vadd.f32 %v5631_v6, %v3312_v28 }
 0xa04   : > { %v5860_v30 = vpop.f32.mrf.mxu0 }
 0xa05   : > { %3766 = vrot.lane.b32.xlu1 %v7993_v29, %s6855_s25 }
 0xa6b   : > { %v3321_v31 = vpop.permute.xlu1 %3320  ;;  %v3318_v33 = vpop.permute.xlu0 %3317 }
 0xa6c   : > { %v3326_v34 = vcombine.low %v3190_v20, %v3321_v31  ;;  %v3327_v35 = vcombine.high %v3190_v20, %v3321_v31  ;;  %v1794_v20 = vmul.f32 1e+10, %v5588_v19 }
 0xa6e   : > { %v3334_v40 = vrot.slane %v3326_v34, %v7729_v32  ;;  %v3341_v41 = vrot.slane %v3327_v35, %v7729_v32  ;;  %v4246_v23 = vrot.slane %v1794_v20, %v1789_v10 }
 0xa6f   : > { %v3324_v36 = vpop.permute.xlu0 %3323 }
 0xa70   : > { %v3342_v37 = vcombine.low %v3318_v33, %v3324_v36  ;;  %v3343_v38 = vcombine.high %v3318_v33, %v3324_v36 }
 0xa72   : > { %v3350_v42 = vrot.slane %v3342_v37, %v7729_v32  ;;  %v3357_v43 = vrot.slane %v3343_v38, %v7729_v32 }
 0xa74   : > { %v3358_v44 = vcombine.low %v3334_v40, %v3350_v42  ;;  %v3359_v45 = vcombine.high %v3334_v40, %v3350_v42  ;;  %v3374_v46 = vcombine.low %v3341_v41, %v3357_v43  ;;  %v3375_v47 = vcombine.high %v3341_v41, %v3357_v43 }
 0xa76   : > { %v3366_v49 = vrot.slane %v3358_v44, %v7732_v39  ;;  %v3373_v52 = vrot.slane %v3359_v45, %v7732_v39  ;;  %v3382_v53 = vrot.slane %v3374_v46, %v7732_v39  ;;  %v3389_v54 = vrot.slane %v3375_v47, %v7732_v39 }
 0xa78   : > { %v3394_v55 = vcombine.low %v3366_v49, %v3373_v52  ;;  %v5635_v56 = vcombine.high %v3366_v49, %v3373_v52  ;;  %v3410_v57 = vcombine.low %v3382_v53, %v3389_v54  ;;  %v5636_v58 = vcombine.high %v3382_v53, %v3389_v54  ;;  %v3765_v49 = vpop.permute.xlu0 %3764  ;;  %v3767_v52 = vpop.permute.xlu1 %3766 }
 0xa7a   : > { %v3401_v59 = vrot.slane %v3394_v55, %v7729_v32  ;;  %v3409_v62 = vrot.slane %v5635_v56, %v7729_v32  ;;  %v3417_v50 = vrot.slane %v3410_v57, %v7729_v32  ;;  %v3425_v51 = vrot.slane %v5636_v58, %v7729_v32 }
 0xa7c   : > { %v3426_v63 = vcombine.low %v3401_v59, %v3409_v62  ;;  %v3442_v0 = vcombine.low %v3417_v50, %v3425_v51  ;;  %v3427_v1 = vcombine.high %v3401_v59, %v3409_v62  ;;  %v3443_v3 = vcombine.high %v3417_v50, %v3425_v51 }
 0xa7e   : > { %v3434_v4 = vrot.slane %v3426_v63, %v7732_v39  ;;  %v3450_v5 = vrot.slane %v3442_v0, %v7732_v39  ;;  %v3441_v12 = vrot.slane %v3427_v1, %v7732_v39  ;;  %v3457_v13 = vrot.slane %v3443_v3, %v7732_v39 }
 0xa80   : > { %v3458_v7 = vcombine.low %v3434_v4, %v3450_v5  ;;  %v3459_v8 = vcombine.high %v3434_v4, %v3450_v5  ;;  %v3460_v16 = vcombine.low %v3441_v12, %v3457_v13  ;;  %v3461_v17 = vcombine.high %v3441_v12, %v3457_v13 }
 0xa82   : > { %v3462_v9 = vpack.c.bf16 %v3458_v7, %v3458_v7  ;;  %v3463_v11 = vpack.c.bf16 %v3459_v8, %v3459_v8  ;;  %v3464_v18 = vpack.c.bf16 %v3460_v16, %v3460_v16  ;;  %v3465_v15 = vpack.c.bf16 %v3461_v17, %v3461_v17 }
 0xa84   : > { %5864 = vmatmul.mubr.msk.bf16.vlgmr.msra.gmra.mxu1 %vm2444_vm3, %v3462_v9  ;;  %5870 = vmatmul.mubr.msk.bf16.vlgmr.msra.gmra.mxu0 %vm2444_vm3, %v3463_v11 }
 0xa85   : > { %5874 = vmatpush3.bf16.xpose.msra.mxu1 %v4154_v14  ;;  %5880 = vmatpush3.bf16.xpose.msra.mxu0 %v4200_v60 }
 0xa86   : > { %5875 = vmatprep.mubr.msk.bf16.mxu1 %vm6853_vm1, %v6852_v2  ;;  %5881 = vmatprep.mubr.msk.bf16.mxu0 %vm6853_vm1, %v6852_v2 }
 0xa87   : > { %5885 = vmatprep.subr.bf16.mxu1 %v6852_v2  ;;  %5891 = vmatprep.subr.bf16.mxu0 %v6852_v2 }
 0xa8c   : > { %5876 = vmatmul.mubr.msk.bf16.vlgmr.msra.gmra.mxu1 %vm2444_vm3, %v3464_v18  ;;  %5882 = vmatmul.mubr.msk.bf16.vlgmr.msra.gmra.mxu0 %vm2444_vm3, %v3465_v15 }
 0xa8d   : > { %5887 = vmatprep.mubr.msk.bf16.mxu1 %vm6853_vm1, %v6852_v2  ;;  %5893 = vmatprep.mubr.msk.bf16.mxu0 %vm6853_vm1, %v6852_v2 }
 0xb44   : > { %v4098_v21 = vpop.f32.mrf.mxu1  ;;  %v4144_v22 = vpop.f32.mrf.mxu0 }
 0xb45   : > { %v4248_v6 = vadd.f32 %v4246_v23, %v4098_v21  ;;  %v4249_v24 = vadd.f32 %v4246_v23, %v4144_v22 }
 0xb46   : > { %v5865_v26 = vpop.f32.mrf.mxu1  ;;  %v5871_v28 = vpop.f32.mrf.mxu0 }
 0xb47   : > { %v4252_v30 = vsel %vm3015_vm6, %v4248_v6, -inf  ;;  %v4255_v31 = vsel %vm3015_vm6, %v4249_v24, -inf }
 0xb48   : > { %v4101_v33 = vpop.f32.mrf.mxu1  ;;  %4253 = vmax.xlane.f32.xlu1 %v4252_v30  ;;  %4256 = vmax.xlane.f32.xlu0 %v4255_v31  ;;  %v4147_v34 = vpop.f32.mrf.mxu0 }
 0xb4a   : > { %v5866_v35 = vpop.f32.mrf.mxu1  ;;  %v5872_v36 = vpop.f32.mrf.mxu0 }
 0xb4c   : > { %v4190_v37 = vpop.f32.mrf.mxu1  ;;  %v4236_v38 = vpop.f32.mrf.mxu0 }
 0xb4d   : > { %v4250_v27 = vadd.f32 %v4246_v23, %v4190_v37  ;;  %v4251_v10 = vadd.f32 %v4246_v23, %v4236_v38 }
 0xb4e   : > { %v5877_v40 = vpop.f32.mrf.mxu1  ;;  %v5883_v41 = vpop.f32.mrf.mxu0 }
 0xb4f   : > { %v4258_v42 = vsel %vm3015_vm6, %v4250_v27, -inf  ;;  %v4261_v43 = vsel %vm3015_vm6, %v4251_v10, -inf }
 0xb50   : > { %v4193_v44 = vpop.f32.mrf.mxu1  ;;  %4259 = vmax.xlane.f32.xlu0 %v4258_v42  ;;  %4262 = vmax.xlane.f32.xlu1 %v4261_v43  ;;  %v4239_v45 = vpop.f32.mrf.mxu0 }
 0xb52   : > { %v5878_v46 = vpop.f32.mrf.mxu1  ;;  %v5884_v47 = vpop.f32.mrf.mxu0 }
 0xb61   : > { %3770 = vrot.lane.b32.xlu1 %v7989_v25, %s6856_s21 }
 0xb66   : > { %3772 = vrot.lane.b32.xlu0 %v7993_v29, %s6856_s21 }
 0xbd1   : > { %v4254_v53 = vpop.xlane.xlu1 %4253  ;;  %v4257_v54 = vpop.xlane.xlu0 %4256 }
 0xbd2   : > { %v4264_v55 = vsub.f32 %v4248_v6, %v4254_v53  ;;  %v4265_v56 = vsub.f32 %v4249_v24, %v4257_v54 }
 0xbd4   : > { %v4268_v57 = vmul.f32 1.442695, %v4264_v55  ;;  %v4270_v58 = vmul.f32 1.442695, %v4265_v56 }
 0xbd6   : > { %6156 = vpow2.f32 %v4268_v57 }
 0xbd7   : > { %6158 = vpow2.f32 %v4270_v58 }
 0xbd9   : > { %v4263_v63 = vpop.xlane.xlu1 %4262  ;;  %v4260_v0 = vpop.xlane.xlu0 %4259 }
 0xbda   : > { %v4267_v1 = vsub.f32 %v4251_v10, %v4263_v63  ;;  %v4266_v3 = vsub.f32 %v4250_v27, %v4260_v0 }
 0xbdc   : > { %v4274_v4 = vmul.f32 1.442695, %v4267_v1  ;;  %v4272_v5 = vmul.f32 1.442695, %v4266_v3 }
 0xbdd   : > { %v3773_v12 = vpop.permute.xlu0 %3772  ;;  %v3771_v13 = vpop.permute.xlu1 %3770 }
 0xbde   : > { %6160 = vpow2.f32 %v4274_v4  ;;  %v3850_v16 = vcombine.low %v7993_v29, %v3773_v12  ;;  %v3851_v17 = vcombine.high %v7993_v29, %v3773_v12  ;;  %v3782_v18 = vcombine.low %v7989_v25, %v3771_v13 }
 0xbdf   : > { %6162 = vpow2.f32 %v4272_v5  ;;  %v3783_v15 = vcombine.high %v7989_v25, %v3771_v13 }
 0xbe0   : > { %v3858_v21 = vrot.slane %v3850_v16, %v7729_v32  ;;  %v3865_v24 = vrot.slane %v3851_v17, %v7729_v32  ;;  %v3790_v28 = vrot.slane %v3782_v18, %v7729_v32 }
 0xbe3   : > { %v8043_v59 = vpop.eup %6156 }
 0xbe4   : > { %v8045_v62 = vpop.eup %6158  ;;  %v4276_v50 = vsel %vm3015_vm6, %v8043_v59, 0.0 }
 0xbe5   : > { %4277 = vadd.xlane.f32.xlu0 %v4276_v50  ;;  %v4279_v51 = vsel %vm3015_vm6, %v8045_v62, 0.0 }
 0xbe6   : > { %4280 = vadd.xlane.f32.xlu1 %v4279_v51 }
 0xbeb   : > { %v8055_v7 = vpop.eup %6160 }
 0xbec   : > { %v8057_v8 = vpop.eup %6162  ;;  %v4285_v9 = vsel %vm3015_vm6, %v8055_v7, 0.0 }
 0xbed   : > { %v4282_v11 = vsel %vm3015_vm6, %v8057_v8, 0.0 }
 0xbf7   : > { %3776 = vrot.lane.b32.xlu1 %v7989_v25, %s6854_s16  ;;  %v3797_v25 = vrot.slane %v3783_v15, %v7729_v32 }
 0xbfb   : > { %3778 = vrot.lane.b32.xlu0 %v7993_v29, %s6854_s16  ;;  %s8501_s16 = smov %s8500_s14 }
 0xc1a   : > { %4286 = vadd.xlane.f32.xlu0 %v4285_v9 }
 0xc1b   : > { %4283 = vadd.xlane.f32.xlu1 %v4282_v11 }
 0xc6e   : > { %v4278_v14 = vpop.xlane.xlu0 %4277 }
 0xc6f   : > { %v4281_v60 = vpop.xlane.xlu1 %4280  ;;  %6164 = vrcp.f32 %v4278_v14 }
 0xc70   : > { %6166 = vrcp.f32 %v4281_v60 }
 0xc72   : > { %v3779_v61 = vpop.permute.xlu0 %3778 }
 0xc73   : > { %v3866_v19 = vcombine.low %v3767_v52, %v3779_v61  ;;  %v3867_v20 = vcombine.high %v3767_v52, %v3779_v61  ;;  %v3777_v23 = vpop.permute.xlu1 %3776 }
 0xc74   : > { %v3798_v22 = vcombine.low %v3765_v49, %v3777_v23  ;;  %v3799_v6 = vcombine.high %v3765_v49, %v3777_v23 }
 0xc75   : > { %v3874_v26 = vrot.slane %v3866_v19, %v7729_v32  ;;  %v3881_v29 = vrot.slane %v3867_v20, %v7729_v32 }
 0xc76   : > { %v3806_v30 = vrot.slane %v3798_v22, %v7729_v32  ;;  %v3813_v31 = vrot.slane %v3799_v6, %v7729_v32 }
 0xc77   : > { %v3882_v33 = vcombine.low %v3858_v21, %v3874_v26  ;;  %v3883_v34 = vcombine.high %v3858_v21, %v3874_v26  ;;  %v3898_v35 = vcombine.low %v3865_v24, %v3881_v29  ;;  %v3899_v36 = vcombine.high %v3865_v24, %v3881_v29 }
 0xc78   : > { %v3814_v37 = vcombine.low %v3790_v28, %v3806_v30  ;;  %v3815_v38 = vcombine.high %v3790_v28, %v3806_v30  ;;  %v3830_v27 = vcombine.low %v3797_v25, %v3813_v31  ;;  %v3831_v10 = vcombine.high %v3797_v25, %v3813_v31 }
 0xc79   : > { %v3890_v40 = vrot.slane %v3882_v33, %v7732_v39  ;;  %v3897_v41 = vrot.slane %v3883_v34, %v7732_v39  ;;  %v3906_v42 = vrot.slane %v3898_v35, %v7732_v39  ;;  %v3913_v43 = vrot.slane %v3899_v36, %v7732_v39 }
 0xc7a   : > { %v3822_v44 = vrot.slane %v3814_v37, %v7732_v39  ;;  %v3829_v45 = vrot.slane %v3815_v38, %v7732_v39  ;;  %v3838_v46 = vrot.slane %v3830_v27, %v7732_v39  ;;  %v3845_v47 = vrot.slane %v3831_v10, %v7732_v39 }
 0xc7b   : > { %v3986_v49 = vcombine.low %v3890_v40, %v3897_v41  ;;  %v5643_v52 = vcombine.high %v3890_v40, %v3897_v41  ;;  %v4002_v53 = vcombine.low %v3906_v42, %v3913_v43  ;;  %v5644_v54 = vcombine.high %v3906_v42, %v3913_v43 }
 0xc7c   : > { %v3918_v55 = vcombine.low %v3822_v44, %v3829_v45  ;;  %v5641_v56 = vcombine.high %v3822_v44, %v3829_v45  ;;  %v3934_v57 = vcombine.low %v3838_v46, %v3845_v47  ;;  %v5642_v58 = vcombine.high %v3838_v46, %v3845_v47  ;;  %v6165_v16 = vpop.eup %6164 }
 0xc7d   : > { %v3993_v50 = vrot.slane %v3986_v49, %v7729_v32  ;;  %v4001_v51 = vrot.slane %v5643_v52, %v7729_v32  ;;  %v4009_v63 = vrot.slane %v4002_v53, %v7729_v32  ;;  %v4017_v0 = vrot.slane %v5644_v54, %v7729_v32  ;;  %v6167_v15 = vpop.eup %6166 }
 0xc7e   : > { %v3925_v1 = vrot.slane %v3918_v55, %v7729_v32  ;;  %v3933_v3 = vrot.slane %v5641_v56, %v7729_v32  ;;  %v3941_v4 = vrot.slane %v3934_v57, %v7729_v32  ;;  %v3949_v5 = vrot.slane %v5642_v58, %v7729_v32 }
 0xc7f   : > { %v4018_v9 = vcombine.low %v3993_v50, %v4001_v51  ;;  %v4034_v11 = vcombine.low %v4009_v63, %v4017_v0  ;;  %v4019_v6 = vcombine.high %v3993_v50, %v4001_v51  ;;  %v4035_v24 = vcombine.high %v4009_v63, %v4017_v0 }
 0xc80   : > { %v3950_v12 = vcombine.low %v3925_v1, %v3933_v3  ;;  %v3966_v13 = vcombine.low %v3941_v4, %v3949_v5  ;;  %v3951_v14 = vcombine.high %v3925_v1, %v3933_v3  ;;  %v3967_v60 = vcombine.high %v3941_v4, %v3949_v5 }
 0xc81   : > { %v4026_v17 = vrot.slane %v4018_v9, %v7732_v39  ;;  %v4042_v18 = vrot.slane %v4034_v11, %v7732_v39  ;;  %v8098_v28 = vmul.f32 %v6165_v16, %v8043_v59  ;;  %v8101_v25 = vmul.f32 %v6167_v15, %v8045_v62 }
 0xc82   : > { %v3958_v61 = vrot.slane %v3950_v12, %v7732_v39  ;;  %v3974_v19 = vrot.slane %v3966_v13, %v7732_v39  ;;  %v3965_v20 = vrot.slane %v3951_v14, %v7732_v39  ;;  %v3981_v23 = vrot.slane %v3967_v60, %v7732_v39 }
 0xc83   : > { %v4050_v21 = vcombine.low %v4026_v17, %v4042_v18  ;;  %v4051_v22 = vcombine.high %v4026_v17, %v4042_v18  ;;  %v4033_v30 = vrot.slane %v4019_v6, %v7732_v39  ;;  %v4049_v31 = vrot.slane %v4035_v24, %v7732_v39 }
 0xc84   : > { %v3982_v26 = vcombine.low %v3958_v61, %v3974_v19  ;;  %v3983_v29 = vcombine.high %v3958_v61, %v3974_v19  ;;  %v3984_v35 = vcombine.low %v3965_v20, %v3981_v23  ;;  %v3985_v36 = vcombine.high %v3965_v20, %v3981_v23  ;;  %v6130_v61 = vld [vmem:[%s8500_s14 + $0x8] sm:$0xff]  }
 0xc85   : > { %v4052_v37 = vcombine.low %v4033_v30, %v4049_v31  ;;  %v4053_v38 = vcombine.high %v4033_v30, %v4049_v31  ;;  %v4296_v27 = vpack.c.bf16 %v8098_v28, %v8098_v28  ;;  %v4297_v59 = vpack.c.bf16 %v8101_v25, %v8101_v25 }
 0xc86   : > { %v4054_v33 = vpack.c.bf16 %v4050_v21, %v3982_v26  ;;  %v4055_v34 = vpack.c.bf16 %v4051_v22, %v3983_v29 }
 0xc87   : > { %v4056_v62 = vpack.c.bf16 %v4052_v37, %v3984_v35  ;;  %v4057_v10 = vpack.c.bf16 %v4053_v38, %v3985_v36 }
 0xc88   : > { %5886 = vmatpush3.bf16.msra.mxu1 %v4054_v33  ;;  %5892 = vmatpush3.bf16.msra.mxu0 %v4055_v34  ;;  %v6131_v34 = vld [vmem:[%s8501_s16] sm:$0xff]  }
 0xc89   : > { %5897 = vmatprep.subr.bf16.mxu1 %v6852_v2  ;;  %5903 = vmatprep.subr.bf16.mxu0 %v6852_v2 }
 0xc8b   : > { %5888 = vmatmul.mubr.msk.bf16.vlgmr.msra.gmra.mxu1 %vm3015_vm6, %v4296_v27  ;;  %5894 = vmatmul.mubr.msk.bf16.vlgmr.msra.gmra.mxu0 %vm3015_vm6, %v4297_v59 }
 0xc8c   : > { %5898 = vmatpush3.bf16.msra.mxu1 %v4056_v62  ;;  %5904 = vmatpush3.bf16.msra.mxu0 %v4057_v10 }
 0xc8d   : > { %5899 = vmatprep.mubr.msk.bf16.mxu1 %vm6853_vm1, %v6852_v2  ;;  %5905 = vmatprep.mubr.msk.bf16.mxu0 %vm6853_vm1, %v6852_v2 }
 0xc8e   : > { %5909 = vmatprep.subr.bf16.mxu1 %v6852_v2  ;;  %5917 = vmatprep.subr.bf16.mxu0 %v6852_v2 }
 0xca3   : > { %v4287_v40 = vpop.xlane.xlu0 %4286 }
 0xca4   : > { %6168 = vrcp.f32 %v4287_v40  ;;  %v4284_v41 = vpop.xlane.xlu1 %4283 }
 0xca5   : > { %6170 = vrcp.f32 %v4284_v41 }
 0xcb1   : > { %v6169_v42 = vpop.eup %6168 }
 0xcb2   : > { %v6171_v43 = vpop.eup %6170  ;;  %v8120_v44 = vmul.f32 %v6169_v42, %v8055_v7 }
 0xcb3   : > { %v8123_v45 = vmul.f32 %v6171_v43, %v8057_v8 }
 0xcb4   : > { %v4299_v46 = vpack.c.bf16 %v8120_v44, %v8120_v44 }
 0xcb5   : > { %v4298_v47 = vpack.c.bf16 %v8123_v45, %v8123_v45 }
 0xcb6   : > { %5906 = vmatmul.mubr.msk.bf16.vlgmr.msra.gmra.mxu0 %vm3015_vm6, %v4299_v46 }
 0xcb7   : > { %5900 = vmatmul.mubr.msk.bf16.vlgmr.msra.gmra.mxu1 %vm3015_vm6, %v4298_v47  ;;  %5921 = vmatprep.mubr.msk.bf16.mxu0 %vm6853_vm1, %v6852_v2 }
 0xcb8   : > { %5913 = vmatprep.mubr.msk.bf16.mxu1 %vm6853_vm1, %v6852_v2  ;;  %5910 = vmatpush3.bf16.msra.mxu1 %v6130_v61 }
 0xcb9   : > { %5911 = vmatprep.subr.bf16.mxu1 %v6852_v2 }
 0xcbc   : > { %5912 = vmatpush3.bf16.msra.mxu1 %v6131_v34 }
 0xcbd   : > { %5925 = vmatprep.subr.bf16.mxu1 %v6852_v2 }
 0xd4b   : > { %v4337_v7 = vpop.f32.mrf.mxu1  ;;  %v4380_v49 = vpop.f32.mrf.mxu0 }
 0xd4d   : > { %v5889_v8 = vpop.f32.mrf.mxu1  ;;  %v5895_v52 = vpop.f32.mrf.mxu0 }
 0xd4e   : > { %v5655_v52 = vld [vmem:[%s1741_s28] ss:$0 sm:$0xff] }
 0xd4f   : > { %v4340_v53 = vpop.f32.mrf.mxu1  ;;  %v4383_v54 = vpop.f32.mrf.mxu0 }
 0xd51   : > { %v5890_v55 = vpop.f32.mrf.mxu1  ;;  %v5896_v56 = vpop.f32.mrf.mxu0 }
 0xd76   : > { %v4466_v57 = vpop.f32.mrf.mxu0 }
 0xd77   : > { %v4423_v58 = vpop.f32.mrf.mxu1  ;;  %v4488_v50 = vcombine.low %v4380_v49, %v4466_v57  ;;  %v4489_v51 = vcombine.high %v4380_v49, %v4466_v57 }
 0xd78   : > { %v4472_v63 = vcombine.low %v4337_v7, %v4423_v58  ;;  %v4473_v0 = vcombine.high %v4337_v7, %v4423_v58  ;;  %v5907_v1 = vpop.f32.mrf.mxu0 }
 0xd79   : > { %v4496_v3 = vrot.slane %v4488_v50, %v7729_v32  ;;  %v4503_v4 = vrot.slane %v4489_v51, %v7729_v32  ;;  %v5901_v5 = vpop.f32.mrf.mxu1 }
 0xd7a   : > { %v4480_v9 = vrot.slane %v4472_v63, %v7729_v32  ;;  %v4487_v11 = vrot.slane %v4473_v0, %v7729_v32  ;;  %v4469_v12 = vpop.f32.mrf.mxu0  ;;  %v6134_v5 = vld [vmem:[%s7669_s23 + $0x18] sm:$0xff]  }
 0xd7b   : > { %v4426_v13 = vpop.f32.mrf.mxu1 }
 0xd7c   : > { %v4504_v14 = vcombine.low %v4480_v9, %v4496_v3  ;;  %v4505_v60 = vcombine.high %v4480_v9, %v4496_v3  ;;  %v4520_v16 = vcombine.low %v4487_v11, %v4503_v4  ;;  %v4521_v17 = vcombine.high %v4487_v11, %v4503_v4  ;;  %v5908_v18 = vpop.f32.mrf.mxu0  ;;  %v6132_v4 = vld [vmem:[%s1513_s20 + $0x8] sm:$0xff]  }
 0xd7d   : > { %v5902_v15 = vpop.f32.mrf.mxu1  ;;  %5918 = vmatpush3.bf16.msra.mxu0 %v6132_v4  ;;  %v6135_v9 = vld [vmem:[%s7669_s23 + $0x10] sm:$0xff]  }
 0xd7e   : > { %v4512_v19 = vrot.slane %v4504_v14, %v7732_v39  ;;  %v4519_v20 = vrot.slane %v4505_v60, %v7732_v39  ;;  %v4528_v23 = vrot.slane %v4520_v16, %v7732_v39  ;;  %v4535_v21 = vrot.slane %v4521_v17, %v7732_v39  ;;  %5919 = vmatprep.subr.bf16.mxu0 %v6852_v2  ;;  %v5659_v60 = vld [vmem:[%s1744_s22] ss:$0 sm:$0xff] }
 0xd7f   : > { %v5660_v17 = vld [vmem:[%s1747_s15] ss:$0 sm:$0xff] }
 0xd80   : > { %v4540_v22 = vcombine.low %v4512_v19, %v4519_v20  ;;  %v5653_v6 = vcombine.high %v4512_v19, %v4519_v20  ;;  %v4556_v24 = vcombine.low %v4528_v23, %v4535_v21  ;;  %v5654_v26 = vcombine.high %v4528_v23, %v4535_v21  ;;  %v6136_v19 = vld [vmem:[%s7669_s23 + $0x8] sm:$0xff]   ;;  %v6137_v20 = vld [vmem:[%s7669_s23] sm:$0xff]  }
 0xd81   : > { %v5661_v23 = vld [vmem:[%s1750_s8] ss:$0 sm:$0xff]  ;;  %s8509_s8 = sld [smem:[#allocation81_spill]] }
 0xd82   : > { %v4547_v29 = vrot.slane %v4540_v22, %v7729_v32  ;;  %v4555_v30 = vrot.slane %v5653_v6, %v7729_v32  ;;  %v4563_v31 = vrot.slane %v4556_v24, %v7729_v32  ;;  %v4571_v33 = vrot.slane %v5654_v26, %v7729_v32 }
 0xd84   : > { %v4573_v35 = vcombine.high %v4547_v29, %v4555_v30  ;;  %v4589_v36 = vcombine.high %v4563_v31, %v4571_v33  ;;  %v4572_v37 = vcombine.low %v4547_v29, %v4555_v30  ;;  %v4588_v38 = vcombine.low %v4563_v31, %v4571_v33  ;;  %v5665_v31 = vld [vmem:[%s1758_s13] ss:$0 sm:$0xff] }
 0xd86   : > { %v4587_v27 = vrot.slane %v4573_v35, %v7732_v39  ;;  %v4603_v59 = vrot.slane %v4589_v36, %v7732_v39  ;;  %v4580_v62 = vrot.slane %v4572_v37, %v7732_v39  ;;  %v4596_v10 = vrot.slane %v4588_v38, %v7732_v39 }
 0xd87   : > { %p5673_p5 = scmp.ne.s32.totalorder %s8509_s8, 1 }
 0xd88   : > { %v4606_v40 = vcombine.low %v4587_v27, %v4603_v59  ;;  %v4605_v32 = vcombine.high %v4580_v62, %v4596_v10  ;;  %v4604_v41 = vcombine.low %v4580_v62, %v4596_v10  ;;  %v4607_v42 = vcombine.high %v4587_v27, %v4603_v59 }
 0xd8a   : > { %4613 = vrot.lane.b32.xlu1 %v4606_v40, %s6860_s24  ;;  %4609 = vrot.lane.b32.xlu0 %v4605_v32, %s6861_s1 }
 0xd8e   : > { %4617 = vrot.lane.b32.xlu1 %v4607_v42, %s6862_s9 }
 0xdfc   : > { %v4614_v43 = vpop.permute.xlu1 %4613  ;;  %v4610_v46 = vpop.permute.xlu0 %4609 }
 0xdfd   : > { %v4620_v47 = vsel %vm2444_vm3, %v4604_v41, %v4610_v46  ;;  %v5671_v46 = vld [vmem:[%s1761_s17] ss:$0 sm:$0xff] }
 0xdfe   : > { %v4621_v49 = vsel %vm3015_vm6, %v4620_v47, %v4614_v43 }
 0xe00   : > { %v4618_v7 = vpop.permute.xlu1 %4617 }
 0xe01   : > { %v4622_v39 = vsel %vm3017_vm7, %v4621_v49, %v4618_v7  ;;  %v5672_v7 = vld [vmem:[%s1764_s26] ss:$0 sm:$0xff] }
 0xe02   : > { %v4623_v8 = vpack.c.bf16 %v4622_v39, %v4622_v39 }
 0xe04   : > { %5914 = vmatmul.mubr.msk.bf16.vlgmr.msra.gmra.mxu1 %vm1834_vm2, %v4623_v8 }
 0xe05   : > { %5933 = vmatprep.mubr.msk.bf16.mxu1 %vm6853_vm1, %v6852_v2  ;;  %5926 = vmatpush3.bf16.msra.mxu1 %v6134_v5 }
 0xe06   : > { %5927 = vmatprep.subr.bf16.mxu1 %v6852_v2 }
 0xe09   : > { %5928 = vmatpush3.bf16.msra.mxu1 %v6135_v9 }
 0xe0a   : > { %5929 = vmatprep.subr.bf16.mxu1 %v6852_v2 }
 0xe0d   : > { %5930 = vmatpush3.bf16.msra.mxu1 %v6136_v19 }
 0xe0e   : > { %5931 = vmatprep.subr.bf16.mxu1 %v6852_v2 }
 0xe11   : > { %5932 = vmatpush3.bf16.msra.mxu1 %v6137_v20 }
 0xec4   : > { %v4679_v53 = vpop.f32.mrf.mxu1 }
 0xec5   : > { %v4680_v54 = vadd.f32 %v5655_v52, %v4679_v53 }
 0xec6   : > { %v5915_v55 = vpop.f32.mrf.mxu1 }
 0xec7   : > { %v4685_v56 = vadd.f32 %v4680_v54, %v7926_v48  ;;  %v6133_v48 = vld [vmem:[%s1513_s20] sm:$0xff]  }
 0xec8   : > { %v4682_v57 = vpop.f32.mrf.mxu1  ;;  %5920 = vmatpush3.bf16.msra.mxu0 %v6133_v48 }
 0xec9   : > { %v4688_v58 = vsel %vm1834_vm2, %v4685_v56, 0.0 }
 0xeca   : > { %4689 = vadd.xlane.f32.xlu0 %v4688_v58  ;;  %v5916_v50 = vpop.f32.mrf.mxu1 }
 0xf53   : > { %v4690_v51 = vpop.xlane.xlu0 %4689 }
 0xf54   : > { %v4691_v63 = vmul.f32 0.03125, %v4690_v51 }
 0xf56   : > { %v4692_v0 = vsub.f32 %v4685_v56, %v4691_v63 }
 0xf58   : > { %v4693_v1 = vmul.f32 %v4692_v0, %v4692_v0 }
 0xf5a   : > { %v4694_v3 = vsel %vm1834_vm2, %v4693_v1, 0.0 }
 0xf5b   : > { %4695 = vadd.xlane.f32.xlu1 %v4694_v3 }
 0xfe4   : > { %v4696_v11 = vpop.xlane.xlu1 %4695 }
 0xfe5   : > { %v4697_v12 = vmul.f32 0.03125, %v4696_v11 }
 0xfe7   : > { %v4698_v13 = vadd.f32 1e-05, %v4697_v12 }
 0xfe9   : > { %6172 = vrsqrt.f32 %v4698_v13 }
 0xff6   : > { %v6173_v14 = vpop.eup %6172 }
 0xff7   : > { %v4700_v16 = vmul.f32 %v6173_v14, %v4692_v0 }
 0xff9   : > { %v4707_v18 = vmul.f32 %v5659_v60, %v4700_v16 }
 0xffb   : > { %v4714_v15 = vadd.f32 %v5660_v17, %v4707_v18 }
 0xffd   : > { %v4715_v61 = vpack.c.bf16 %v4714_v15, %v4714_v15 }
 0xfff   : > { %5922 = vmatmul.mubr.msk.bf16.vlgmr.msra.gmra.mxu0 %vm1834_vm2, %v4715_v61 }
0x10bf   : > { %v4776_v21 = vpop.f32.mrf.mxu0 }
0x10c0   : > { %v4777_v22 = vadd.f32 %v5661_v23, %v4776_v21 }
0x10c1   : > { %v5923_v6 = vpop.f32.mrf.mxu0 }
0x10c2   : > { %v4782_v24 = vmax.f32 %v4777_v22, 0.0 }
0x10c3   : > { %v4779_v26 = vpop.f32.mrf.mxu0 }
0x10c4   : > { %v4783_v29 = vpack.c.bf16 %v4782_v24, %v4782_v24 }
0x10c5   : > { %v5924_v30 = vpop.f32.mrf.mxu0 }
0x10c6   : > { %5934 = vmatmul.mubr.msk.bf16.vlgmr.msra.gmra.mxu1 %vm4823_vm8, %v4783_v29 }
0x1186   : > { %v4861_v33 = vpop.f32.mrf.mxu1 }
0x1187   : > { %v4862_v34 = vadd.f32 %v5665_v31, %v4861_v33 }
0x1188   : > { %v5935_v35 = vpop.f32.mrf.mxu1 }
0x1189   : > { %v4867_v36 = vadd.f32 %v4862_v34, %v4714_v15 }
0x118a   : > { %v4864_v2 = vpop.f32.mrf.mxu1 }
0x118b   : > { %v4870_v37 = vsel %vm1834_vm2, %v4867_v36, 0.0 }
0x118c   : > { %4871 = vadd.xlane.f32.xlu0 %v4870_v37  ;;  %v5936_v38 = vpop.f32.mrf.mxu1 }
0x1215   : > { %v4872_v27 = vpop.xlane.xlu0 %4871 }
0x1216   : > { %v4873_v59 = vmul.f32 0.03125, %v4872_v27 }
0x1218   : > { %v4874_v62 = vsub.f32 %v4867_v36, %v4873_v59 }
0x121a   : > { %v4875_v10 = vmul.f32 %v4874_v62, %v4874_v62 }
0x121c   : > { %v4876_v40 = vsel %vm1834_vm2, %v4875_v10, 0.0 }
0x121d   : > { %4877 = vadd.xlane.f32.xlu0 %v4876_v40 }
0x12a6   : > { %v4878_v32 = vpop.xlane.xlu0 %4877 }
0x12a7   : > { %v4879_v41 = vmul.f32 0.03125, %v4878_v32 }
0x12a9   : > { %v4880_v42 = vadd.f32 1e-05, %v4879_v41 }
0x12ab   : > { %6174 = vrsqrt.f32 %v4880_v42 }
0x12b8   : > { %v6175_v43 = vpop.eup %6174 }
0x12b9   : > { %v4882_v47 = vmul.f32 %v6175_v43, %v4874_v62 }
0x12bb   : > { %v4889_v49 = vmul.f32 %v5671_v46, %v4882_v47  ;;  %4901 = sbr.rel (%p5673_p5) target bundleno = 4803 (0x12c3), region = 216 }
0x12bd   : > { %v4896_v39 = vadd.f32 %v5672_v7, %v4889_v49 }
0x12bf   : > { %4897 = vst.msk [vmem:[#allocation2] sm:$0xff] %vm1834_vm2, %v4896_v39 }
0x12c0   : > { %4902 = vst.msk [vmem:[%s7678_s27] sm:$0xff] %vm1834_vm2, %v4896_v39 }
0x12c1   : > { %4903 = vst.msk [vmem:[%s7680_s7] sm:$0xff] %vm3015_vm6, %v8098_v28  ;;  %4904 = vst.msk [vmem:[%s7680_s7 + $0x8] sm:$0xff] %vm3015_vm6, %v8101_v25 }
0x12c2   : > { %4905 = vst.msk [vmem:[%s7680_s7 + $0x10] sm:$0xff] %vm3015_vm6, %v8123_v45  ;;  %4906 = vst.msk [vmem:[%s7680_s7 + $0x18] sm:$0xff] %vm3015_vm6, %v8120_v44 }
0x12c3 PF: > { %s8510_s12 = sld [smem:[#allocation82_spill]]  ;;  %s4926_s26 = sshll.u32 %s7678_s27, 4  ;;  %s4927_s26 = int_to_ptr.vmem [resolvable:$true] %s4926_s26 }
0x12c4   : > { %s8511_s6 = sld [smem:[#allocation74_spill]]  ;;  %s4908_s9 = scalar_lea.sflag [#allocation5], %s7561_s19 }
0x12c5   : > { %s8512_s13 = sld [smem:[#allocation91_spill]]  ;;  %s6618_s2 = scalar_lea.vmem %s4927_s26, 128 }
0x12c6   : > { %p6619_p8 = scmp.ne.s32.totalorder %s4927_s26, %s6618_s2  ;;  %s6863_s4 = smov [#allocation30]  }
0x12c7   : > { %s6622_s18 = sshll.u32 %s6863_s4, 4  ;;  %s6623_s18 = int_to_ptr.vmem [resolvable:$false] %s6622_s18 }
0x12c8   : > { %s6624_s0 = scalar_lea.vmem %s6623_s18, 256  ;;  %p6625_p4 = scmp.lt.s32.totalorder %s4927_s26, %s6623_s18 }
0x12c9   : > { %s5676_s23 = sshll.u32 %s8510_s12, 7  ;;  %p6626_p7 = scmp.lt.s32.totalorder %s6624_s0, %s6618_s2 }
0x12ca   : > { %s4924_s17 = scalar_lea.hbm %s8511_s6, %s5676_s23 }
0x12cb   : > { %p8513_p2 = scmp.ne.s32.totalorder %s8512_s13, 0  ;;  %p6627_p3 = por %p6626_p7, %p6625_p4 }
0x12cd   : > { %p6620_p1 = pnand %p6619_p8, %p8513_p2 }
0x12cf   : > { %p6621_p6 = pneg %p6620_p1 }
0x12d1   : > { %p6628_p13 = pnand %p6627_p3, %p6621_p6 }
0x12d3   : > { %6631 = shalt.err (!%p6628_p13)
}
0x12d4   : > { %s6632_s5 = scalar_lea.hbm %s4924_s17, 128  ;;  %s6636_s27 = scalar_lea.hbm %s8511_s6, 256 }
0x12d5   : > { %p6633_p12 = scmp.ne.s32.totalorder %s4924_s17, %s6632_s5  ;;  %p6637_p11 = scmp.lt.s32.totalorder %s4924_s17, %s8511_s6 }
0x12d6   : > { %p6638_p0 = scmp.lt.s32.totalorder %s6636_s27, %s6632_s5 }
0x12d7   : > { %p6634_p10 = pnand %p6633_p12, %p8513_p2 }
0x12d8   : > { %p6639_p5 = por %p6638_p0, %p6637_p11 }
0x12d9   : > { %p6635_p9 = pneg %p6634_p10 }
0x12db   : > { %p6640_p8 = pnand %p6639_p5, %p6635_p9 }
0x12dd   : > { %6643 = shalt.err (!%p6640_p8)
}
0x12de   : > { %s8514_s10 = sld [smem:[#allocation75_spill]]  ;;  %s5692_s30 = sshll.u32 %s8510_s12, 9 }
0x12df   : > { %5971 = dma.vmem_to_hbm [thread:$0]  (%p8513_p2), %s4927_s26, 128, %s4924_s17, %s4908_s9  }
0x12e0   : > { %s4939_s3 = sshll.u32 %s7680_s7, 4  ;;  %s4913_s14 = scalar_lea.sflag [#allocation32], %s7561_s19  ;;  %s8238_s3 = int_to_ptr.vmem [resolvable:$true] %s4939_s3 }
0x12e1   : > { %s6644_s16 = scalar_lea.vmem %s8238_s3, 512  ;;  %s6864_s25 = smov [#allocation31]  }
0x12e2   : > { %p6645_p1 = scmp.ne.s32.totalorder %s8238_s3, %s6644_s16  ;;  %s6648_s28 = sshll.u32 %s6864_s25, 4  ;;  %s6649_s28 = int_to_ptr.vmem [resolvable:$false] %s6648_s28 }
0x12e3   : > { %s6650_s21 = scalar_lea.vmem %s6649_s28, 1024  ;;  %p6651_p7 = scmp.lt.s32.totalorder %s8238_s3, %s6649_s28 }
0x12e4   : > { %s8515_s29 = smov %s8514_s10  ;;  %s8236_s11 = scalar_lea.hbm %s8514_s10, %s5692_s30 }
0x12e5   : > { %p6646_p6 = pnand %p6645_p1, %p8513_p2  ;;  %p6652_p3 = scmp.lt.s32.totalorder %s6650_s21, %s6644_s16 }
0x12e7   : > { %p6647_p4 = pneg %p6646_p6  ;;  %p6653_p13 = por %p6652_p3, %p6651_p7 }
0x12e9   : > { %p6654_p12 = pnand %p6653_p13, %p6647_p4 }
0x12eb   : > { %6657 = shalt.err (!%p6654_p12)
}
0x12ec   : > { %s6658_s7 = scalar_lea.hbm %s8236_s11, 512  ;;  %s6662_s24 = scalar_lea.hbm %s8515_s29, 1024 }
0x12ed   : > { %p6659_p10 = scmp.ne.s32.totalorder %s8236_s11, %s6658_s7  ;;  %p6663_p0 = scmp.lt.s32.totalorder %s8236_s11, %s8515_s29 }
0x12ee   : > { %p6664_p5 = scmp.lt.s32.totalorder %s6662_s24, %s6658_s7 }
0x12ef   : > { %p6660_p9 = pnand %p6659_p10, %p8513_p2 }
0x12f0   : > { %p6665_p8 = por %p6664_p5, %p6663_p0 }
0x12f1   : > { %p6661_p11 = pneg %p6660_p9 }
0x12f3   : > { %p6666_p1 = pnand %p6665_p8, %p6661_p11 }
0x12f5   : > { %6669 = shalt.err (!%p6666_p1)
}
0x12f6   : > { %s6865_s20 = smov 128  }
0x12f7   : > { %5972 = dma.vmem_to_hbm [thread:$0]  (%p8513_p2), %s8238_s3, 512, %s8236_s11, %s4913_s14, %s6865_s20, %s6865_s20, %s6861_s1  }
0x12f8 PF: > { %s8516_s22 = sld [smem:[#allocation85_spill]] }
0x12f9   : > { %s8517_s15 = sld [smem:[#allocation78_spill]] }
0x12fa   : > { %s8518_s8 = sld [smem:[#allocation92_spill]] }
0x12fe   : > { %p5982_p6 = scmp.ge.s32.totalorder %s8516_s22, 2 }
0x12ff   : > { %s4954_s12 = sand.u32 1, %s8517_s15  }
0x1300   : > { %p8519_p4 = scmp.ne.s32.totalorder %s8518_s8, 0  ;;  %s4955_s23 = scalar_lea.sflag [#allocation5], %s4954_s12 }
0x1302   : > { %p5976_p7 = pnand %p5982_p6, %p8519_p4 }
0x1304   : > { %p5977_p3 = pneg %p5976_p7 }
0x1306   : > { %6751 = dma.done.wait (%p5977_p3), %s4955_s23, 128  }
0x1307   : > { %6753 = vsyncadd (%p5977_p3), %s4955_s23, 4294967168  ;;  %s4964_s17 = scalar_lea.sflag [#allocation32], %s4954_s12 }
0x1308   : > { %6755 = dma.done.wait (%p5977_p3), %s4964_s17, 512  }
0x1309   : > { %6757 = vsyncadd (%p5977_p3), %s4964_s17, 4294966784  ;;  %s107_s15 = sadd.s32 1, %s8516_s22   ;;  %s8520_s0 = sld [smem:[#allocation76_spill]] }
0x130a   : > { %p104_p13 = scmp.ge.s32.totalorder %s107_s15, 6   ;;  %s8521_s22 = sld [smem:[#allocation77_spill]] }
0x130b   : > { %s8522_s23 = sld [smem:[#allocation88_spill]] }
0x130c   : > { %s8523_s26 = sld [smem:[#allocation79_spill]] }
0x130d   : > { %s8524_s28 = sld [smem:[#allocation80_spill]] }
0x130e   : > { %s8525_s1 = sld [smem:[#allocation89_spill]]  ;;  %106 = sbr.rel (!%p104_p13) target bundleno = 98 (0x62), region = 472 }
0x130f   : > { %s8526_s2 = sld [smem:[#allocation83_spill]] }
0x1310   : > { %s8527_s7 = sld [smem:[#allocation84_spill]] }
0x1311   : > { %s8528_s10 = sld [smem:[#allocation86_spill]] }
0x1312   : > { %s8529_s11 = sld [smem:[#allocation87_spill]] }
0x1313   :  { %4969 = vsyncpa [#allocation4], 1 }
0x1314   :  { %4971 = vsyncpa [#allocation4 + $0x1], 1 }
0x1315   :  { %4972 = vsyncpa [#allocation7], 1 }
0x1316   :  { %4974 = vsyncpa [#allocation7 + $0x1], 1 }
0x1317   :  { %4975 = vsyncpa [#allocation10], 1 }
0x1318   :  { %4977 = vsyncpa [#allocation10 + $0x1], 1 }
0x1319   :  { %4978 = vsyncpa [#allocation13], 1 }
0x131a   :  { %4980 = vsyncpa [#allocation13 + $0x1], 1 }
0x131b   :  { %4981 = vsyncpa [#allocation16], 1 }
0x131c   :  { %4983 = vsyncpa [#allocation16 + $0x1], 1 }
0x131d   :  { %4984 = vsyncpa [#allocation19], 1 }
0x131e   :  { %4986 = vsyncpa [#allocation19 + $0x1], 1 }
0x131f   :  { %4987 = vsyncpa [#allocation22], 1 }
0x1320   :  { %4989 = vsyncpa [#allocation22 + $0x1], 1 }
0x1321   :  { %4990 = vsyncpa [#allocation25], 1 }
0x1322   :  { %4992 = vsyncpa [#allocation25 + $0x1], 1 }
0x1323   :  { %4993 = vsyncpa [#allocation28], 1 }
0x1324   :  { %4995 = vsyncpa [#allocation28 + $0x1], 1 }
0x1325   :  { %4996 = vsyncpa [#allocation5], 1 }
0x1326   :  { %4998 = vsyncpa [#allocation5 + $0x1], 1 }
0x1327   :  { %4999 = vsyncpa [#allocation32], 1 }
0x1328   :  { %5001 = vsyncpa [#allocation32 + $0x1], 1 }

</bundles_post_ra>
